<compile_context>
chip_gen: v7x
topology: tpu7x:2x2x1
jax: 0.10.0
libtpu: 0.0.40
codegen_flags: <defaults>
</compile_context>

<pallas_src>
import jax
import jax.numpy as jnp
from jax.experimental import pallas as pl
from jax.experimental.pallas import tpu as pltpu

KSIZE = 7
PAD = 3
EPS = 1e-5
LEAKY_SLOPE = 0.01
SOFTPLUS_THRESHOLD = 20.0


def _round_up(x, m):
    return ((x + m - 1) // m) * m


def _vmem_limit(nbytes):
    # Review item: size the scoped-VMEM limit to the actual blocks; never go below a
    # safe default, cap near physical VMEM.
    return int(min(max(nbytes, 32 * 1024 * 1024), 100 * 1024 * 1024))


# ---------------------------------------------------------------------------- header

def header_kernel(x_ref, w_ref, o_ref):
    # x_ref: (1, Kp, HW) bf16 transposed im2col slab (K = 7*7*2 = 98, zero-padded to 128)
    # w_ref: (64, Kp)    bf16 flattened conv weight
    # o_ref: (1, 64, HW) bf16
    # Conv2d(2, 64, k=7) as a single MXU matmul: (64, Kp) x (Kp, HW) -> (64, HW).
    acc = jnp.dot(w_ref[...], x_ref[0], preferred_element_type=jnp.float32)
    # Conv bias omitted on purpose: InstanceNorm2d(affine=False) subtracts the
    # per-channel mean over HW, which cancels a per-channel bias exactly.
    # InstanceNorm2d(64): per-(sample, channel) stats over HW, biased var, eps=1e-5.
    # One-pass stats (sum + sum-of-squares together) -> a single pass over acc instead
    # of two dependent cross-lane reduction passes (review item).
    hw = acc.shape[1]
    inv_hw = 1.0 / hw
    s1 = jnp.sum(acc, axis=1, keepdims=True)
    s2 = jnp.sum(acc * acc, axis=1, keepdims=True)
    mean = s1 * inv_hw
    var = jnp.maximum(s2 * inv_hw - mean * mean, 0.0)
    y = (acc - mean) * jax.lax.rsqrt(var + EPS)
    # LeakyReLU, negative_slope = 0.01 (PyTorch default).
    y = jnp.where(y >= 0.0, y, LEAKY_SLOPE * y)
    o_ref[0] = y.astype(o_ref.dtype)


def _reflect_pad_hw(x):
    # nn.ReflectionPad2d(3): reflect without repeating the edge (jnp mode="reflect").
    return jnp.pad(x, ((0, 0), (0, 0), (PAD, PAD), (PAD, PAD)), mode="reflect")


def _im2col_T(x_pad, H, W):
    """(N, C, H+6, W+6) -> (N, 49*C, H*W) with k = (dy*7 + dx)*C + c."""
    N, C = x_pad.shape[:2]
    taps = [x_pad[:, :, dy:dy + H, dx:dx + W]
            for dy in range(KSIZE) for dx in range(KSIZE)]
    slab = jnp.stack(taps, axis=1)                       # (N, 49, C, H, W)
    return slab.reshape(N, KSIZE * KSIZE * C, H * W)


def header_forward(x, w_head_flat):
    """ReflectionPad2d(3) + Conv2d(2,64,7) + InstanceNorm2d(64) + LeakyReLU."""
    N, cin, H, W = x.shape
    HW = H * W
    cout, Kp = w_head_flat.shape
    K = KSIZE * KSIZE * cin
    # Cast to bf16 BEFORE building the slab (review item): halves slab HBM traffic.
    # Building the slab in-kernel was evaluated: for K=98 the in-VMEM shifted-copy cost
    # is roughly at parity with the saved HBM traffic, so the simple wrapper-side bf16
    # slab (pure XLA data movement) is kept.
    xpad = _reflect_pad_hw(x.astype(jnp.bfloat16))
    slab = _im2col_T(xpad, H, W)                          # (N, K, HW) bf16
    slab = jnp.pad(slab, ((0, 0), (0, Kp - K), (0, 0)))   # fill MXU rows: 98 -> 128
    # Grid over batch only: InstanceNorm needs full-HW statistics per image.
    # TODO(synk): for very large images (>~256x256 on v7x) switch to an HW-band-tiled
    # two-pass InstanceNorm so the per-image block no longer has to fit in VMEM.
    vmem = _vmem_limit(2 * (Kp * HW * 2 + cout * HW * 2 + cout * Kp * 2)
                       + 3 * cout * HW * 4 + (2 << 20))
    out = pl.pallas_call(
        header_kernel,
        out_shape=jax.ShapeDtypeStruct((N, cout, HW), jnp.bfloat16),
        grid=(N,),
        in_specs=[
            pl.BlockSpec((1, Kp, HW), lambda n: (n, 0, 0)),
            pl.BlockSpec((cout, Kp), lambda n: (0, 0)),
        ],
        out_specs=pl.BlockSpec((1, cout, HW), lambda n: (n, 0, 0)),
        compiler_params=pltpu.CompilerParams(
            dimension_semantics=("parallel",), vmem_limit_bytes=vmem),
    )(slab, w_head_flat)
    return out.reshape(N, cout, H, W)


# ------------------------------------------------------------------------------ tail

def _make_tail_kernel(Wpad, TB, halo):
    def tail_kernel(xa_ref, xb_ref, w_ref, b_ref, o_ref):
        # xa_ref: (1, 64, TB)   bf16 flattened padded-feature column block t
        # xb_ref: (1, 64, halo) bf16 the `halo` columns right after block t (stencil halo)
        # w_ref : (56, 64)      bf16 per-tap channel weights, row = dy*7 + dx (49..55 zero)
        # b_ref : (1, 1)        f32  conv bias (SMEM scalar)
        # o_ref : (1, 1, TB)    f32
        xin = jnp.concatenate([xa_ref[0], xb_ref[0]], axis=1)          # (64, TB + halo)
        # Channel-contraction matmul: taps[k, q] = sum_c w[k, c] * feat[c, q].
        taps = jnp.dot(w_ref[...], xin, preferred_element_type=jnp.float32)
        # Shifted-add: out[p] = sum_{dy,dx} taps[dy*7 + dx, p + dy*Wpad + dx].
        # dy*Wpad is a multiple of 128 -> inner slices are lane-aligned; only the 7
        # outer dx shifts need a lane rotation (could be pushed fully onto the XLU with
        # a strided pltpu.roll + sublane reduction if this epilogue ever dominates).
        acc = None
        for dx in range(KSIZE):
            part = None
            for dy in range(KSIZE):
                row = dy * KSIZE + dx
                piece = taps[row:row + 1, dy * Wpad: dy * Wpad + TB + 128]
                part = piece if part is None else part + piece
            contrib = part[:, dx:dx + TB]
            acc = contrib if acc is None else acc + contrib
        z = acc + b_ref[0, 0]
        # Softplus (beta=1, threshold=20), numerically stable.
        o_ref[0] = jnp.where(z > SOFTPLUS_THRESHOLD, z, jnp.logaddexp(z, 0.0))
    return tail_kernel


def tail_forward(feat, w_taps, b_tail, H, W):
    """ReflectionPad2d(3) + Conv2d(64,1,7) + Softplus, with NO im2col slab in HBM."""
    N, C = feat.shape[:2]
    Hp, Wp0 = H + 2 * PAD, W + 2 * PAD
    Wpad = _round_up(Wp0, 128)            # lane-aligned row stride of the padded feature
    halo = 6 * Wpad + 128                 # right halo needed by the 7x7 stencil (rounded)
    Lout = H * Wpad                       # output length on the padded-width grid
    m = max(1, min(pl.cdiv(8192, halo), pl.cdiv(Lout, halo)))
    TB = m * halo                         # column tile (multiple of 128 and of halo)
    nT = pl.cdiv(Lout, TB)
    Lin = (nT + 1) * TB                   # feature columns incl. zero tail padding

    fp = _reflect_pad_hw(feat)                                         # (N, 64, Hp, Wp0)
    fp = jnp.pad(fp, ((0, 0), (0, 0), (0, 0), (0, Wpad - Wp0)))        # width -> Wpad
    flat = fp.reshape(N, C, Hp * Wpad)
    flat = jnp.pad(flat, ((0, 0), (0, 0), (0, Lin - Hp * Wpad)))       # (N, 64, Lin)

    nrows = w_taps.shape[0]                                            # 56
    vmem = _vmem_limit(2 * (C * TB * 2 + C * halo * 2 + nrows * C * 2 + TB * 4)
                       + (nrows + 2) * (TB + halo) * 4
                       + C * (TB + halo) * 2 + (2 << 20))
    out = pl.pallas_call(
        _make_tail_kernel(Wpad, TB, halo),
        out_shape=jax.ShapeDtypeStruct((N, 1, nT * TB), jnp.float32),
        grid=(N, nT),
        in_specs=[
            pl.BlockSpec((1, C, TB), lambda n, t: (n, 0, t)),
            pl.BlockSpec((1, C, halo), lambda n, t: (n, 0, (t + 1) * m)),
            pl.BlockSpec((nrows, C), lambda n, t: (0, 0)),
            pl.BlockSpec(memory_space=pltpu.MemorySpace.SMEM),
        ],
        out_specs=pl.BlockSpec((1, 1, TB), lambda n, t: (n, 0, t)),
        compiler_params=pltpu.CompilerParams(
            dimension_semantics=("parallel", "parallel"), vmem_limit_bytes=vmem),
    )(flat, flat, w_taps, b_tail)
    # Drop the grid/width padding: (N, 1, nT*TB) -> (N, 1, H, W).
    return out[:, :, :Lout].reshape(N, 1, H, Wpad)[:, :, :, :W]


# ---------------------------------------------------------------------------- params

def init_params(key):
    k1, k2, k3, k4 = jax.random.split(key, 4)
    return {
        # PyTorch Conv2d layout: (cout, cin, kh, kw).
        "w_head": jax.random.normal(k1, (64, 2, KSIZE, KSIZE), jnp.float32) * 0.05,
        # b_head exists in the PyTorch module but is mathematically cancelled by
        # InstanceNorm2d(affine=False); kept for parameter parity, never used.
        "b_head": jax.random.normal(k2, (64,), jnp.float32) * 0.05,
        "w_tail": jax.random.normal(k3, (1, 64, KSIZE, KSIZE), jnp.float32) * 0.05,
        "b_tail": jax.random.normal(k4, (1,), jnp.float32) * 0.05,
    }


def prepare_params(params):
    """One-time weight repack (flatten + pad + bf16 cast), outside the jitted forward."""
    wh = params["w_head"]                                  # (64, 2, 7, 7)
    cout, cin = wh.shape[:2]
    K = KSIZE * KSIZE * cin
    Kp = _round_up(K, 128)
    w_head_flat = jnp.pad(
        jnp.transpose(wh, (0, 2, 3, 1)).reshape(cout, K),
        ((0, 0), (0, Kp - K))).astype(jnp.bfloat16)        # (64, 128)
    wt = params["w_tail"]                                  # (1, 64, 7, 7)
    ct = wt.shape[1]
    w_tail_taps = jnp.pad(
        jnp.transpose(wt[0], (1, 2, 0)).reshape(KSIZE * KSIZE, ct),
        ((0, 7), (0, 0))).astype(jnp.bfloat16)             # (56, 64), row = dy*7 + dx
    b_tail = params["b_tail"].reshape(1, 1).astype(jnp.float32)
    return {"w_head_flat": w_head_flat, "w_tail_taps": w_tail_taps, "b_tail": b_tail}


# --------------------------------------------------------------------------- forward

def usernet_forward(x_nchw, prepared):
    N, _, H, W = x_nchw.shape
    feat = header_forward(x_nchw, prepared["w_head_flat"])        # (N, 64, H, W) bf16
    # TODO(synk): CrossformerEncoder / CrossformerDecoder (and encoder_params /
    # decoder_params) are not defined in the provided source, so they are treated as
    # identity between header and tail. While they remain identity, header+tail could be
    # fused into one pallas_call per HW band to keep the 64-channel feature in VMEM.
    pred = feat
    return tail_forward(pred, prepared["w_tail_taps"], prepared["b_tail"], H, W)


def _reference_forward(x, params):
    """Pure-JAX f32 reference of the PyTorch forward (tolerance check only)."""
    dn = ("NCHW", "OIHW", "NCHW")
    xp = jnp.pad(x, ((0, 0), (0, 0), (PAD, PAD), (PAD, PAD)), mode="reflect")
    h = jax.lax.conv_general_dilated(xp, params["w_head"], (1, 1), "VALID",
                                     dimension_numbers=dn)
    h = h + params["b_head"].reshape(1, -1, 1, 1)
    mean = jnp.mean(h, axis=(2, 3), keepdims=True)
    var = jnp.mean(jnp.square(h - mean), axis=(2, 3), keepdims=True)
    h = (h - mean) * jax.lax.rsqrt(var + EPS)
    h = jnp.where(h >= 0.0, h, LEAKY_SLOPE * h)
    hp = jnp.pad(h, ((0, 0), (0, 0), (PAD, PAD), (PAD, PAD)), mode="reflect")
    t = jax.lax.conv_general_dilated(hp, params["w_tail"], (1, 1), "VALID",
                                     dimension_numbers=dn)
    t = t + params["b_tail"].reshape(1, -1, 1, 1)
    return jnp.where(t > SOFTPLUS_THRESHOLD, t, jnp.logaddexp(t, 0.0))


if __name__ == "__main__":
    key = jax.random.PRNGKey(0)
    pkey, xkey = jax.random.split(key)
    params = init_params(pkey)
    prepared = prepare_params(params)
    # Input matches the header's Conv2d(2, 64, ...): NCHW with 2 input channels.
    x = jax.random.normal(xkey, (2, 2, 16, 16), jnp.float32)
    fwd = jax.jit(usernet_forward)
    out = jax.block_until_ready(fwd(x, prepared))
    assert out.shape == (2, 1, 16, 16)
    assert bool(jnp.all(jnp.isfinite(out)))
    assert bool(jnp.all(out >= 0.0))          # Softplus output is non-negative
    ref = _reference_forward(x, params)
    # bf16 operands / bf16 feature map -> loose tolerance vs the f32 reference.
    assert bool(jnp.allclose(out, ref, atol=0.1, rtol=0.1)), (
        float(jnp.max(jnp.abs(out - ref))))
    print("KERNEL_OK")
</pallas_src>

<mosaic_0001>
module attributes {stable_mosaic.version = 11 : i64} {
  func.func @header_kernel(%arg0: i32, %arg1: memref<1x128x256xbf16, #tpu.memory_space<vmem>>, %arg2: memref<64x128xbf16, #tpu.memory_space<vmem>>, %arg3: memref<1x64x256xbf16, #tpu.memory_space<vmem>>) attributes {dimension_semantics = [#tpu.dimension_semantics<parallel>], iteration_bounds = array<i64: 2>, scalar_prefetch = 0 : i64, scratch_operands = 0 : i64, tpu.core_type = #tpu.core_type<tc>, window_params = [{transform_indices = @transform_0, window_bounds = array<i64: 1, 128, 256>}, {pipeline_mode = #tpu.pipeline_mode<synchronous>, transform_indices = @transform_1, window_bounds = array<i64: 64, 128>}, {transform_indices = @transform_2, window_bounds = array<i64: 1, 64, 256>}]} {
    %c0 = arith.constant 0 : index
    %c0_0 = arith.constant 0 : index
    %0 = vector.load %arg2[%c0, %c0_0] : memref<64x128xbf16, #tpu.memory_space<vmem>>, vector<64x128xbf16>
    %c0_1 = arith.constant 0 : index
    %c0_2 = arith.constant 0 : index
    %c0_3 = arith.constant 0 : index
    %1 = vector.load %arg1[%c0_1, %c0_2, %c0_3] : memref<1x128x256xbf16, #tpu.memory_space<vmem>>, vector<1x128x256xbf16>
    %2 = vector.shape_cast %1 : vector<1x128x256xbf16> to vector<128x256xbf16>
    %cst = arith.constant dense<0.000000e+00> : vector<64x256xf32>
    %3 = tpu.matmul %0, %2, %cst {dimension_numbers = #tpu.dot_dimension_numbers<[1], [0], [0], [1], [0, 0, 1, 1], [], []>} : vector<64x128xbf16>, vector<128x256xbf16>, vector<64x256xf32> -> vector<64x256xf32>
    %cst_4 = arith.constant dense<0.000000e+00> : vector<64xf32>
    %4 = vector.multi_reduction <add>, %3, %cst_4 [1] : vector<64x256xf32> to vector<64xf32>
    %5 = vector.shape_cast %4 : vector<64xf32> to vector<64x1xf32>
    %6 = arith.mulf %3, %3 : vector<64x256xf32>
    %cst_5 = arith.constant dense<0.000000e+00> : vector<64xf32>
    %7 = vector.multi_reduction <add>, %6, %cst_5 [1] : vector<64x256xf32> to vector<64xf32>
    %8 = vector.shape_cast %7 : vector<64xf32> to vector<64x1xf32>
    %cst_6 = arith.constant 3.906250e-03 : f32
    %9 = vector.broadcast %cst_6 : f32 to vector<64x1xf32>
    %10 = arith.mulf %5, %9 : vector<64x1xf32>
    %cst_7 = arith.constant 3.906250e-03 : f32
    %11 = vector.broadcast %cst_7 : f32 to vector<64x1xf32>
    %12 = arith.mulf %8, %11 : vector<64x1xf32>
    %13 = arith.mulf %10, %10 : vector<64x1xf32>
    %14 = arith.subf %12, %13 : vector<64x1xf32>
    %cst_8 = arith.constant 0.000000e+00 : f32
    %15 = vector.broadcast %cst_8 : f32 to vector<64x1xf32>
    %16 = arith.maximumf %14, %15 : vector<64x1xf32>
    %17 = vector.broadcast %10 : vector<64x1xf32> to vector<64x256xf32>
    %18 = arith.subf %3, %17 : vector<64x256xf32>
    %cst_9 = arith.constant 9.99999974E-6 : f32
    %19 = vector.broadcast %cst_9 : f32 to vector<64x1xf32>
    %20 = arith.addf %16, %19 : vector<64x1xf32>
    %21 = math.rsqrt %20 : vector<64x1xf32>
    %22 = vector.broadcast %21 : vector<64x1xf32> to vector<64x256xf32>
    %23 = arith.mulf %18, %22 : vector<64x256xf32>
    %cst_10 = arith.constant 0.000000e+00 : f32
    %24 = vector.broadcast %cst_10 : f32 to vector<64x256xf32>
    %25 = arith.cmpf oge, %23, %24 : vector<64x256xf32>
    %cst_11 = arith.constant 0.00999999977 : f32
    %26 = vector.broadcast %cst_11 : f32 to vector<64x256xf32>
    %27 = arith.mulf %26, %23 : vector<64x256xf32>
    %28 = arith.select %25, %23, %27 : vector<64x256xi1>, vector<64x256xf32>
    %29 = arith.truncf %28 : vector<64x256xf32> to vector<64x256xbf16>
    %c0_12 = arith.constant 0 : index
    %c0_13 = arith.constant 0 : index
    %c0_14 = arith.constant 0 : index
    %30 = vector.load %arg3[%c0_12, %c0_13, %c0_14] : memref<1x64x256xbf16, #tpu.memory_space<vmem>>, vector<1x64x256xbf16>
    %31 = vector.shape_cast %30 : vector<1x64x256xbf16> to vector<64x256xbf16>
    %32 = vector.shape_cast %29 : vector<64x256xbf16> to vector<1x64x256xbf16>
    tpu.vector_store %arg3[%c0_12, %c0_13, %c0_14], %32 {strides = array<i32>} : memref<1x64x256xbf16, #tpu.memory_space<vmem>>, vector<1x64x256xbf16>,
    return
  }
  func.func @transform_0(%arg0: i32) -> (i32, i32, i32) {
    %c0_i32 = arith.constant 0 : i32
    %c0_i32_0 = arith.constant 0 : i32
    %c0_i32_1 = arith.constant 0 : i32
    return %arg0, %c0_i32, %c0_i32_0 : i32, i32, i32
  }
  func.func @transform_1(%arg0: i32) -> (i32, i32) {
    %c0_i32 = arith.constant 0 : i32
    %c0_i32_0 = arith.constant 0 : i32
    %c0_i32_1 = arith.constant 0 : i32
    return %c0_i32, %c0_i32_0 : i32, i32
  }
  func.func @transform_2(%arg0: i32) -> (i32, i32, i32) {
    %c0_i32 = arith.constant 0 : i32
    %c0_i32_0 = arith.constant 0 : i32
    %c0_i32_1 = arith.constant 0 : i32
    return %arg0, %c0_i32, %c0_i32_0 : i32, i32, i32
  }
}

module attributes {stable_mosaic.version = 11 : i64} {
  func.func @tail_kernel(%arg0: i32, %arg1: i32, %arg2: memref<1x64x2688xbf16, #tpu.memory_space<vmem>>, %arg3: memref<1x64x896xbf16, #tpu.memory_space<vmem>>, %arg4: memref<56x64xbf16, #tpu.memory_space<vmem>>, %arg5: memref<1x1xf32, #tpu.memory_space<smem>>, %arg6: memref<1x1x2688xf32, #tpu.memory_space<vmem>>) attributes {dimension_semantics = [#tpu.dimension_semantics<parallel>, #tpu.dimension_semantics<parallel>], iteration_bounds = array<i64: 2, 1>, scalar_prefetch = 0 : i64, scratch_operands = 0 : i64, tpu.core_type = #tpu.core_type<tc>, window_params = [{transform_indices = @transform_0, window_bounds = array<i64: 1, 64, 2688>}, {transform_indices = @transform_1, window_bounds = array<i64: 1, 64, 896>}, {pipeline_mode = #tpu.pipeline_mode<synchronous>, transform_indices = @transform_2, window_bounds = array<i64: 56, 64>}, {transform_indices = @transform_3, window_bounds = array<i64: 1, 1>}, {transform_indices = @transform_4, window_bounds = array<i64: 1, 1, 2688>}]} {
    %c0 = arith.constant 0 : index
    %c0_0 = arith.constant 0 : index
    %c0_1 = arith.constant 0 : index
    %0 = vector.load %arg2[%c0, %c0_0, %c0_1] : memref<1x64x2688xbf16, #tpu.memory_space<vmem>>, vector<1x64x2688xbf16>
    %1 = vector.shape_cast %0 : vector<1x64x2688xbf16> to vector<64x2688xbf16>
    %c0_2 = arith.constant 0 : index
    %c0_3 = arith.constant 0 : index
    %c0_4 = arith.constant 0 : index
    %2 = vector.load %arg3[%c0_2, %c0_3, %c0_4] : memref<1x64x896xbf16, #tpu.memory_space<vmem>>, vector<1x64x896xbf16>
    %3 = vector.shape_cast %2 : vector<1x64x896xbf16> to vector<64x896xbf16>
    %4 = tpu.concatenate %1, %3 in 1 : vector<64x2688xbf16>, vector<64x896xbf16> -> vector<64x3584xbf16>
    %c0_5 = arith.constant 0 : index
    %c0_6 = arith.constant 0 : index
    %5 = vector.load %arg4[%c0_5, %c0_6] : memref<56x64xbf16, #tpu.memory_space<vmem>>, vector<56x64xbf16>
    %cst = arith.constant dense<0.000000e+00> : vector<56x3584xf32>
    %6 = tpu.matmul %5, %4, %cst {dimension_numbers = #tpu.dot_dimension_numbers<[1], [0], [0], [1], [0, 0, 1, 1], [], []>} : vector<56x64xbf16>, vector<64x3584xbf16>, vector<56x3584xf32> -> vector<56x3584xf32>
    %7 = vector.extract_strided_slice %6 {offsets = [0, 0], sizes = [1, 2816], strides = [1, 1]} : vector<56x3584xf32> to vector<1x2816xf32>
    %8 = vector.extract_strided_slice %6 {offsets = [7, 128], sizes = [1, 2816], strides = [1, 1]} : vector<56x3584xf32> to vector<1x2816xf32>
    %9 = arith.addf %7, %8 : vector<1x2816xf32>
    %10 = vector.extract_strided_slice %6 {offsets = [14, 256], sizes = [1, 2816], strides = [1, 1]} : vector<56x3584xf32> to vector<1x2816xf32>
    %11 = arith.addf %9, %10 : vector<1x2816xf32>
    %12 = vector.extract_strided_slice %6 {offsets = [21, 384], sizes = [1, 2816], strides = [1, 1]} : vector<56x3584xf32> to vector<1x2816xf32>
    %13 = arith.addf %11, %12 : vector<1x2816xf32>
    %14 = vector.extract_strided_slice %6 {offsets = [28, 512], sizes = [1, 2816], strides = [1, 1]} : vector<56x3584xf32> to vector<1x2816xf32>
    %15 = arith.addf %13, %14 : vector<1x2816xf32>
    %16 = vector.extract_strided_slice %6 {offsets = [35, 640], sizes = [1, 2816], strides = [1, 1]} : vector<56x3584xf32> to vector<1x2816xf32>
    %17 = arith.addf %15, %16 : vector<1x2816xf32>
    %18 = vector.extract_strided_slice %6 {offsets = [42, 768], sizes = [1, 2816], strides = [1, 1]} : vector<56x3584xf32> to vector<1x2816xf32>
    %19 = arith.addf %17, %18 : vector<1x2816xf32>
    %20 = vector.extract_strided_slice %19 {offsets = [0, 0], sizes = [1, 2688], strides = [1, 1]} : vector<1x2816xf32> to vector<1x2688xf32>
    %21 = vector.extract_strided_slice %6 {offsets = [1, 0], sizes = [1, 2816], strides = [1, 1]} : vector<56x3584xf32> to vector<1x2816xf32>
    %22 = vector.extract_strided_slice %6 {offsets = [8, 128], sizes = [1, 2816], strides = [1, 1]} : vector<56x3584xf32> to vector<1x2816xf32>
    %23 = arith.addf %21, %22 : vector<1x2816xf32>
    %24 = vector.extract_strided_slice %6 {offsets = [15, 256], sizes = [1, 2816], strides = [1, 1]} : vector<56x3584xf32> to vector<1x2816xf32>
    %25 = arith.addf %23, %24 : vector<1x2816xf32>
    %26 = vector.extract_strided_slice %6 {offsets = [22, 384], sizes = [1, 2816], strides = [1, 1]} : vector<56x3584xf32> to vector<1x2816xf32>
    %27 = arith.addf %25, %26 : vector<1x2816xf32>
    %28 = vector.extract_strided_slice %6 {offsets = [29, 512], sizes = [1, 2816], strides = [1, 1]} : vector<56x3584xf32> to vector<1x2816xf32>
    %29 = arith.addf %27, %28 : vector<1x2816xf32>
    %30 = vector.extract_strided_slice %6 {offsets = [36, 640], sizes = [1, 2816], strides = [1, 1]} : vector<56x3584xf32> to vector<1x2816xf32>
    %31 = arith.addf %29, %30 : vector<1x2816xf32>
    %32 = vector.extract_strided_slice %6 {offsets = [43, 768], sizes = [1, 2816], strides = [1, 1]} : vector<56x3584xf32> to vector<1x2816xf32>
    %33 = arith.addf %31, %32 : vector<1x2816xf32>
    %34 = vector.extract_strided_slice %33 {offsets = [0, 1], sizes = [1, 2688], strides = [1, 1]} : vector<1x2816xf32> to vector<1x2688xf32>
    %35 = arith.addf %20, %34 : vector<1x2688xf32>
    %36 = vector.extract_strided_slice %6 {offsets = [2, 0], sizes = [1, 2816], strides = [1, 1]} : vector<56x3584xf32> to vector<1x2816xf32>
    %37 = vector.extract_strided_slice %6 {offsets = [9, 128], sizes = [1, 2816], strides = [1, 1]} : vector<56x3584xf32> to vector<1x2816xf32>
    %38 = arith.addf %36, %37 : vector<1x2816xf32>
    %39 = vector.extract_strided_slice %6 {offsets = [16, 256], sizes = [1, 2816], strides = [1, 1]} : vector<56x3584xf32> to vector<1x2816xf32>
    %40 = arith.addf %38, %39 : vector<1x2816xf32>
    %41 = vector.extract_strided_slice %6 {offsets = [23, 384], sizes = [1, 2816], strides = [1, 1]} : vector<56x3584xf32> to vector<1x2816xf32>
    %42 = arith.addf %40, %41 : vector<1x2816xf32>
    %43 = vector.extract_strided_slice %6 {offsets = [30, 512], sizes = [1, 2816], strides = [1, 1]} : vector<56x3584xf32> to vector<1x2816xf32>
    %44 = arith.addf %42, %43 : vector<1x2816xf32>
    %45 = vector.extract_strided_slice %6 {offsets = [37, 640], sizes = [1, 2816], strides = [1, 1]} : vector<56x3584xf32> to vector<1x2816xf32>
    %46 = arith.addf %44, %45 : vector<1x2816xf32>
    %47 = vector.extract_strided_slice %6 {offsets = [44, 768], sizes = [1, 2816], strides = [1, 1]} : vector<56x3584xf32> to vector<1x2816xf32>
    %48 = arith.addf %46, %47 : vector<1x2816xf32>
    %49 = vector.extract_strided_slice %48 {offsets = [0, 2], sizes = [1, 2688], strides = [1, 1]} : vector<1x2816xf32> to vector<1x2688xf32>
    %50 = arith.addf %35, %49 : vector<1x2688xf32>
    %51 = vector.extract_strided_slice %6 {offsets = [3, 0], sizes = [1, 2816], strides = [1, 1]} : vector<56x3584xf32> to vector<1x2816xf32>
    %52 = vector.extract_strided_slice %6 {offsets = [10, 128], sizes = [1, 2816], strides = [1, 1]} : vector<56x3584xf32> to vector<1x2816xf32>
    %53 = arith.addf %51, %52 : vector<1x2816xf32>
    %54 = vector.extract_strided_slice %6 {offsets = [17, 256], sizes = [1, 2816], strides = [1, 1]} : vector<56x3584xf32> to vector<1x2816xf32>
    %55 = arith.addf %53, %54 : vector<1x2816xf32>
    %56 = vector.extract_strided_slice %6 {offsets = [24, 384], sizes = [1, 2816], strides = [1, 1]} : vector<56x3584xf32> to vector<1x2816xf32>
    %57 = arith.addf %55, %56 : vector<1x2816xf32>
    %58 = vector.extract_strided_slice %6 {offsets = [31, 512], sizes = [1, 2816], strides = [1, 1]} : vector<56x3584xf32> to vector<1x2816xf32>
    %59 = arith.addf %57, %58 : vector<1x2816xf32>
    %60 = vector.extract_strided_slice %6 {offsets = [38, 640], sizes = [1, 2816], strides = [1, 1]} : vector<56x3584xf32> to vector<1x2816xf32>
    %61 = arith.addf %59, %60 : vector<1x2816xf32>
    %62 = vector.extract_strided_slice %6 {offsets = [45, 768], sizes = [1, 2816], strides = [1, 1]} : vector<56x3584xf32> to vector<1x2816xf32>
    %63 = arith.addf %61, %62 : vector<1x2816xf32>
    %64 = vector.extract_strided_slice %63 {offsets = [0, 3], sizes = [1, 2688], strides = [1, 1]} : vector<1x2816xf32> to vector<1x2688xf32>
    %65 = arith.addf %50, %64 : vector<1x2688xf32>
    %66 = vector.extract_strided_slice %6 {offsets = [4, 0], sizes = [1, 2816], strides = [1, 1]} : vector<56x3584xf32> to vector<1x2816xf32>
    %67 = vector.extract_strided_slice %6 {offsets = [11, 128], sizes = [1, 2816], strides = [1, 1]} : vector<56x3584xf32> to vector<1x2816xf32>
    %68 = arith.addf %66, %67 : vector<1x2816xf32>
    %69 = vector.extract_strided_slice %6 {offsets = [18, 256], sizes = [1, 2816], strides = [1, 1]} : vector<56x3584xf32> to vector<1x2816xf32>
    %70 = arith.addf %68, %69 : vector<1x2816xf32>
    %71 = vector.extract_strided_slice %6 {offsets = [25, 384], sizes = [1, 2816], strides = [1, 1]} : vector<56x3584xf32> to vector<1x2816xf32>
    %72 = arith.addf %70, %71 : vector<1x2816xf32>
    %73 = vector.extract_strided_slice %6 {offsets = [32, 512], sizes = [1, 2816], strides = [1, 1]} : vector<56x3584xf32> to vector<1x2816xf32>
    %74 = arith.addf %72, %73 : vector<1x2816xf32>
    %75 = vector.extract_strided_slice %6 {offsets = [39, 640], sizes = [1, 2816], strides = [1, 1]} : vector<56x3584xf32> to vector<1x2816xf32>
    %76 = arith.addf %74, %75 : vector<1x2816xf32>
    %77 = vector.extract_strided_slice %6 {offsets = [46, 768], sizes = [1, 2816], strides = [1, 1]} : vector<56x3584xf32> to vector<1x2816xf32>
    %78 = arith.addf %76, %77 : vector<1x2816xf32>
    %79 = vector.extract_strided_slice %78 {offsets = [0, 4], sizes = [1, 2688], strides = [1, 1]} : vector<1x2816xf32> to vector<1x2688xf32>
    %80 = arith.addf %65, %79 : vector<1x2688xf32>
    %81 = vector.extract_strided_slice %6 {offsets = [5, 0], sizes = [1, 2816], strides = [1, 1]} : vector<56x3584xf32> to vector<1x2816xf32>
    %82 = vector.extract_strided_slice %6 {offsets = [12, 128], sizes = [1, 2816], strides = [1, 1]} : vector<56x3584xf32> to vector<1x2816xf32>
    %83 = arith.addf %81, %82 : vector<1x2816xf32>
    %84 = vector.extract_strided_slice %6 {offsets = [19, 256], sizes = [1, 2816], strides = [1, 1]} : vector<56x3584xf32> to vector<1x2816xf32>
    %85 = arith.addf %83, %84 : vector<1x2816xf32>
    %86 = vector.extract_strided_slice %6 {offsets = [26, 384], sizes = [1, 2816], strides = [1, 1]} : vector<56x3584xf32> to vector<1x2816xf32>
    %87 = arith.addf %85, %86 : vector<1x2816xf32>
    %88 = vector.extract_strided_slice %6 {offsets = [33, 512], sizes = [1, 2816], strides = [1, 1]} : vector<56x3584xf32> to vector<1x2816xf32>
    %89 = arith.addf %87, %88 : vector<1x2816xf32>
    %90 = vector.extract_strided_slice %6 {offsets = [40, 640], sizes = [1, 2816], strides = [1, 1]} : vector<56x3584xf32> to vector<1x2816xf32>
    %91 = arith.addf %89, %90 : vector<1x2816xf32>
    %92 = vector.extract_strided_slice %6 {offsets = [47, 768], sizes = [1, 2816], strides = [1, 1]} : vector<56x3584xf32> to vector<1x2816xf32>
    %93 = arith.addf %91, %92 : vector<1x2816xf32>
    %94 = vector.extract_strided_slice %93 {offsets = [0, 5], sizes = [1, 2688], strides = [1, 1]} : vector<1x2816xf32> to vector<1x2688xf32>
    %95 = arith.addf %80, %94 : vector<1x2688xf32>
    %96 = vector.extract_strided_slice %6 {offsets = [6, 0], sizes = [1, 2816], strides = [1, 1]} : vector<56x3584xf32> to vector<1x2816xf32>
    %97 = vector.extract_strided_slice %6 {offsets = [13, 128], sizes = [1, 2816], strides = [1, 1]} : vector<56x3584xf32> to vector<1x2816xf32>
    %98 = arith.addf %96, %97 : vector<1x2816xf32>
    %99 = vector.extract_strided_slice %6 {offsets = [20, 256], sizes = [1, 2816], strides = [1, 1]} : vector<56x3584xf32> to vector<1x2816xf32>
    %100 = arith.addf %98, %99 : vector<1x2816xf32>
    %101 = vector.extract_strided_slice %6 {offsets = [27, 384], sizes = [1, 2816], strides = [1, 1]} : vector<56x3584xf32> to vector<1x2816xf32>
    %102 = arith.addf %100, %101 : vector<1x2816xf32>
    %103 = vector.extract_strided_slice %6 {offsets = [34, 512], sizes = [1, 2816], strides = [1, 1]} : vector<56x3584xf32> to vector<1x2816xf32>
    %104 = arith.addf %102, %103 : vector<1x2816xf32>
    %105 = vector.extract_strided_slice %6 {offsets = [41, 640], sizes = [1, 2816], strides = [1, 1]} : vector<56x3584xf32> to vector<1x2816xf32>
    %106 = arith.addf %104, %105 : vector<1x2816xf32>
    %107 = vector.extract_strided_slice %6 {offsets = [48, 768], sizes = [1, 2816], strides = [1, 1]} : vector<56x3584xf32> to vector<1x2816xf32>
    %108 = arith.addf %106, %107 : vector<1x2816xf32>
    %109 = vector.extract_strided_slice %108 {offsets = [0, 6], sizes = [1, 2688], strides = [1, 1]} : vector<1x2816xf32> to vector<1x2688xf32>
    %110 = arith.addf %95, %109 : vector<1x2688xf32>
    %c0_7 = arith.constant 0 : index
    %c0_8 = arith.constant 0 : index
    %111 = memref.load %arg5[%c0_7, %c0_8] : memref<1x1xf32, #tpu.memory_space<smem>>
    %112 = vector.broadcast %111 : f32 to vector<1x2688xf32>
    %113 = arith.addf %110, %112 : vector<1x2688xf32>
    %cst_9 = arith.constant 2.000000e+01 : f32
    %114 = vector.broadcast %cst_9 : f32 to vector<1x2688xf32>
    %115 = arith.cmpf ogt, %113, %114 : vector<1x2688xf32>
    %cst_10 = arith.constant 0.000000e+00 : f32
    %116 = vector.broadcast %cst_10 : f32 to vector<1x2688xf32>
    %117 = arith.maximumf %113, %116 : vector<1x2688xf32>
    %118 = vector.broadcast %cst_10 : f32 to vector<1x2688xf32>
    %119 = arith.subf %113, %118 : vector<1x2688xf32>
    %120 = arith.cmpf one, %119, %119 : vector<1x2688xf32>
    %121 = vector.broadcast %cst_10 : f32 to vector<1x2688xf32>
    %122 = arith.addf %113, %121 : vector<1x2688xf32>
    %123 = math.absf %119 : vector<1x2688xf32>
    %cst_11 = arith.constant 0.000000e+00 : f32
    %124 = vector.broadcast %cst_11 : f32 to vector<1x2688xf32>
    %125 = arith.subf %124, %123 : vector<1x2688xf32>
    %126 = math.exp %125 : vector<1x2688xf32>
    %127 = math.log1p %126 : vector<1x2688xf32>
    %128 = arith.addf %117, %127 : vector<1x2688xf32>
    %129 = arith.select %120, %122, %128 : vector<1x2688xi1>, vector<1x2688xf32>
    %130 = arith.select %115, %113, %129 : vector<1x2688xi1>, vector<1x2688xf32>
    %c0_12 = arith.constant 0 : index
    %c0_13 = arith.constant 0 : index
    %c0_14 = arith.constant 0 : index
    %131 = vector.load %arg6[%c0_12, %c0_13, %c0_14] : memref<1x1x2688xf32, #tpu.memory_space<vmem>>, vector<1x1x2688xf32>
    %132 = vector.shape_cast %131 : vector<1x1x2688xf32> to vector<1x2688xf32>
    %133 = vector.shape_cast %130 : vector<1x2688xf32> to vector<1x1x2688xf32>
    tpu.vector_store %arg6[%c0_12, %c0_13, %c0_14], %133 {strides = array<i32>} : memref<1x1x2688xf32, #tpu.memory_space<vmem>>, vector<1x1x2688xf32>,
    return
  }
  func.func @transform_0(%arg0: i32, %arg1: i32) -> (i32, i32, i32) {
    %c0_i32 = arith.constant 0 : i32
    %c0_i32_0 = arith.constant 0 : i32
    return %arg0, %c0_i32, %arg1 : i32, i32, i32
  }
  func.func @transform_1(%arg0: i32, %arg1: i32) -> (i32, i32, i32) {
    %c1_i32 = arith.constant 1 : i32
    %0 = arith.addi %arg1, %c1_i32 : i32
    %c3_i32 = arith.constant 3 : i32
    %1 = arith.muli %0, %c3_i32 : i32
    %c0_i32 = arith.constant 0 : i32
    %c0_i32_0 = arith.constant 0 : i32
    return %arg0, %c0_i32, %1 : i32, i32, i32
  }
  func.func @transform_2(%arg0: i32, %arg1: i32) -> (i32, i32) {
    %c0_i32 = arith.constant 0 : i32
    %c0_i32_0 = arith.constant 0 : i32
    %c0_i32_1 = arith.constant 0 : i32
    return %c0_i32, %c0_i32_0 : i32, i32
  }
  func.func @transform_3(%arg0: i32, %arg1: i32) -> (i32, i32) {
    %c0_i32 = arith.constant 0 : i32
    %c0_i32_0 = arith.constant 0 : i32
    %c0_i32_1 = arith.constant 0 : i32
    return %c0_i32, %c0_i32_0 : i32, i32
  }
  func.func @transform_4(%arg0: i32, %arg1: i32) -> (i32, i32, i32) {
    %c0_i32 = arith.constant 0 : i32
    %c0_i32_0 = arith.constant 0 : i32
    return %arg0, %c0_i32, %arg1 : i32, i32, i32
  }
}

</mosaic_0001>

<bundles_post_ra>
// kernel: usernet_forward.2
= control target key start
LH: loop header
LB: loop body
LE: loop exit
PB: predicated region body
PF: predicated region fallthrough
CT: control target
= control target key end

     0   :  { %s799_s9 = smov 0   ;;  %s998_s0 = inlined_call_operand.vmem [shape: bf16[2,128,256], index: 0, kind: input, shape index: {}]   ;;  %s999_s1 = inlined_call_operand.vmem [shape: bf16[64,128], index: 1, kind: input, shape index: {}]   ;;  %s1000_s2 = inlined_call_operand.vmem [shape: bf16[2,64,256], index: 2, kind: output, shape index: {}]  }
   0x1 LB: > { %s657_s10 = sadd.s32 4294967295, %s781_s9   ;;  %p661_p0 = scmp.ge.s32.totalorder %s781_s9, 1  ;;  %s781_s9 = sphi %s799_s9, %s12_s9  }
   0x2   : > { %p112_p1 = scmp.lt.s32.totalorder %s781_s9, 3 }
   0x4   : > { %p113_p2 = pnand %p661_p0, %p112_p1 }
   0x5   : > { %p134_p3 = scmp.lt.s32.totalorder (!%p113_p2), %s657_s10, 1  ;;  %v783_v0 = vmov (!%p113_p2), 0   ;;  %v755_v17 = vld [vmem:[%s999_s1] sm:$0xff] (!%p113_p2)   ;;  %v756_v18 = vld [vmem:[%s999_s1 + $0x10] sm:$0xff] (!%p113_p2)   ;;  %v757_v19 = vld [vmem:[%s999_s1 + $0x8] sm:$0xff] (!%p113_p2)  }
   0x6   : > { %116 = sbr.rel (%p113_p2) target bundleno = 472 (0x1d8), region = 28  ;;  %305 = vmatprep.mubr.bf16.mxu0 (!%p113_p2), %v783_v0  ;;  %325 = vmatprep.mubr.bf16.mxu1 (!%p113_p2), %v783_v0  ;;  %v758_v20 = vld [vmem:[%s999_s1 + $0x18] sm:$0xff] (!%p113_p2)  }
   0xd   : > { %s1002_s10 = smov (!%p134_p3, %s657_s10), 1 }
   0xe   : > { %s696_s11 = sshll.u32 %s1002_s10, 7  ;;  %s697_s23 = sshll.u32 %s1002_s10, 6 }
   0xf   : > { %s813_s14 = scalar_lea.vmem %s998_s0, %s696_s11  ;;  %s967_s26 = scalar_lea.vmem %s1000_s2, %s697_s23 }
  0x10   : > { %v731_v1 = vld [vmem:[%s813_s14 + $0x4] ss:$8 sps:$4 sm:$0xff]   ;;  %v733_v2 = vld [vmem:[%s813_s14] ss:$8 sps:$4 sm:$0xff]   ;;  %v734_v3 = vld [vmem:[%s813_s14 + $0x14] ss:$8 sps:$4 sm:$0xff]  }
  0x11   : > { %273 = vmatprep.subr.bf16.mxu0 %v731_v1  ;;  %706 = vmatprep.subr.bf16.mxu1 %v731_v1  ;;  %v736_v4 = vld [vmem:[%s813_s14 + $0x10] ss:$8 sps:$4 sm:$0xff]   ;;  %v737_v5 = vld [vmem:[%s813_s14 + $0x24] ss:$8 sps:$4 sm:$0xff]   ;;  %v739_v6 = vld [vmem:[%s813_s14 + $0x20] ss:$8 sps:$4 sm:$0xff]  }
  0x12   : > { %274 = vmatpush1.bf16.msra.mxu0 %v733_v2  ;;  %714 = vmatpush1.bf16.msra.mxu1 %v733_v2  ;;  %v740_v7 = vld [vmem:[%s813_s14 + $0x34] ss:$8 sps:$4 sm:$0xff]   ;;  %v742_v8 = vld [vmem:[%s813_s14 + $0x30] ss:$8 sps:$4 sm:$0xff]   ;;  %v743_v9 = vld [vmem:[%s813_s14 + $0x44] ss:$8 sps:$4 sm:$0xff]  }
  0x13   : > { %275 = vmatprep.subr.bf16.mxu0 %v734_v3  ;;  %707 = vmatprep.subr.bf16.mxu1 %v734_v3  ;;  %v745_v10 = vld [vmem:[%s813_s14 + $0x40] ss:$8 sps:$4 sm:$0xff]   ;;  %v746_v11 = vld [vmem:[%s813_s14 + $0x54] ss:$8 sps:$4 sm:$0xff]   ;;  %v748_v12 = vld [vmem:[%s813_s14 + $0x50] ss:$8 sps:$4 sm:$0xff]  }
  0x14   : > { %v749_v13 = vld [vmem:[%s813_s14 + $0x64] ss:$8 sps:$4 sm:$0xff]   ;;  %v751_v14 = vld [vmem:[%s813_s14 + $0x60] ss:$8 sps:$4 sm:$0xff]   ;;  %v752_v15 = vld [vmem:[%s813_s14 + $0x74] ss:$8 sps:$4 sm:$0xff]  }
  0x15   : > { %v754_v16 = vld [vmem:[%s813_s14 + $0x70] ss:$8 sps:$4 sm:$0xff]  }
  0x16   : > { %276 = vmatpush1.bf16.msra.mxu0 %v736_v4  ;;  %715 = vmatpush1.bf16.msra.mxu1 %v736_v4 }
  0x17   : > { %277 = vmatprep.subr.bf16.mxu0 %v737_v5  ;;  %708 = vmatprep.subr.bf16.mxu1 %v737_v5 }
  0x1a   : > { %278 = vmatpush1.bf16.msra.mxu0 %v739_v6  ;;  %716 = vmatpush1.bf16.msra.mxu1 %v739_v6 }
  0x1b   : > { %279 = vmatprep.subr.bf16.mxu0 %v740_v7  ;;  %709 = vmatprep.subr.bf16.mxu1 %v740_v7 }
  0x1e   : > { %280 = vmatpush1.bf16.msra.mxu0 %v742_v8  ;;  %717 = vmatpush1.bf16.msra.mxu1 %v742_v8 }
  0x1f   : > { %281 = vmatprep.subr.bf16.mxu0 %v743_v9  ;;  %710 = vmatprep.subr.bf16.mxu1 %v743_v9 }
  0x22   : > { %282 = vmatpush1.bf16.msra.mxu0 %v745_v10  ;;  %718 = vmatpush1.bf16.msra.mxu1 %v745_v10 }
  0x23   : > { %283 = vmatprep.subr.bf16.mxu0 %v746_v11  ;;  %711 = vmatprep.subr.bf16.mxu1 %v746_v11 }
  0x26   : > { %284 = vmatpush1.bf16.msra.mxu0 %v748_v12  ;;  %719 = vmatpush1.bf16.msra.mxu1 %v748_v12 }
  0x27   : > { %285 = vmatprep.subr.bf16.mxu0 %v749_v13  ;;  %712 = vmatprep.subr.bf16.mxu1 %v749_v13 }
  0x2a   : > { %286 = vmatpush1.bf16.msra.mxu0 %v751_v14  ;;  %720 = vmatpush1.bf16.msra.mxu1 %v751_v14 }
  0x2b   : > { %287 = vmatprep.subr.bf16.mxu0 %v752_v15  ;;  %713 = vmatprep.subr.bf16.mxu1 %v752_v15 }
  0x2e   : > { %288 = vmatpush1.bf16.msra.mxu0 %v754_v16  ;;  %721 = vmatpush1.bf16.msra.mxu1 %v754_v16 }
  0x31   : > { %306 = vmatmul.mubr.bf16.vlgmr.msra.gmra.mrb[0].mxu0 %v755_v17  ;;  %326 = vmatmul.mubr.bf16.vlgmr.msra.gmra.mrb[0].mxu1 %v756_v18 }
  0x32   : > { %315 = vmatprep.mubr.bf16.mxu0 %v783_v0  ;;  %335 = vmatprep.mubr.bf16.mxu1 %v783_v0 }
  0x39   : > { %316 = vmatmul.mubr.bf16.gmra.mrb[4].mxu0 %v757_v19  ;;  %336 = vmatmul.mubr.bf16.gmra.mrb[4].mxu1 %v758_v20 }
 0x104   : > { %v843_v21 = vpop.f32.mrb[0].mxu0  ;;  %v845_v22 = vpop.f32.mrb[0].mxu1 }
 0x105   : > { %v847_v23 = vpop.f32.mrb[1].mxu0  ;;  %v849_v24 = vpop.f32.mrb[1].mxu1  ;;  %v370_v25 = vmul.f32 %v843_v21, %v843_v21  ;;  %v378_v26 = vmul.f32 %v845_v22, %v845_v22 }
 0x106   : > { %v855_v27 = vpop.f32.mrb[2].mxu0  ;;  %v857_v28 = vpop.f32.mrb[2].mxu1  ;;  %v346_v29 = vadd.f32 %v847_v23, %v843_v21  ;;  %v358_v30 = vadd.f32 %v849_v24, %v845_v22  ;;  %v371_v31 = vmul.f32 %v847_v23, %v847_v23  ;;  %v379_v32 = vmul.f32 %v849_v24, %v849_v24 }
 0x107   : > { %v867_v33 = vpop.f32.mrb[3].mxu0  ;;  %v869_v34 = vpop.f32.mrb[3].mxu1  ;;  %v372_v35 = vmul.f32 %v855_v27, %v855_v27  ;;  %v380_v36 = vmul.f32 %v857_v28, %v857_v28 }
 0x108   : > { %347 = vadd.xlane.f32.xlu0 %v346_v29  ;;  %v361_v37 = vadd.f32 %v869_v34, %v857_v28  ;;  %v373_v38 = vmul.f32 %v867_v33, %v867_v33  ;;  %v349_v39 = vadd.f32 %v867_v33, %v855_v27  ;;  %v381_v40 = vmul.f32 %v869_v34, %v869_v34 }
 0x109   : > { %v386_v41 = vadd.f32 %v371_v31, %v370_v25  ;;  %v398_v42 = vadd.f32 %v379_v32, %v378_v26 }
 0x10a   : > { %362 = vadd.xlane.f32.xlu1 %v361_v37  ;;  %v389_v43 = vadd.f32 %v373_v38, %v372_v35  ;;  %v401_v44 = vadd.f32 %v381_v40, %v380_v36 }
 0x10c   : > { %359 = vadd.xlane.f32.xlu0 %v358_v30  ;;  %v883_v45 = vpop.f32.mrb[4].mxu0  ;;  %v885_v46 = vpop.f32.mrb[4].mxu1 }
 0x10d   : > { %v887_v47 = vpop.f32.mrb[5].mxu0  ;;  %v889_v48 = vpop.f32.mrb[5].mxu1  ;;  %v374_v49 = vmul.f32 %v883_v45, %v883_v45  ;;  %v382_v50 = vmul.f32 %v885_v46, %v885_v46 }
 0x10e   : > { %390 = vadd.xlane.f32.xlu1 %v389_v43  ;;  %v895_v51 = vpop.f32.mrb[6].mxu0  ;;  %v352_v52 = vadd.f32 %v887_v47, %v883_v45  ;;  %v899_v53 = vpop.f32.mrb[6].mxu1  ;;  %v364_v54 = vadd.f32 %v889_v48, %v885_v46  ;;  %v375_v55 = vmul.f32 %v887_v47, %v887_v47  ;;  %v383_v56 = vmul.f32 %v889_v48, %v889_v48 }
 0x10f   : > { %v907_v57 = vpop.f32.mrb[7].mxu0  ;;  %v909_v58 = vpop.f32.mrb[7].mxu1  ;;  %v376_v59 = vmul.f32 %v895_v51, %v895_v51  ;;  %v384_v60 = vmul.f32 %v899_v53, %v899_v53 }
 0x110   : > { %350 = vadd.xlane.f32.xlu0 %v349_v39  ;;  %v377_v61 = vmul.f32 %v907_v57, %v907_v57  ;;  %v385_v62 = vmul.f32 %v909_v58, %v909_v58  ;;  %v355_v63 = vadd.f32 %v907_v57, %v895_v51  ;;  %v367_v0 = vadd.f32 %v909_v58, %v899_v53 }
 0x111   : > { %v392_v1 = vadd.f32 %v375_v55, %v374_v49  ;;  %v404_v2 = vadd.f32 %v383_v56, %v382_v50 }
 0x112   : > { %402 = vadd.xlane.f32.xlu1 %v401_v44  ;;  %v395_v3 = vadd.f32 %v377_v61, %v376_v59  ;;  %v407_v4 = vadd.f32 %v385_v62, %v384_v60 }
 0x114   : > { %387 = vadd.xlane.f32.xlu0 %v386_v41 }
 0x116   : > { %353 = vadd.xlane.f32.xlu1 %v352_v52 }
 0x118   : > { %399 = vadd.xlane.f32.xlu0 %v398_v42 }
 0x11a   : > { %356 = vadd.xlane.f32.xlu1 %v355_v63 }
 0x11c   : > { %365 = vadd.xlane.f32.xlu0 %v364_v54 }
 0x11e   : > { %368 = vadd.xlane.f32.xlu1 %v367_v0 }
 0x120   : > { %393 = vadd.xlane.f32.xlu0 %v392_v1 }
 0x122   : > { %396 = vadd.xlane.f32.xlu1 %v395_v3 }
 0x124   : > { %405 = vadd.xlane.f32.xlu0 %v404_v2 }
 0x126   : > { %408 = vadd.xlane.f32.xlu1 %v407_v4 }
 0x195   : > { %v348_v5 = vpop.xlane.xlu0 %347 }
 0x196   : > { %v925_v11 = vmul.f32 0.00390625, %v348_v5 }
 0x197   : > { %v363_v6 = vpop.xlane.xlu1 %362 }
 0x198   : > { %v923_v9 = vmul.f32 0.00390625, %v363_v6  ;;  %v426_v25 = vmul.f32 %v925_v11, %v925_v11  ;;  %v450_v62 = vsub.f32 %v843_v21, %v925_v11  ;;  %v451_v63 = vsub.f32 %v847_v23, %v925_v11 }
 0x199   : > { %v360_v7 = vpop.xlane.xlu0 %359 }
 0x19a   : > { %v431_v16 = vmul.f32 %v923_v9, %v923_v9  ;;  %v931_v29 = vmul.f32 0.00390625, %v360_v7  ;;  %v460_v2 = vsub.f32 %v857_v28, %v923_v9  ;;  %v461_v6 = vsub.f32 %v869_v34, %v923_v9 }
 0x19b   : > { %v391_v8 = vpop.xlane.xlu1 %390 }
 0x19c   : > { %v419_v14 = vmul.f32 0.00390625, %v391_v8  ;;  %v430_v40 = vmul.f32 %v931_v29, %v931_v29  ;;  %v458_v21 = vsub.f32 %v845_v22, %v931_v29  ;;  %v459_v28 = vsub.f32 %v849_v24, %v931_v29 }
 0x19d   : > { %v351_v10 = vpop.xlane.xlu0 %350 }
 0x19e   : > { %v411_v12 = vmul.f32 0.00390625, %v351_v10 }
 0x19f   : > { %v403_v13 = vpop.xlane.xlu1 %402 }
 0x1a0   : > { %v427_v15 = vmul.f32 %v411_v12, %v411_v12  ;;  %v423_v17 = vmul.f32 0.00390625, %v403_v13  ;;  %v452_v23 = vsub.f32 %v855_v27, %v411_v12  ;;  %v453_v7 = vsub.f32 %v867_v33, %v411_v12 }
 0x1a1   : > { %v388_v18 = vpop.xlane.xlu0 %387 }
 0x1a2   : > { %v435_v19 = vsub.f32 %v419_v14, %v427_v15  ;;  %v439_v20 = vsub.f32 %v423_v17, %v431_v16  ;;  %v418_v26 = vmul.f32 0.00390625, %v388_v18 }
 0x1a3   : > { %v354_v30 = vpop.xlane.xlu1 %353 }
 0x1a4   : > { %v443_v31 = vmax.f32 %v435_v19, 0.0  ;;  %v447_v32 = vmax.f32 %v439_v20, 0.0  ;;  %v434_v35 = vsub.f32 %v418_v26, %v426_v25  ;;  %v935_v50 = vmul.f32 0.00390625, %v354_v30 }
 0x1a5   : > { %v400_v36 = vpop.xlane.xlu0 %399 }
 0x1a6   : > { %v467_v37 = vadd.f32 1e-05, %v443_v31  ;;  %v471_v38 = vadd.f32 1e-05, %v447_v32  ;;  %v442_v39 = vmax.f32 %v434_v35, 0.0  ;;  %v422_v41 = vmul.f32 0.00390625, %v400_v36 }
 0x1a7   : > { %v357_v42 = vpop.xlane.xlu1 %356  ;;  %v428_v61 = vmul.f32 %v935_v50, %v935_v50 }
 0x1a8   : > { %759 = vrsqrt.f32 %v467_v37  ;;  %v466_v43 = vadd.f32 1e-05, %v442_v39  ;;  %v438_v44 = vsub.f32 %v422_v41, %v430_v40  ;;  %v937_v55 = vmul.f32 0.00390625, %v357_v42 }
 0x1a9   : > { %761 = vrsqrt.f32 %v471_v38  ;;  %v366_v49 = vpop.xlane.xlu0 %365 }
 0x1aa   : > { %763 = vrsqrt.f32 %v466_v43  ;;  %v446_v52 = vmax.f32 %v438_v44, 0.0  ;;  %v945_v0 = vmul.f32 0.00390625, %v366_v49  ;;  %v429_v4 = vmul.f32 %v937_v55, %v937_v55 }
 0x1ab   : > { %v369_v54 = vpop.xlane.xlu1 %368 }
 0x1ac   : > { %v470_v56 = vadd.f32 1e-05, %v446_v52  ;;  %v959_v11 = vmul.f32 0.00390625, %v369_v54  ;;  %v432_v9 = vmul.f32 %v945_v0, %v945_v0 }
 0x1ad   : > { %v394_v59 = vpop.xlane.xlu0 %393 }
 0x1ae   : > { %v420_v60 = vmul.f32 0.00390625, %v394_v59  ;;  %765 = vrsqrt.f32 %v470_v56  ;;  %v433_v54 = vmul.f32 %v959_v11, %v959_v11 }
 0x1af   : > { %v397_v1 = vpop.xlane.xlu1 %396 }
 0x1b0   : > { %v436_v3 = vsub.f32 %v420_v60, %v428_v61  ;;  %v421_v5 = vmul.f32 0.00390625, %v397_v1 }
 0x1b1   : > { %v406_v8 = vpop.xlane.xlu0 %405 }
 0x1b2   : > { %v760_v10 = vpop.eup %759  ;;  %v444_v13 = vmax.f32 %v436_v3, 0.0  ;;  %v437_v14 = vsub.f32 %v421_v5, %v429_v4  ;;  %v424_v22 = vmul.f32 0.00390625, %v406_v8 }
 0x1b3   : > { %v762_v15 = vpop.eup %761  ;;  %v484_v16 = vmul.f32 %v760_v10, %v452_v23  ;;  %v485_v34 = vmul.f32 %v760_v10, %v453_v7  ;;  %v409_v37 = vpop.xlane.xlu1 %408  ;;  %v455_v23 = vsub.f32 %v887_v47, %v935_v50 }
 0x1b4   : > { %v764_v17 = vpop.eup %763  ;;  %v492_v27 = vmul.f32 %v762_v15, %v460_v2  ;;  %v493_v33 = vmul.f32 %v762_v15, %v461_v6  ;;  %v468_v12 = vadd.f32 1e-05, %v444_v13  ;;  %v445_v18 = vmax.f32 %v437_v14, 0.0 }
 0x1b5   : > { %vm500_vm0 = vcmp.ge.f32.partialorder %v484_v16, 0.0  ;;  %vm501_vm1 = vcmp.ge.f32.partialorder %v485_v34, 0.0  ;;  %v516_v24 = vmul.f32 0.01, %v484_v16  ;;  %v517_v19 = vmul.f32 0.01, %v485_v34 }
 0x1b6   : > { %vm508_vm2 = vcmp.ge.f32.partialorder %v492_v27, 0.0  ;;  %vm509_vm3 = vcmp.ge.f32.partialorder %v493_v33, 0.0  ;;  %v524_v20 = vmul.f32 0.01, %v492_v27  ;;  %v525_v25 = vmul.f32 0.01, %v493_v33 }
 0x1b7   : > { %v532_v26 = vsel %vm500_vm0, %v484_v16, %v516_v24  ;;  %v533_v29 = vsel %vm501_vm1, %v485_v34, %v517_v19  ;;  %v482_v30 = vmul.f32 %v764_v17, %v450_v62  ;;  %v483_v31 = vmul.f32 %v764_v17, %v451_v63 }
 0x1b8   : > { %v699_v32 = vpack.c.bf16 %v533_v29, %v532_v26  ;;  %v540_v35 = vsel %vm508_vm2, %v492_v27, %v524_v20  ;;  %v541_v36 = vsel %vm509_vm3, %v493_v33, %v525_v25  ;;  %767 = vrsqrt.f32 %v468_v12  ;;  %v766_v38 = vpop.eup %765 }
 0x1b9   : > { %v703_v39 = vpack.c.bf16 %v541_v36, %v540_v35  ;;  %vm498_vm4 = vcmp.ge.f32.partialorder %v482_v30, 0.0  ;;  %vm499_vm5 = vcmp.ge.f32.partialorder %v483_v31, 0.0  ;;  %v514_v40 = vmul.f32 0.01, %v482_v30 }
 0x1ba   : > { %595 = vst [vmem:[%s967_s26 + $0x8] sm:$0xff] %v699_v32  ;;  %v515_v41 = vmul.f32 0.01, %v483_v31  ;;  %v490_v42 = vmul.f32 %v766_v38, %v458_v21  ;;  %v491_v43 = vmul.f32 %v766_v38, %v459_v28  ;;  %v469_v44 = vadd.f32 1e-05, %v445_v18 }
 0x1bb   : > { %599 = vst [vmem:[%s967_s26 + $0x28] sm:$0xff] %v703_v39  ;;  %v530_v49 = vsel %vm498_vm4, %v482_v30, %v514_v40  ;;  %v440_v52 = vsub.f32 %v424_v22, %v432_v9  ;;  %v425_v56 = vmul.f32 0.00390625, %v409_v37  ;;  %v454_v21 = vsub.f32 %v883_v45, %v935_v50 }
 0x1bc   : > { %v531_v59 = vsel %vm499_vm5, %v483_v31, %v515_v41  ;;  %vm506_vm6 = vcmp.ge.f32.partialorder %v490_v42, 0.0  ;;  %vm507_vm7 = vcmp.ge.f32.partialorder %v491_v43, 0.0  ;;  %v522_v60 = vmul.f32 0.01, %v490_v42 }
 0x1bd   : > { %v698_v61 = vpack.c.bf16 %v531_v59, %v530_v49  ;;  %v523_v62 = vmul.f32 0.01, %v491_v43  ;;  %769 = vrsqrt.f32 %v469_v44  ;;  %v448_v63 = vmax.f32 %v440_v52, 0.0 }
 0x1be   : > { %v538_v1 = vsel %vm506_vm6, %v490_v42, %v522_v60  ;;  %v441_v2 = vsub.f32 %v425_v56, %v433_v54  ;;  %v456_v15 = vsub.f32 %v895_v51, %v937_v55  ;;  %v457_v45 = vsub.f32 %v907_v57, %v937_v55 }
 0x1bf   : > { %594 = vst [vmem:[%s967_s26] sm:$0xff] %v698_v61  ;;  %v539_v3 = vsel %vm507_vm7, %v491_v43, %v523_v62  ;;  %v472_v4 = vadd.f32 1e-05, %v448_v63  ;;  %v462_v17 = vsub.f32 %v885_v46, %v945_v0  ;;  %v463_v27 = vsub.f32 %v889_v48, %v945_v0 }
 0x1c0   : > { %v702_v5 = vpack.c.bf16 %v539_v3, %v538_v1  ;;  %v449_v6 = vmax.f32 %v441_v2, 0.0  ;;  %v464_v19 = vsub.f32 %v899_v53, %v959_v11  ;;  %v465_v46 = vsub.f32 %v909_v58, %v959_v11 }
 0x1c1   : > { %771 = vrsqrt.f32 %v472_v4 }
 0x1c2   : > { %v768_v7 = vpop.eup %767  ;;  %598 = vst [vmem:[%s967_s26 + $0x20] sm:$0xff] %v702_v5  ;;  %v473_v8 = vadd.f32 1e-05, %v449_v6 }
 0x1c3   : > { %v486_v10 = vmul.f32 %v768_v7, %v454_v21  ;;  %v487_v28 = vmul.f32 %v768_v7, %v455_v23 }
 0x1c4   : > { %773 = vrsqrt.f32 %v473_v8 }
 0x1c5   : > { %vm502_vm8 = vcmp.ge.f32.partialorder %v486_v10, 0.0  ;;  %vm503_vm9 = vcmp.ge.f32.partialorder %v487_v28, 0.0  ;;  %v518_v13 = vmul.f32 0.01, %v486_v10  ;;  %v519_v14 = vmul.f32 0.01, %v487_v28 }
 0x1c7   : > { %v770_v16 = vpop.eup %769  ;;  %v534_v47 = vsel %vm502_vm8, %v486_v10, %v518_v13  ;;  %v535_v50 = vsel %vm503_vm9, %v487_v28, %v519_v14 }
 0x1c8   : > { %v700_v34 = vpack.c.bf16 %v535_v50, %v534_v47  ;;  %v488_v9 = vmul.f32 %v770_v16, %v456_v15  ;;  %v489_v22 = vmul.f32 %v770_v16, %v457_v45 }
 0x1ca   : > { %596 = vst [vmem:[%s967_s26 + $0x10] sm:$0xff] %v700_v34  ;;  %vm504_vm10 = vcmp.ge.f32.partialorder %v488_v9, 0.0  ;;  %vm505_vm11 = vcmp.ge.f32.partialorder %v489_v22, 0.0  ;;  %v520_v51 = vmul.f32 0.01, %v488_v9 }
 0x1cb   : > { %v521_v33 = vmul.f32 0.01, %v489_v22  ;;  %v772_v12 = vpop.eup %771 }
 0x1cc   : > { %v536_v57 = vsel %vm504_vm10, %v488_v9, %v520_v51  ;;  %v494_v18 = vmul.f32 %v772_v12, %v462_v17  ;;  %v495_v24 = vmul.f32 %v772_v12, %v463_v27 }
 0x1cd   : > { %v537_v55 = vsel %vm505_vm11, %v489_v22, %v521_v33 }
 0x1ce   : > { %v701_v20 = vpack.c.bf16 %v537_v55, %v536_v57  ;;  %v774_v48 = vpop.eup %773  ;;  %vm510_vm12 = vcmp.ge.f32.partialorder %v494_v18, 0.0  ;;  %vm511_vm13 = vcmp.ge.f32.partialorder %v495_v24, 0.0  ;;  %v526_v0 = vmul.f32 0.01, %v494_v18 }
 0x1cf   : > { %v527_v25 = vmul.f32 0.01, %v495_v24  ;;  %v496_v26 = vmul.f32 %v774_v48, %v464_v19  ;;  %v497_v29 = vmul.f32 %v774_v48, %v465_v46 }
 0x1d0   : > { %597 = vst [vmem:[%s967_s26 + $0x18] sm:$0xff] %v701_v20  ;;  %v542_v30 = vsel %vm510_vm12, %v494_v18, %v526_v0 }
 0x1d1   : > { %v543_v31 = vsel %vm511_vm13, %v495_v24, %v527_v25  ;;  %vm512_vm14 = vcmp.ge.f32.partialorder %v496_v26, 0.0  ;;  %vm513_vm15 = vcmp.ge.f32.partialorder %v497_v29, 0.0  ;;  %v528_v53 = vmul.f32 0.01, %v496_v26 }
 0x1d2   : > { %v704_v32 = vpack.c.bf16 %v543_v31, %v542_v30  ;;  %v529_v35 = vmul.f32 0.01, %v497_v29 }
 0x1d3   : > { %v544_v58 = vsel %vm512_vm14, %v496_v26, %v528_v53 }
 0x1d4   : > { %600 = vst [vmem:[%s967_s26 + $0x30] sm:$0xff] %v704_v32  ;;  %v545_v11 = vsel %vm513_vm15, %v497_v29, %v529_v35 }
 0x1d5   : > { %v705_v36 = vpack.c.bf16 %v545_v11, %v544_v58 }
 0x1d7   : > { %601 = vst [vmem:[%s967_s26 + $0x38] sm:$0xff] %v705_v36 }
 0x1d8 PF: > { %s12_s9 = sadd.s32 1, %s781_s9  }
 0x1d9   : > { %p9_p4 = scmp.ge.s32.totalorder %s12_s9, 4  }
 0x1db   :  { %11 = sbr.rel (!%p9_p4) target bundleno = 1 (0x1), region = 58 }

// kernel: usernet_forward.3
= control target key start
LH: loop header
LB: loop body
LE: loop exit
PB: predicated region body
PF: predicated region fallthrough
CT: control target
= control target key end

     0   :  { %s9004_s0 = inlined_call_operand.vmem [shape: bf16[2,64,5376], index: 0, kind: input, shape index: {}, may-alias: {0,1}]   ;;  %s9005_s1 = inlined_call_operand.vmem [shape: bf16[2,64,5376], index: 1, kind: input, shape index: {}, may-alias: {0,1}]   ;;  %s9006_s2 = inlined_call_operand.vmem [shape: bf16[56,64], index: 2, kind: input, shape index: {}]   ;;  %s9007_s3 = inlined_call_operand.<no memory space> [shape: f32[1,1], index: 3, kind: input, shape index: {}]   ;;  %s9008_s4 = inlined_call_operand.vmem [shape: f32[2,1,2688], index: 4, kind: output, shape index: {}]  }
   0x1   :  { %9 = sst [smem:[#allocation2]] %s9007_s3 }
   0x2   :  { %s5765_s17 = smov 0   ;;  %s5767_s18 = smov 0  }
   0x3   :  { %s5769_s19 = smov 0   ;;  %s5771_s20 = smov 0  }
   0x4   :  { %s5773_s21 = smov 0  }
   0x5 LB: > { %s27_s3 = sadd.s32 1, %s5723_s20  ;;  %p43_p1 = scmp.ne.s32.totalorder %s5715_s18, %s5711_s17  ;;  %s5727_s21 = sphi %s5773_s21, %s15_s21   ;;  %s5723_s20 = sphi %s5771_s20, %s9552_s20   ;;  %s5719_s19 = sphi %s5769_s19, %s9551_s19   ;;  %s5715_s18 = sphi %s5767_s18, %s9550_s18   ;;  %s5711_s17 = sphi %s5765_s17, %s9549_s17  }
   0x6   : > { %p29_p0 = scmp.ge.s32.totalorder %s27_s3, 2  ;;  %p44_p2 = scmp.eq.s32.totalorder %s5727_s21, 0 }
   0x7   : > { %s36_s24 = sadd.s32 1, %s5715_s18  ;;  %p5149_p5 = scmp.ge.s32.totalorder %s5727_s21, 2 }
   0x8   : > { %s9554_s3 = smov (%p29_p0, %s27_s3), 0  ;;  %p5796_p3 = por %p44_p2, %p43_p1 }
   0x9   : > { %s31_s23 = ssub.s32 %s5723_s20, %s9554_s3  ;;  %177 = sbr.rel (%p5149_p5) target bundleno = 88 (0x58), region = 24 }
   0xa   : > { %p34_p4 = scmp.eq.s32.totalorder %s31_s23, 0 }
   0xc   : > { %s5804_s25 = scalar_select %p34_p4, %s5715_s18, %s36_s24  }
  0x10   : > { %180 = sbr.rel (!%p5796_p3) target bundleno = 66 (0x42), region = 28  ;;  %s182_s26 = sand.u32 (%p5796_p3), 1, %s5715_s18  }
  0x11   : > { %s5384_s27 = smul.u32 (%p5796_p3), 1344, %s5723_s20 }
  0x12   : > { %s5383_s28 = smul.u32 (%p5796_p3), 672, %s182_s26 }
  0x13   : > { %s5814_s5 = scalar_lea.vmem (%p5796_p3), %s9004_s0, %s5384_s27 }
  0x14   : > { %v204_v0 = vld [vmem:[%s5814_s5] sm:$0xff] (%p5796_p3)  ;;  %v206_v1 = vld [vmem:[%s5814_s5 + $0x8] sm:$0xff] (%p5796_p3)  ;;  %v208_v2 = vld [vmem:[%s5814_s5 + $0x10] sm:$0xff] (%p5796_p3)  ;;  %s5819_s6 = scalar_lea.vmem (%p5796_p3), [#allocation3], %s5383_s28 }
  0x15   : > { %205 = vst [vmem:[%s5819_s6] sm:$0xff] (%p5796_p3), %v204_v0  ;;  %207 = vst [vmem:[%s5819_s6 + $0x8] sm:$0xff] (%p5796_p3), %v206_v1  ;;  %v210_v3 = vld [vmem:[%s5814_s5 + $0x18] sm:$0xff] (%p5796_p3)  ;;  %v212_v4 = vld [vmem:[%s5814_s5 + $0x20] sm:$0xff] (%p5796_p3) }
  0x16   : > { %209 = vst [vmem:[%s5819_s6 + $0x10] sm:$0xff] (%p5796_p3), %v208_v2  ;;  %v214_v5 = vld [vmem:[%s5814_s5 + $0x28] sm:$0xff] (%p5796_p3)  ;;  %211 = vst [vmem:[%s5819_s6 + $0x18] sm:$0xff] (%p5796_p3), %v210_v3  ;;  %v216_v6 = vld [vmem:[%s5814_s5 + $0x30] sm:$0xff] (%p5796_p3) }
  0x17   : > { %213 = vst [vmem:[%s5819_s6 + $0x20] sm:$0xff] %v212_v4  ;;  %215 = vst [vmem:[%s5819_s6 + $0x28] sm:$0xff] %v214_v5  ;;  %v218_v7 = vld [vmem:[%s5814_s5 + $0x38] sm:$0xff]  ;;  %v220_v8 = vld [vmem:[%s5814_s5 + $0x40] sm:$0xff] }
  0x18   : > { %217 = vst [vmem:[%s5819_s6 + $0x30] sm:$0xff] %v216_v6  ;;  %219 = vst [vmem:[%s5819_s6 + $0x38] sm:$0xff] %v218_v7  ;;  %v222_v9 = vld [vmem:[%s5814_s5 + $0x48] sm:$0xff]  ;;  %v226_v11 = vld [vmem:[%s5814_s5 + $0xb0] sm:$0xff] }
  0x19   : > { %221 = vst [vmem:[%s5819_s6 + $0x40] sm:$0xff] %v220_v8  ;;  %v224_v10 = vld [vmem:[%s5814_s5 + $0xa8] sm:$0xff]  ;;  %223 = vst [vmem:[%s5819_s6 + $0x48] sm:$0xff] %v222_v9  ;;  %v228_v12 = vld [vmem:[%s5814_s5 + $0xb8] sm:$0xff] }
  0x1a   : > { %225 = vst [vmem:[%s5819_s6 + $0x54] sm:$0xff] %v224_v10  ;;  %227 = vst [vmem:[%s5819_s6 + $0x5c] sm:$0xff] %v226_v11  ;;  %v230_v13 = vld [vmem:[%s5814_s5 + $0xc0] sm:$0xff]  ;;  %v232_v14 = vld [vmem:[%s5814_s5 + $0xc8] sm:$0xff] }
  0x1b   : > { %229 = vst [vmem:[%s5819_s6 + $0x64] sm:$0xff] %v228_v12  ;;  %231 = vst [vmem:[%s5819_s6 + $0x6c] sm:$0xff] %v230_v13  ;;  %v234_v15 = vld [vmem:[%s5814_s5 + $0xd0] sm:$0xff]  ;;  %v236_v16 = vld [vmem:[%s5814_s5 + $0xd8] sm:$0xff] }
  0x1c   : > { %233 = vst [vmem:[%s5819_s6 + $0x74] sm:$0xff] %v232_v14  ;;  %v238_v17 = vld [vmem:[%s5814_s5 + $0xe0] sm:$0xff]  ;;  %235 = vst [vmem:[%s5819_s6 + $0x7c] sm:$0xff] %v234_v15  ;;  %v240_v18 = vld [vmem:[%s5814_s5 + $0xe8] sm:$0xff] }
  0x1d   : > { %237 = vst [vmem:[%s5819_s6 + $0x84] sm:$0xff] %v236_v16  ;;  %239 = vst [vmem:[%s5819_s6 + $0x8c] sm:$0xff] %v238_v17  ;;  %v242_v19 = vld [vmem:[%s5814_s5 + $0xf0] sm:$0xff]  ;;  %v246_v21 = vld [vmem:[%s5814_s5 + $0x158] sm:$0xff] }
  0x1e   : > { %v244_v20 = vld [vmem:[%s5814_s5 + $0x150] sm:$0xff]  ;;  %241 = vst [vmem:[%s5819_s6 + $0x94] sm:$0xff] %v240_v18  ;;  %243 = vst [vmem:[%s5819_s6 + $0x9c] sm:$0xff] %v242_v19  ;;  %v248_v22 = vld [vmem:[%s5814_s5 + $0x160] sm:$0xff] }
  0x1f   : > { %245 = vst [vmem:[%s5819_s6 + $0xa8] sm:$0xff] %v244_v20  ;;  %v250_v23 = vld [vmem:[%s5814_s5 + $0x168] sm:$0xff]  ;;  %247 = vst [vmem:[%s5819_s6 + $0xb0] sm:$0xff] %v246_v21  ;;  %v252_v24 = vld [vmem:[%s5814_s5 + $0x170] sm:$0xff] }
  0x20   : > { %249 = vst [vmem:[%s5819_s6 + $0xb8] sm:$0xff] %v248_v22  ;;  %251 = vst [vmem:[%s5819_s6 + $0xc0] sm:$0xff] %v250_v23  ;;  %v254_v25 = vld [vmem:[%s5814_s5 + $0x178] sm:$0xff]  ;;  %v256_v26 = vld [vmem:[%s5814_s5 + $0x180] sm:$0xff] }
  0x21   : > { %253 = vst [vmem:[%s5819_s6 + $0xc8] sm:$0xff] %v252_v24  ;;  %255 = vst [vmem:[%s5819_s6 + $0xd0] sm:$0xff] %v254_v25  ;;  %v258_v27 = vld [vmem:[%s5814_s5 + $0x188] sm:$0xff]  ;;  %v260_v28 = vld [vmem:[%s5814_s5 + $0x190] sm:$0xff] }
  0x22   : > { %257 = vst [vmem:[%s5819_s6 + $0xd8] sm:$0xff] %v256_v26  ;;  %v262_v29 = vld [vmem:[%s5814_s5 + $0x198] sm:$0xff]  ;;  %259 = vst [vmem:[%s5819_s6 + $0xe0] sm:$0xff] %v258_v27  ;;  %v266_v31 = vld [vmem:[%s5814_s5 + $0x200] sm:$0xff] }
  0x23   : > { %261 = vst [vmem:[%s5819_s6 + $0xe8] sm:$0xff] %v260_v28  ;;  %263 = vst [vmem:[%s5819_s6 + $0xf0] sm:$0xff] %v262_v29  ;;  %v264_v30 = vld [vmem:[%s5814_s5 + $0x1f8] sm:$0xff]  ;;  %v268_v32 = vld [vmem:[%s5814_s5 + $0x208] sm:$0xff] }
  0x24   : > { %265 = vst [vmem:[%s5819_s6 + $0xfc] sm:$0xff] %v264_v30  ;;  %267 = vst [vmem:[%s5819_s6 + $0x104] sm:$0xff] %v266_v31  ;;  %v270_v33 = vld [vmem:[%s5814_s5 + $0x210] sm:$0xff]  ;;  %v272_v34 = vld [vmem:[%s5814_s5 + $0x218] sm:$0xff] }
  0x25   : > { %269 = vst [vmem:[%s5819_s6 + $0x10c] sm:$0xff] %v268_v32  ;;  %v274_v35 = vld [vmem:[%s5814_s5 + $0x220] sm:$0xff]  ;;  %271 = vst [vmem:[%s5819_s6 + $0x114] sm:$0xff] %v270_v33  ;;  %v276_v36 = vld [vmem:[%s5814_s5 + $0x228] sm:$0xff] }
  0x26   : > { %273 = vst [vmem:[%s5819_s6 + $0x11c] sm:$0xff] %v272_v34  ;;  %275 = vst [vmem:[%s5819_s6 + $0x124] sm:$0xff] %v274_v35  ;;  %v278_v37 = vld [vmem:[%s5814_s5 + $0x230] sm:$0xff]  ;;  %v280_v38 = vld [vmem:[%s5814_s5 + $0x238] sm:$0xff] }
  0x27   : > { %277 = vst [vmem:[%s5819_s6 + $0x12c] sm:$0xff] %v276_v36  ;;  %279 = vst [vmem:[%s5819_s6 + $0x134] sm:$0xff] %v278_v37  ;;  %v282_v39 = vld [vmem:[%s5814_s5 + $0x240] sm:$0xff]  ;;  %v286_v41 = vld [vmem:[%s5814_s5 + $0x2a8] sm:$0xff] }
  0x28   : > { %281 = vst [vmem:[%s5819_s6 + $0x13c] sm:$0xff] %v280_v38  ;;  %v284_v40 = vld [vmem:[%s5814_s5 + $0x2a0] sm:$0xff]  ;;  %283 = vst [vmem:[%s5819_s6 + $0x144] sm:$0xff] %v282_v39  ;;  %v288_v42 = vld [vmem:[%s5814_s5 + $0x2b0] sm:$0xff] }
  0x29   : > { %285 = vst [vmem:[%s5819_s6 + $0x150] sm:$0xff] %v284_v40  ;;  %287 = vst [vmem:[%s5819_s6 + $0x158] sm:$0xff] %v286_v41  ;;  %v290_v43 = vld [vmem:[%s5814_s5 + $0x2b8] sm:$0xff]  ;;  %v292_v44 = vld [vmem:[%s5814_s5 + $0x2c0] sm:$0xff] }
  0x2a   : > { %289 = vst [vmem:[%s5819_s6 + $0x160] sm:$0xff] %v288_v42  ;;  %291 = vst [vmem:[%s5819_s6 + $0x168] sm:$0xff] %v290_v43  ;;  %v294_v45 = vld [vmem:[%s5814_s5 + $0x2c8] sm:$0xff]  ;;  %v296_v46 = vld [vmem:[%s5814_s5 + $0x2d0] sm:$0xff] }
  0x2b   : > { %293 = vst [vmem:[%s5819_s6 + $0x170] sm:$0xff] %v292_v44  ;;  %v298_v47 = vld [vmem:[%s5814_s5 + $0x2d8] sm:$0xff]  ;;  %295 = vst [vmem:[%s5819_s6 + $0x178] sm:$0xff] %v294_v45  ;;  %v300_v48 = vld [vmem:[%s5814_s5 + $0x2e0] sm:$0xff] }
  0x2c   : > { %297 = vst [vmem:[%s5819_s6 + $0x180] sm:$0xff] %v296_v46  ;;  %299 = vst [vmem:[%s5819_s6 + $0x188] sm:$0xff] %v298_v47  ;;  %v302_v49 = vld [vmem:[%s5814_s5 + $0x2e8] sm:$0xff]  ;;  %v306_v51 = vld [vmem:[%s5814_s5 + $0x350] sm:$0xff] }
  0x2d   : > { %v304_v50 = vld [vmem:[%s5814_s5 + $0x348] sm:$0xff]  ;;  %301 = vst [vmem:[%s5819_s6 + $0x190] sm:$0xff] %v300_v48  ;;  %303 = vst [vmem:[%s5819_s6 + $0x198] sm:$0xff] %v302_v49  ;;  %v308_v52 = vld [vmem:[%s5814_s5 + $0x358] sm:$0xff] }
  0x2e   : > { %305 = vst [vmem:[%s5819_s6 + $0x1a4] sm:$0xff] %v304_v50  ;;  %v310_v53 = vld [vmem:[%s5814_s5 + $0x360] sm:$0xff]  ;;  %307 = vst [vmem:[%s5819_s6 + $0x1ac] sm:$0xff] %v306_v51  ;;  %v312_v54 = vld [vmem:[%s5814_s5 + $0x368] sm:$0xff] }
  0x2f   : > { %309 = vst [vmem:[%s5819_s6 + $0x1b4] sm:$0xff] %v308_v52  ;;  %311 = vst [vmem:[%s5819_s6 + $0x1bc] sm:$0xff] %v310_v53  ;;  %v314_v55 = vld [vmem:[%s5814_s5 + $0x370] sm:$0xff]  ;;  %v316_v56 = vld [vmem:[%s5814_s5 + $0x378] sm:$0xff] }
  0x30   : > { %313 = vst [vmem:[%s5819_s6 + $0x1c4] sm:$0xff] %v312_v54  ;;  %315 = vst [vmem:[%s5819_s6 + $0x1cc] sm:$0xff] %v314_v55  ;;  %v318_v57 = vld [vmem:[%s5814_s5 + $0x380] sm:$0xff]  ;;  %v320_v58 = vld [vmem:[%s5814_s5 + $0x388] sm:$0xff] }
  0x31   : > { %317 = vst [vmem:[%s5819_s6 + $0x1d4] sm:$0xff] %v316_v56  ;;  %v322_v59 = vld [vmem:[%s5814_s5 + $0x390] sm:$0xff]  ;;  %319 = vst [vmem:[%s5819_s6 + $0x1dc] sm:$0xff] %v318_v57  ;;  %v326_v61 = vld [vmem:[%s5814_s5 + $0x3f8] sm:$0xff] }
  0x32   : > { %321 = vst [vmem:[%s5819_s6 + $0x1e4] sm:$0xff] %v320_v58  ;;  %323 = vst [vmem:[%s5819_s6 + $0x1ec] sm:$0xff] %v322_v59  ;;  %v324_v60 = vld [vmem:[%s5814_s5 + $0x3f0] sm:$0xff]  ;;  %v328_v62 = vld [vmem:[%s5814_s5 + $0x400] sm:$0xff] }
  0x33   : > { %325 = vst [vmem:[%s5819_s6 + $0x1f8] sm:$0xff] %v324_v60  ;;  %327 = vst [vmem:[%s5819_s6 + $0x200] sm:$0xff] %v326_v61  ;;  %v330_v63 = vld [vmem:[%s5814_s5 + $0x408] sm:$0xff]  ;;  %v332_v0 = vld [vmem:[%s5814_s5 + $0x410] sm:$0xff] }
  0x34   : > { %329 = vst [vmem:[%s5819_s6 + $0x208] sm:$0xff] %v328_v62  ;;  %v334_v1 = vld [vmem:[%s5814_s5 + $0x418] sm:$0xff]  ;;  %331 = vst [vmem:[%s5819_s6 + $0x210] sm:$0xff] %v330_v63  ;;  %v336_v2 = vld [vmem:[%s5814_s5 + $0x420] sm:$0xff] }
  0x35   : > { %333 = vst [vmem:[%s5819_s6 + $0x218] sm:$0xff] %v332_v0  ;;  %335 = vst [vmem:[%s5819_s6 + $0x220] sm:$0xff] %v334_v1  ;;  %v338_v3 = vld [vmem:[%s5814_s5 + $0x428] sm:$0xff]  ;;  %v340_v4 = vld [vmem:[%s5814_s5 + $0x430] sm:$0xff] }
  0x36   : > { %337 = vst [vmem:[%s5819_s6 + $0x228] sm:$0xff] %v336_v2  ;;  %339 = vst [vmem:[%s5819_s6 + $0x230] sm:$0xff] %v338_v3  ;;  %v342_v5 = vld [vmem:[%s5814_s5 + $0x438] sm:$0xff]  ;;  %v346_v7 = vld [vmem:[%s5814_s5 + $0x4a0] sm:$0xff] }
  0x37   : > { %341 = vst [vmem:[%s5819_s6 + $0x238] sm:$0xff] %v340_v4  ;;  %v344_v6 = vld [vmem:[%s5814_s5 + $0x498] sm:$0xff]  ;;  %343 = vst [vmem:[%s5819_s6 + $0x240] sm:$0xff] %v342_v5  ;;  %v348_v8 = vld [vmem:[%s5814_s5 + $0x4a8] sm:$0xff] }
  0x38   : > { %345 = vst [vmem:[%s5819_s6 + $0x24c] sm:$0xff] %v344_v6  ;;  %347 = vst [vmem:[%s5819_s6 + $0x254] sm:$0xff] %v346_v7  ;;  %v350_v9 = vld [vmem:[%s5814_s5 + $0x4b0] sm:$0xff]  ;;  %v352_v10 = vld [vmem:[%s5814_s5 + $0x4b8] sm:$0xff] }
  0x39   : > { %349 = vst [vmem:[%s5819_s6 + $0x25c] sm:$0xff] %v348_v8  ;;  %351 = vst [vmem:[%s5819_s6 + $0x264] sm:$0xff] %v350_v9  ;;  %v354_v11 = vld [vmem:[%s5814_s5 + $0x4c0] sm:$0xff]  ;;  %v356_v12 = vld [vmem:[%s5814_s5 + $0x4c8] sm:$0xff] }
  0x3a   : > { %353 = vst [vmem:[%s5819_s6 + $0x26c] sm:$0xff] %v352_v10  ;;  %v358_v13 = vld [vmem:[%s5814_s5 + $0x4d0] sm:$0xff]  ;;  %355 = vst [vmem:[%s5819_s6 + $0x274] sm:$0xff] %v354_v11  ;;  %v360_v14 = vld [vmem:[%s5814_s5 + $0x4d8] sm:$0xff] }
  0x3b   : > { %357 = vst [vmem:[%s5819_s6 + $0x27c] sm:$0xff] %v356_v12  ;;  %359 = vst [vmem:[%s5819_s6 + $0x284] sm:$0xff] %v358_v13  ;;  %v362_v15 = vld [vmem:[%s5814_s5 + $0x4e0] sm:$0xff]  ;;  %v5151_v16 = vld [vmem:[%s5814_s5 + $0x50] sm:$0xf] }
  0x3c   : > { %361 = vst [vmem:[%s5819_s6 + $0x28c] sm:$0xff] %v360_v14  ;;  %363 = vst [vmem:[%s5819_s6 + $0x294] sm:$0xff] %v362_v15  ;;  %v5153_v17 = vld [vmem:[%s5814_s5 + $0xf8] sm:$0xf]  ;;  %v5155_v18 = vld [vmem:[%s5814_s5 + $0x1a0] sm:$0xf] }
  0x3d   : > { %5152 = vst [vmem:[%s5819_s6 + $0x50] sm:$0xf] %v5151_v16  ;;  %v5157_v19 = vld [vmem:[%s5814_s5 + $0x248] sm:$0xf]  ;;  %5154 = vst [vmem:[%s5819_s6 + $0xa4] sm:$0xf] %v5153_v17 }
  0x3e   : > { %5156 = vst [vmem:[%s5819_s6 + $0xf8] sm:$0xf] %v5155_v18  ;;  %5158 = vst [vmem:[%s5819_s6 + $0x14c] sm:$0xf] %v5157_v19  ;;  %v5159_v20 = vld [vmem:[%s5814_s5 + $0x2f0] sm:$0xf] }
  0x3f   : > { %v5161_v21 = vld [vmem:[%s5814_s5 + $0x398] sm:$0xf]  ;;  %v5163_v22 = vld [vmem:[%s5814_s5 + $0x440] sm:$0xf]  ;;  %5160 = vst [vmem:[%s5819_s6 + $0x1a0] sm:$0xf] %v5159_v20 }
  0x40   : > { %5162 = vst [vmem:[%s5819_s6 + $0x1f4] sm:$0xf] %v5161_v21  ;;  %5164 = vst [vmem:[%s5819_s6 + $0x248] sm:$0xf] %v5163_v22  ;;  %v5165_v23 = vld [vmem:[%s5814_s5 + $0x4e8] sm:$0xf] }
  0x41   : > { %5166 = vst [vmem:[%s5819_s6 + $0x29c] sm:$0xf] %v5165_v23 }
  0x42 PF: > { %392 = sbr.rel (!%p5796_p3) target bundleno = 88 (0x58), region = 54  ;;  %s394_s7 = sand.u32 (%p5796_p3), 1, %s5715_s18  }
  0x43   : > { %s5167_s8 = smul.u32 (%p5796_p3), 1344, %s5723_s20 }
  0x44   : > { %s5385_s9 = smul.u32 (%p5796_p3), 224, %s394_s7 }
  0x45   : > { %s6001_s12 = scalar_lea.vmem (%p5796_p3), %s9005_s1, %s5167_s8 }
  0x46   : > { %v5168_v24 = vld [vmem:[%s6001_s12 + $0x54] sm:$0xff] (%p5796_p3)  ;;  %v5169_v25 = vld [vmem:[%s6001_s12 + $0x5c] sm:$0xff] (%p5796_p3)  ;;  %v5170_v26 = vld [vmem:[%s6001_s12 + $0x64] sm:$0xff] (%p5796_p3)  ;;  %s6006_s13 = scalar_lea.vmem (%p5796_p3), [#allocation4], %s5385_s9 }
  0x47   : > { %419 = vst [vmem:[%s6006_s13] sm:$0xff] (%p5796_p3), %v5168_v24  ;;  %421 = vst [vmem:[%s6006_s13 + $0x8] sm:$0xff] (%p5796_p3), %v5169_v25  ;;  %v5171_v27 = vld [vmem:[%s6001_s12 + $0xfc] sm:$0xff] (%p5796_p3)  ;;  %v5172_v28 = vld [vmem:[%s6001_s12 + $0x104] sm:$0xff] (%p5796_p3) }
  0x48   : > { %423 = vst [vmem:[%s6006_s13 + $0x10] sm:$0xff] (%p5796_p3), %v5170_v26  ;;  %v5173_v29 = vld [vmem:[%s6001_s12 + $0x10c] sm:$0xff] (%p5796_p3)  ;;  %425 = vst [vmem:[%s6006_s13 + $0x1c] sm:$0xff] (%p5796_p3), %v5171_v27  ;;  %v5174_v30 = vld [vmem:[%s6001_s12 + $0x1a4] sm:$0xff] (%p5796_p3) }
  0x49   : > { %427 = vst [vmem:[%s6006_s13 + $0x24] sm:$0xff] %v5172_v28  ;;  %429 = vst [vmem:[%s6006_s13 + $0x2c] sm:$0xff] %v5173_v29  ;;  %v5175_v31 = vld [vmem:[%s6001_s12 + $0x1ac] sm:$0xff]  ;;  %v5176_v32 = vld [vmem:[%s6001_s12 + $0x1b4] sm:$0xff] }
  0x4a   : > { %431 = vst [vmem:[%s6006_s13 + $0x38] sm:$0xff] %v5174_v30  ;;  %433 = vst [vmem:[%s6006_s13 + $0x40] sm:$0xff] %v5175_v31  ;;  %v5177_v33 = vld [vmem:[%s6001_s12 + $0x24c] sm:$0xff]  ;;  %v5178_v34 = vld [vmem:[%s6001_s12 + $0x254] sm:$0xff] }
  0x4b   : > { %435 = vst [vmem:[%s6006_s13 + $0x48] sm:$0xff] %v5176_v32  ;;  %v5179_v35 = vld [vmem:[%s6001_s12 + $0x25c] sm:$0xff]  ;;  %437 = vst [vmem:[%s6006_s13 + $0x54] sm:$0xff] %v5177_v33  ;;  %v5180_v36 = vld [vmem:[%s6001_s12 + $0x2f4] sm:$0xff] }
  0x4c   : > { %439 = vst [vmem:[%s6006_s13 + $0x5c] sm:$0xff] %v5178_v34  ;;  %441 = vst [vmem:[%s6006_s13 + $0x64] sm:$0xff] %v5179_v35  ;;  %v5181_v37 = vld [vmem:[%s6001_s12 + $0x2fc] sm:$0xff]  ;;  %v5182_v38 = vld [vmem:[%s6001_s12 + $0x304] sm:$0xff] }
  0x4d   : > { %443 = vst [vmem:[%s6006_s13 + $0x70] sm:$0xff] %v5180_v36  ;;  %445 = vst [vmem:[%s6006_s13 + $0x78] sm:$0xff] %v5181_v37  ;;  %v5183_v39 = vld [vmem:[%s6001_s12 + $0x39c] sm:$0xff]  ;;  %v5184_v40 = vld [vmem:[%s6001_s12 + $0x3a4] sm:$0xff] }
  0x4e   : > { %447 = vst [vmem:[%s6006_s13 + $0x80] sm:$0xff] %v5182_v38  ;;  %v5185_v41 = vld [vmem:[%s6001_s12 + $0x3ac] sm:$0xff]  ;;  %449 = vst [vmem:[%s6006_s13 + $0x8c] sm:$0xff] %v5183_v39  ;;  %v5186_v42 = vld [vmem:[%s6001_s12 + $0x444] sm:$0xff] }
  0x4f   : > { %451 = vst [vmem:[%s6006_s13 + $0x94] sm:$0xff] %v5184_v40  ;;  %453 = vst [vmem:[%s6006_s13 + $0x9c] sm:$0xff] %v5185_v41  ;;  %v5187_v43 = vld [vmem:[%s6001_s12 + $0x44c] sm:$0xff]  ;;  %v5188_v44 = vld [vmem:[%s6001_s12 + $0x454] sm:$0xff] }
  0x50   : > { %455 = vst [vmem:[%s6006_s13 + $0xa8] sm:$0xff] %v5186_v42  ;;  %457 = vst [vmem:[%s6006_s13 + $0xb0] sm:$0xff] %v5187_v43  ;;  %v5189_v45 = vld [vmem:[%s6001_s12 + $0x4ec] sm:$0xff]  ;;  %v5190_v46 = vld [vmem:[%s6001_s12 + $0x4f4] sm:$0xff] }
  0x51   : > { %459 = vst [vmem:[%s6006_s13 + $0xb8] sm:$0xff] %v5188_v44  ;;  %v5191_v47 = vld [vmem:[%s6001_s12 + $0x4fc] sm:$0xff]  ;;  %461 = vst [vmem:[%s6006_s13 + $0xc4] sm:$0xff] %v5189_v45  ;;  %v5192_v48 = vld [vmem:[%s6001_s12 + $0x6c] sm:$0xf] }
  0x52   : > { %463 = vst [vmem:[%s6006_s13 + $0xcc] sm:$0xff] %v5190_v46  ;;  %465 = vst [vmem:[%s6006_s13 + $0xd4] sm:$0xff] %v5191_v47  ;;  %v5194_v49 = vld [vmem:[%s6001_s12 + $0x114] sm:$0xf]  ;;  %v5196_v50 = vld [vmem:[%s6001_s12 + $0x1bc] sm:$0xf] }
  0x53   : > { %5193 = vst [vmem:[%s6006_s13 + $0x18] sm:$0xf] %v5192_v48  ;;  %5195 = vst [vmem:[%s6006_s13 + $0x34] sm:$0xf] %v5194_v49  ;;  %v5198_v51 = vld [vmem:[%s6001_s12 + $0x264] sm:$0xf] }
  0x54   : > { %5197 = vst [vmem:[%s6006_s13 + $0x50] sm:$0xf] %v5196_v50  ;;  %v5200_v52 = vld [vmem:[%s6001_s12 + $0x30c] sm:$0xf]  ;;  %v5202_v53 = vld [vmem:[%s6001_s12 + $0x3b4] sm:$0xf] }
  0x55   : > { %5199 = vst [vmem:[%s6006_s13 + $0x6c] sm:$0xf] %v5198_v51  ;;  %5201 = vst [vmem:[%s6006_s13 + $0x88] sm:$0xf] %v5200_v52  ;;  %v5204_v54 = vld [vmem:[%s6001_s12 + $0x45c] sm:$0xf] }
  0x56   : > { %5203 = vst [vmem:[%s6006_s13 + $0xa4] sm:$0xf] %v5202_v53  ;;  %v5206_v55 = vld [vmem:[%s6001_s12 + $0x504] sm:$0xf]  ;;  %5205 = vst [vmem:[%s6006_s13 + $0xc0] sm:$0xf] %v5204_v54 }
  0x57   : > { %5207 = vst [vmem:[%s6006_s13 + $0xdc] sm:$0xf] %v5206_v55 }
  0x58 PF: > { %p5208_p6 = scmp.ge.s32.totalorder %s5727_s21, 1  ;;  %p493_p7 = scmp.lt.s32.totalorder %s5727_s21, 3 }
  0x5a   : > { %p494_p8 = pnand %p5208_p6, %p493_p7 }
  0x5c   : > { %497 = sbr.rel (%p494_p8) target bundleno = 854 (0x356), region = 80 }
  0x63   : > { %s500_s14 = sand.u32 1, %s5711_s17   ;;  %v5729_v56 = vmov 0   ;;  %v6099_v11 = vld [vmem:[%s9006_s2] sm:$0xff]   ;;  %vm1266_vm0 = vcmask 523264   ;;  %v6117_v19 = vld [vmem:[%s9006_s2 + $0x8] sm:$0xff]   ;;  %v6136_v28 = vld [vmem:[%s9006_s2 + $0x10] sm:$0xff]  }
  0x64   : > { %s5386_s15 = smul.u32 672, %s500_s14  ;;  %1311 = vmatprep.mubr.bf16.mxu0 %v5729_v56  ;;  %1371 = vmatprep.mubr.bf16.mxu1 %v5729_v56  ;;  %v6148_v30 = vld [vmem:[%s9006_s2 + $0x18] ss:$0 sps:$4 sm:$0xff]   ;;  %s5730_s6 = smov 126   ;;  %vm3020_vm1 = vcmask 1039360   ;;  %vm3327_vm2 = vcmask 1031168  }
  0x65   : > { %s5387_s5 = smul.u32 224, %s500_s14  ;;  %s5731_s7 = smov 127   ;;  %vm3612_vm3 = vcmask 1022976   ;;  %vm3875_vm4 = vcmask 1014784   ;;  %vm4116_vm5 = vcmask 1006592   ;;  %vm4356_vm6 = vcmask 998400  }
  0x66   : > { %s6076_s16 = scalar_lea.vmem [#allocation3], %s5386_s15  ;;  %s5732_s8 = smov 125  }
  0x67   : > { %v5437_v57 = vld [vmem:[%s6076_s16 + $0x4] ss:$84 sps:$4 sm:$0xff]   ;;  %v5439_v58 = vld [vmem:[%s6076_s16 + $0xc] ss:$84 sps:$4 sm:$0xff]   ;;  %v5442_v60 = vld [vmem:[%s6076_s16 + $0x8] ss:$84 sps:$4 sm:$0xff]  }
  0x68   : > { %1279 = vmatprep.subr.bf16.mxu0 %v5437_v57  ;;  %v5441_v59 = vld [vmem:[%s6076_s16] ss:$84 sps:$4 sm:$0xff]   ;;  %1339 = vmatprep.subr.bf16.mxu1 %v5439_v58  ;;  %v5447_v63 = vld [vmem:[%s6076_s16 + $0xa8] ss:$84 sps:$4 sm:$0xff]   ;;  %v5448_v0 = vld [vmem:[%s6076_s16 + $0xb0] ss:$84 sps:$4 sm:$0xff]  }
  0x69   : > { %v5443_v61 = vld [vmem:[%s6076_s16 + $0xac] ss:$84 sps:$4 sm:$0xff]   ;;  %1280 = vmatpush1.bf16.msra.mxu0 %v5441_v59  ;;  %1340 = vmatpush1.bf16.msra.mxu1 %v5442_v60  ;;  %v5445_v62 = vld [vmem:[%s6076_s16 + $0xb4] ss:$84 sps:$4 sm:$0xff]   ;;  %v5451_v2 = vld [vmem:[%s6076_s16 + $0x15c] ss:$84 sps:$4 sm:$0xff]  }
  0x6a   : > { %1281 = vmatprep.subr.bf16.mxu0 %v5443_v61  ;;  %1341 = vmatprep.subr.bf16.mxu1 %v5445_v62  ;;  %v5449_v1 = vld [vmem:[%s6076_s16 + $0x154] ss:$84 sps:$4 sm:$0xff]   ;;  %v5453_v3 = vld [vmem:[%s6076_s16 + $0x150] ss:$84 sps:$4 sm:$0xff]   ;;  %v5454_v4 = vld [vmem:[%s6076_s16 + $0x158] ss:$84 sps:$4 sm:$0xff]  }
  0x6b   : > { %v5455_v5 = vld [vmem:[%s6076_s16 + $0x1fc] ss:$84 sps:$4 sm:$0xff]   ;;  %v5457_v6 = vld [vmem:[%s6076_s16 + $0x204] ss:$84 sps:$4 sm:$0xff]   ;;  %v5460_v8 = vld [vmem:[%s6076_s16 + $0x200] ss:$84 sps:$4 sm:$0xff]  }
  0x6c   : > { %v5459_v7 = vld [vmem:[%s6076_s16 + $0x1f8] ss:$84 sps:$4 sm:$0xff]   ;;  %v5464_v9 = vld [vmem:[%s6076_s16 + $0x14] ss:$84 sps:$4 sm:$0xff]   ;;  %v5471_v10 = vld [vmem:[%s6076_s16 + $0x1c] ss:$84 sps:$4 sm:$0xff]  }
  0x6d   : > { %1282 = vmatpush1.bf16.msra.mxu0 %v5447_v63  ;;  %1342 = vmatpush1.bf16.msra.mxu1 %v5448_v0  ;;  %v5462_v12 = vld [vmem:[%s6076_s16 + $0x10] ss:$84 sps:$4 sm:$0xff]   ;;  %v5469_v14 = vld [vmem:[%s6076_s16 + $0x18] ss:$84 sps:$4 sm:$0xff]   ;;  %v5476_v18 = vld [vmem:[%s6076_s16 + $0xc0] ss:$84 sps:$4 sm:$0xff]  }
  0x6e   : > { %1283 = vmatprep.subr.bf16.mxu0 %v5449_v1  ;;  %1343 = vmatprep.subr.bf16.mxu1 %v5451_v2  ;;  %v5468_v13 = vld [vmem:[%s6076_s16 + $0xbc] ss:$84 sps:$4 sm:$0xff]   ;;  %v5478_v15 = vld [vmem:[%s6076_s16 + $0xc4] ss:$84 sps:$4 sm:$0xff]   ;;  %v5473_v20 = vld [vmem:[%s6076_s16 + $0x160] ss:$84 sps:$4 sm:$0xff]  }
  0x6f   : > { %v5466_v16 = vld [vmem:[%s6076_s16 + $0xb8] ss:$84 sps:$4 sm:$0xff]   ;;  %v5483_v23 = vld [vmem:[%s6076_s16 + $0x168] ss:$84 sps:$4 sm:$0xff]   ;;  %v5486_v26 = vld [vmem:[%s6076_s16 + $0x210] ss:$84 sps:$4 sm:$0xff]  }
  0x70   : > { %v5475_v17 = vld [vmem:[%s6076_s16 + $0x164] ss:$84 sps:$4 sm:$0xff]   ;;  %v5485_v21 = vld [vmem:[%s6076_s16 + $0x16c] ss:$84 sps:$4 sm:$0xff]   ;;  %v5488_v24 = vld [vmem:[%s6076_s16 + $0x214] ss:$84 sps:$4 sm:$0xff]  }
  0x71   : > { %1284 = vmatpush1.bf16.msra.mxu0 %v5453_v3  ;;  %1344 = vmatpush1.bf16.msra.mxu1 %v5454_v4  ;;  %v5482_v22 = vld [vmem:[%s6076_s16 + $0x20c] ss:$84 sps:$4 sm:$0xff]   ;;  %v5480_v25 = vld [vmem:[%s6076_s16 + $0x208] ss:$84 sps:$4 sm:$0xff]   ;;  %v5491_v27 = vld [vmem:[%s6076_s16 + $0x24] ss:$84 sps:$4 sm:$0xff]  }
  0x72   : > { %1285 = vmatprep.subr.bf16.mxu0 %v5455_v5  ;;  %1345 = vmatprep.subr.bf16.mxu1 %v5457_v6  ;;  %v5497_v29 = vld [vmem:[%s6076_s16 + $0x2c] ss:$84 sps:$4 sm:$0xff]   ;;  %v5495_v33 = vld [vmem:[%s6076_s16 + $0x28] ss:$84 sps:$4 sm:$0xff]   ;;  %s6170_s17 = scalar_lea.vmem [#allocation4], %s5387_s5  ;;  %s5733_s9 = smov 124  }
  0x73   : > { %v5489_v31 = vld [vmem:[%s6076_s16 + $0x20] ss:$84 sps:$4 sm:$0xff]   ;;  %v5492_v35 = vld [vmem:[%s6076_s16 + $0xc8] ss:$84 sps:$4 sm:$0xff]   ;;  %v5501_v37 = vld [vmem:[%s6076_s16 + $0xd0] ss:$84 sps:$4 sm:$0xff]  }
  0x74   : > { %v5494_v32 = vld [vmem:[%s6076_s16 + $0xcc] ss:$84 sps:$4 sm:$0xff]   ;;  %v5503_v34 = vld [vmem:[%s6076_s16 + $0xd4] ss:$84 sps:$4 sm:$0xff]   ;;  %v5498_v38 = vld [vmem:[%s6076_s16 + $0x170] ss:$84 sps:$4 sm:$0xff]  }
  0x75   : > { %1286 = vmatpush1.bf16.msra.mxu0 %v5459_v7  ;;  %1346 = vmatpush1.bf16.msra.mxu1 %v5460_v8  ;;  %v5500_v36 = vld [vmem:[%s6076_s16 + $0x174] ss:$84 sps:$4 sm:$0xff]   ;;  %v5506_v39 = vld [vmem:[%s6076_s16 + $0x21c] ss:$84 sps:$4 sm:$0xff]   ;;  %v5507_v41 = vld [vmem:[%s6076_s16 + $0x178] ss:$84 sps:$4 sm:$0xff]  }
  0x76   : > { %1403 = vmatprep.subr.bf16.mxu0 %v5464_v9  ;;  %1471 = vmatprep.subr.bf16.mxu1 %v5471_v10  ;;  %v5509_v40 = vld [vmem:[%s6076_s16 + $0x17c] ss:$84 sps:$4 sm:$0xff]   ;;  %v5512_v42 = vld [vmem:[%s6076_s16 + $0x224] ss:$84 sps:$4 sm:$0xff]   ;;  %v5510_v44 = vld [vmem:[%s6076_s16 + $0x220] ss:$84 sps:$4 sm:$0xff]  }
  0x77   : > { %v5504_v43 = vld [vmem:[%s6076_s16 + $0x218] ss:$84 sps:$4 sm:$0xff]   ;;  %v5515_v45 = vld [vmem:[%s6076_s16 + $0x34] ss:$84 sps:$4 sm:$0xff]   ;;  %v5518_v46 = vld [vmem:[%s6076_s16 + $0x3c] ss:$84 sps:$4 sm:$0xff]  }
  0x78   : > { %5325 = vmatmul.mubr.msk.bf16.vlgmr.msra.gmra.mrb[0].mxu0 %vm1266_vm0, %v6099_v11  ;;  %5329 = vmatmul.mubr.msk.bf16.vlgmr.msra.gmra.mrb[0].mxu1 %vm1266_vm0, %v6099_v11  ;;  %v5513_v47 = vld [vmem:[%s6076_s16 + $0x30] ss:$84 sps:$4 sm:$0xff]   ;;  %v5516_v48 = vld [vmem:[%s6076_s16 + $0x38] ss:$84 sps:$4 sm:$0xff]   ;;  %v5522_v52 = vld [vmem:[%s6076_s16 + $0xe0] ss:$84 sps:$4 sm:$0xff]  }
  0x79   : > { %1404 = vmatpush1.bf16.msra.mxu0 %v5462_v12  ;;  %1320 = vmatprep.mubr.bf16.mxu0 %v5729_v56  ;;  %v5521_v49 = vld [vmem:[%s6076_s16 + $0xdc] ss:$84 sps:$4 sm:$0xff]   ;;  %v5524_v50 = vld [vmem:[%s6076_s16 + $0xe4] ss:$84 sps:$4 sm:$0xff]   ;;  %v5530_v54 = vld [vmem:[%s6076_s16 + $0x18c] ss:$84 sps:$4 sm:$0xff]  }
  0x7a   : > { %1381 = vmatprep.mubr.bf16.mxu1 %v5729_v56  ;;  %1405 = vmatprep.subr.bf16.mxu0 %v5468_v13  ;;  %v5519_v51 = vld [vmem:[%s6076_s16 + $0xd8] ss:$84 sps:$4 sm:$0xff]   ;;  %v5525_v55 = vld [vmem:[%s6076_s16 + $0x180] ss:$84 sps:$4 sm:$0xff]   ;;  %v5528_v57 = vld [vmem:[%s6076_s16 + $0x188] ss:$84 sps:$4 sm:$0xff]  }
  0x7b   : > { %1472 = vmatpush1.bf16.msra.mxu1 %v5469_v14  ;;  %v5527_v53 = vld [vmem:[%s6076_s16 + $0x184] ss:$84 sps:$4 sm:$0xff]   ;;  %v5533_v58 = vld [vmem:[%s6076_s16 + $0x22c] ss:$84 sps:$4 sm:$0xff]   ;;  %v5536_v59 = vld [vmem:[%s6076_s16 + $0x234] ss:$84 sps:$4 sm:$0xff]  }
  0x7c   : > { %1473 = vmatprep.subr.bf16.mxu1 %v5478_v15  ;;  %v5531_v60 = vld [vmem:[%s6076_s16 + $0x228] ss:$84 sps:$4 sm:$0xff]   ;;  %v5534_v61 = vld [vmem:[%s6076_s16 + $0x230] ss:$84 sps:$4 sm:$0xff]   ;;  %v5542_v63 = vld [vmem:[%s6076_s16 + $0x4c] ss:$84 sps:$4 sm:$0xff]  }
  0x7d   : > { %1406 = vmatpush1.bf16.msra.mxu0 %v5466_v16  ;;  %v5539_v62 = vld [vmem:[%s6076_s16 + $0x44] ss:$84 sps:$4 sm:$0xff]   ;;  %v5537_v0 = vld [vmem:[%s6076_s16 + $0x40] ss:$84 sps:$4 sm:$0xff]   ;;  %v5540_v1 = vld [vmem:[%s6076_s16 + $0x48] ss:$84 sps:$4 sm:$0xff]  }
  0x7e   : > { %1407 = vmatprep.subr.bf16.mxu0 %v5475_v17  ;;  %v5545_v2 = vld [vmem:[%s6076_s16 + $0xec] ss:$84 sps:$4 sm:$0xff]   ;;  %v5548_v3 = vld [vmem:[%s6076_s16 + $0xf4] ss:$84 sps:$4 sm:$0xff]   ;;  %v5546_v5 = vld [vmem:[%s6076_s16 + $0xf0] ss:$84 sps:$4 sm:$0xff]  }
  0x7f   : > { %1474 = vmatpush1.bf16.msra.mxu1 %v5476_v18  ;;  %v5543_v4 = vld [vmem:[%s6076_s16 + $0xe8] ss:$84 sps:$4 sm:$0xff]   ;;  %v5549_v8 = vld [vmem:[%s6076_s16 + $0x190] ss:$84 sps:$4 sm:$0xff]   ;;  %v5552_v9 = vld [vmem:[%s6076_s16 + $0x198] ss:$84 sps:$4 sm:$0xff]  }
  0x80   : > { %5326 = vmatmul.mubr.msk.bf16.gmra.mrb[4].mxu0 %vm1266_vm0, %v6117_v19  ;;  %5330 = vmatmul.mubr.msk.bf16.gmra.mrb[4].mxu1 %vm1266_vm0, %v6117_v19  ;;  %v5551_v6 = vld [vmem:[%s6076_s16 + $0x194] ss:$84 sps:$4 sm:$0xff]   ;;  %v5554_v7 = vld [vmem:[%s6076_s16 + $0x19c] ss:$84 sps:$4 sm:$0xff]   ;;  %v5560_v12 = vld [vmem:[%s6076_s16 + $0x244] ss:$84 sps:$4 sm:$0xff]  }
  0x81   : > { %1326 = vmatprep.mubr.bf16.mxu0 %v5729_v56  ;;  %1390 = vmatprep.mubr.bf16.mxu1 %v5729_v56  ;;  %v5557_v10 = vld [vmem:[%s6076_s16 + $0x23c] ss:$84 sps:$4 sm:$0xff]   ;;  %v5555_v13 = vld [vmem:[%s6076_s16 + $0x238] ss:$84 sps:$4 sm:$0xff]   ;;  %v5558_v14 = vld [vmem:[%s6076_s16 + $0x240] ss:$84 sps:$4 sm:$0xff]  }
  0x82   : > { %1408 = vmatpush1.bf16.msra.mxu0 %v5473_v20  ;;  %1475 = vmatprep.subr.bf16.mxu1 %v5485_v21  ;;  %v5561_v15 = vld [vmem:[%s6170_s17] ss:$28 sps:$4 sm:$0xff]   ;;  %v5564_v16 = vld [vmem:[%s6170_s17 + $0x8] ss:$28 sps:$4 sm:$0xff]   ;;  %v5568_v20 = vld [vmem:[%s6170_s17 + $0x38] ss:$28 sps:$4 sm:$0xff]  }
  0x83   : > { %1409 = vmatprep.subr.bf16.mxu0 %v5482_v22  ;;  %1476 = vmatpush1.bf16.msra.mxu1 %v5483_v23  ;;  %v5563_v17 = vld [vmem:[%s6170_s17 + $0x4] ss:$28 sps:$4 sm:$0xff]   ;;  %v5570_v22 = vld [vmem:[%s6170_s17 + $0x3c] ss:$28 sps:$4 sm:$0xff]   ;;  %s5734_s10 = smov 123   ;;  %s5735_s11 = smov 122  }
  0x84   : > { %1477 = vmatprep.subr.bf16.mxu1 %v5488_v24  ;;  %v5567_v18 = vld [vmem:[%s6076_s16 + $0x50] ss:$84 sps:$4 sm:$0xff]   ;;  %v5571_v21 = vld [vmem:[%s6170_s17 + $0x40] ss:$28 sps:$4 sm:$0xff]   ;;  %v5574_v23 = vld [vmem:[%s6076_s16 + $0xf8] ss:$84 sps:$4 sm:$0xff]  }
  0x85   : > { %v5575_v24 = vld [vmem:[%s6170_s17 + $0x70] ss:$28 sps:$4 sm:$0xff]   ;;  %s7408_s12 = sld [smem:[#allocation2]]  ;;  %p544_p9 = scmp.lt.s32.totalorder %s5719_s19, 1 }
  0x86   : > { %1410 = vmatpush1.bf16.msra.mxu0 %v5480_v25  ;;  %v5578_v25 = vld [vmem:[%s6170_s17 + $0x78] ss:$28 sps:$4 sm:$0xff]  }
  0x87   : > { %1478 = vmatpush1.bf16.msra.mxu1 %v5486_v26  ;;  %1542 = vmatprep.subr.bf16.mxu0 %v5491_v27  ;;  %v5577_v26 = vld [vmem:[%s6170_s17 + $0x74] ss:$28 sps:$4 sm:$0xff]   ;;  %s9556_s19 = smov (!%p544_p9, %s5719_s19), 1 }
  0x88   : > { %5327 = vmatmul.mubr.msk.bf16.gmra.mrb[8].mxu0 %vm1266_vm0, %v6136_v28  ;;  %5331 = vmatmul.mubr.msk.bf16.gmra.mrb[8].mxu1 %vm1266_vm0, %v6136_v28  ;;  %v5581_v27 = vld [vmem:[%s6076_s16 + $0x1a0] ss:$84 sps:$4 sm:$0xff]   ;;  %s5388_s13 = smul.u32 21, %s9556_s19 }
  0x89   : > { %1332 = vmatprep.mubr.bf16.mxu0 %v5729_v56  ;;  %1396 = vmatprep.mubr.bf16.mxu1 %v5729_v56 }
  0x8a   : > { %1613 = vmatprep.subr.bf16.mxu1 %v5497_v29  ;;  %v5582_v29 = vld [vmem:[%s6170_s17 + $0xa8] ss:$28 sps:$4 sm:$0xff]   ;;  %s8546_s15 = scalar_lea.vmem %s9008_s4, %s5388_s13 }
  0x90   : > { %5328 = vmatmul.mubr.msk.bf16.gmra.mrb[12].mxu0 %vm1266_vm0, %v6148_v30  ;;  %5332 = vmatmul.mubr.msk.bf16.gmra.mrb[12].mxu1 %vm1266_vm0, %v6148_v30 }
  0x91   : > { %1435 = vmatprep.mubr.bf16.mxu0 %v5729_v56  ;;  %1503 = vmatprep.mubr.bf16.mxu1 %v5729_v56 }
  0x98   : > { %5333 = vmatmul.mubr.msk.bf16.vlgmr.msra.gmra.mrb[16].mxu0 %vm1266_vm0, %v6099_v11  ;;  %5337 = vmatmul.mubr.msk.bf16.vlgmr.msra.gmra.mrb[16].mxu1 %vm1266_vm0, %v6099_v11 }
  0x99   : > { %1543 = vmatpush1.bf16.msra.mxu0 %v5489_v31  ;;  %1445 = vmatprep.mubr.bf16.mxu0 %v5729_v56  ;;  %v5585_v31 = vld [vmem:[%s6170_s17 + $0xb0] ss:$28 sps:$4 sm:$0xff]  }
  0x9a   : > { %1513 = vmatprep.mubr.bf16.mxu1 %v5729_v56  ;;  %1544 = vmatprep.subr.bf16.mxu0 %v5494_v32  ;;  %v5584_v32 = vld [vmem:[%s6170_s17 + $0xac] ss:$28 sps:$4 sm:$0xff]  }
  0x9b   : > { %1614 = vmatpush1.bf16.msra.mxu1 %v5495_v33  ;;  %v5588_v33 = vld [vmem:[%s6076_s16 + $0x248] ss:$84 sps:$4 sm:$0xff]  }
  0x9c   : > { %1615 = vmatprep.subr.bf16.mxu1 %v5503_v34  ;;  %v5589_v34 = vld [vmem:[%s6170_s17 + $0x10] ss:$28 sps:$4 sm:$0xff]  }
  0x9d   : > { %1545 = vmatpush1.bf16.msra.mxu0 %v5492_v35  ;;  %v5592_v35 = vld [vmem:[%s6170_s17 + $0x18] ss:$28 sps:$4 sm:$0xff]  }
  0x9e   : > { %1546 = vmatprep.subr.bf16.mxu0 %v5500_v36  ;;  %v5566_v36 = vld [vmem:[%s6170_s17 + $0xc] ss:$28 sps:$4 sm:$0xff]  }
  0x9f   : > { %1616 = vmatpush1.bf16.msra.mxu1 %v5501_v37  ;;  %v5591_v37 = vld [vmem:[%s6170_s17 + $0x14] ss:$28 sps:$4 sm:$0xff]  }
  0xa0   : > { %5334 = vmatmul.mubr.msk.bf16.gmra.mrb[20].mxu0 %vm1266_vm0, %v6117_v19  ;;  %5338 = vmatmul.mubr.msk.bf16.gmra.mrb[20].mxu1 %vm1266_vm0, %v6117_v19 }
  0xa1   : > { %1455 = vmatprep.mubr.bf16.mxu0 %v5729_v56  ;;  %1523 = vmatprep.mubr.bf16.mxu1 %v5729_v56 }
  0xa2   : > { %1547 = vmatpush1.bf16.msra.mxu0 %v5498_v38  ;;  %1617 = vmatprep.subr.bf16.mxu1 %v5509_v40  ;;  %v5593_v38 = vld [vmem:[%s6170_s17 + $0x48] ss:$28 sps:$4 sm:$0xff]  }
  0xa3   : > { %1548 = vmatprep.subr.bf16.mxu0 %v5506_v39  ;;  %1618 = vmatpush1.bf16.msra.mxu1 %v5507_v41  ;;  %v5596_v39 = vld [vmem:[%s6170_s17 + $0x50] ss:$28 sps:$4 sm:$0xff]   ;;  %v5573_v40 = vld [vmem:[%s6170_s17 + $0x44] ss:$28 sps:$4 sm:$0xff]  }
  0xa4   : > { %1619 = vmatprep.subr.bf16.mxu1 %v5512_v42  ;;  %v5595_v41 = vld [vmem:[%s6170_s17 + $0x4c] ss:$28 sps:$4 sm:$0xff]   ;;  %v5597_v42 = vld [vmem:[%s6170_s17 + $0x80] ss:$28 sps:$4 sm:$0xff]  }
  0xa6   : > { %1549 = vmatpush1.bf16.msra.mxu0 %v5504_v43  ;;  %v5600_v43 = vld [vmem:[%s6170_s17 + $0x88] ss:$28 sps:$4 sm:$0xff]  }
  0xa7   : > { %1620 = vmatpush1.bf16.msra.mxu1 %v5510_v44  ;;  %1684 = vmatprep.subr.bf16.mxu0 %v5515_v45  ;;  %v5580_v44 = vld [vmem:[%s6170_s17 + $0x7c] ss:$28 sps:$4 sm:$0xff]   ;;  %v5599_v45 = vld [vmem:[%s6170_s17 + $0x84] ss:$28 sps:$4 sm:$0xff]  }
  0xa8   : > { %5335 = vmatmul.mubr.msk.bf16.gmra.mrb[24].mxu0 %vm1266_vm0, %v6136_v28  ;;  %5339 = vmatmul.mubr.msk.bf16.gmra.mrb[24].mxu1 %vm1266_vm0, %v6136_v28 }
  0xa9   : > { %1464 = vmatprep.mubr.bf16.mxu0 %v5729_v56  ;;  %1533 = vmatprep.mubr.bf16.mxu1 %v5729_v56 }
  0xaa   : > { %1755 = vmatprep.subr.bf16.mxu1 %v5518_v46  ;;  %v5601_v46 = vld [vmem:[%s6170_s17 + $0xb8] ss:$28 sps:$4 sm:$0xff]  }
  0xb0   : > { %5336 = vmatmul.mubr.msk.bf16.gmra.mrb[28].mxu0 %vm1266_vm0, %v6148_v30  ;;  %5340 = vmatmul.mubr.msk.bf16.gmra.mrb[28].mxu1 %vm1266_vm0, %v6148_v30 }
  0xb1   : > { %1574 = vmatprep.mubr.bf16.mxu0 %v5729_v56  ;;  %1645 = vmatprep.mubr.bf16.mxu1 %v5729_v56 }
  0xb8   : > { %5341 = vmatmul.mubr.msk.bf16.vlgmr.msra.gmra.mrb[32].mxu0 %vm1266_vm0, %v6099_v11  ;;  %5345 = vmatmul.mubr.msk.bf16.vlgmr.msra.gmra.mrb[32].mxu1 %vm1266_vm0, %v6099_v11 }
  0xb9   : > { %1584 = vmatprep.mubr.bf16.mxu0 %v5729_v56  ;;  %1655 = vmatprep.mubr.bf16.mxu1 %v5729_v56 }
  0xba   : > { %1685 = vmatpush1.bf16.msra.mxu0 %v5513_v47  ;;  %1756 = vmatpush1.bf16.msra.mxu1 %v5516_v48  ;;  %v5604_v47 = vld [vmem:[%s6170_s17 + $0xc0] ss:$28 sps:$4 sm:$0xff]   ;;  %v5587_v48 = vld [vmem:[%s6170_s17 + $0xb4] ss:$28 sps:$4 sm:$0xff]  }
  0xbb   : > { %1686 = vmatprep.subr.bf16.mxu0 %v5521_v49  ;;  %1757 = vmatprep.subr.bf16.mxu1 %v5524_v50  ;;  %v5603_v49 = vld [vmem:[%s6170_s17 + $0xbc] ss:$28 sps:$4 sm:$0xff]  }
  0xbe   : > { %1687 = vmatpush1.bf16.msra.mxu0 %v5519_v51  ;;  %1758 = vmatpush1.bf16.msra.mxu1 %v5522_v52 }
  0xbf   : > { %1688 = vmatprep.subr.bf16.mxu0 %v5527_v53  ;;  %1759 = vmatprep.subr.bf16.mxu1 %v5530_v54 }
  0xc0   : > { %5342 = vmatmul.mubr.msk.bf16.gmra.mrb[36].mxu0 %vm1266_vm0, %v6117_v19  ;;  %5346 = vmatmul.mubr.msk.bf16.gmra.mrb[36].mxu1 %vm1266_vm0, %v6117_v19 }
  0xc1   : > { %1594 = vmatprep.mubr.bf16.mxu0 %v5729_v56  ;;  %1665 = vmatprep.mubr.bf16.mxu1 %v5729_v56 }
  0xc2   : > { %1689 = vmatpush1.bf16.msra.mxu0 %v5525_v55  ;;  %1760 = vmatpush1.bf16.msra.mxu1 %v5528_v57 }
  0xc3   : > { %1690 = vmatprep.subr.bf16.mxu0 %v5533_v58  ;;  %1761 = vmatprep.subr.bf16.mxu1 %v5536_v59 }
  0xc6   : > { %1691 = vmatpush1.bf16.msra.mxu0 %v5531_v60  ;;  %1762 = vmatpush1.bf16.msra.mxu1 %v5534_v61 }
  0xc7   : > { %1826 = vmatprep.subr.bf16.mxu0 %v5539_v62  ;;  %1897 = vmatprep.subr.bf16.mxu1 %v5542_v63 }
  0xc8   : > { %5343 = vmatmul.mubr.msk.bf16.gmra.mrb[40].mxu0 %vm1266_vm0, %v6136_v28  ;;  %5347 = vmatmul.mubr.msk.bf16.gmra.mrb[40].mxu1 %vm1266_vm0, %v6136_v28 }
  0xc9   : > { %1604 = vmatprep.mubr.bf16.mxu0 %v5729_v56  ;;  %1675 = vmatprep.mubr.bf16.mxu1 %v5729_v56 }
  0xd0   : > { %5344 = vmatmul.mubr.msk.bf16.gmra.mrb[44].mxu0 %vm1266_vm0, %v6148_v30  ;;  %5348 = vmatmul.mubr.msk.bf16.gmra.mrb[44].mxu1 %vm1266_vm0, %v6148_v30 }
  0xd1   : > { %1716 = vmatprep.mubr.bf16.mxu0 %v5729_v56  ;;  %1787 = vmatprep.mubr.bf16.mxu1 %v5729_v56 }
  0xd8   : > { %5349 = vmatmul.mubr.msk.bf16.vlgmr.msra.gmra.mrb[48].mxu0 %vm1266_vm0, %v6099_v11  ;;  %5353 = vmatmul.mubr.msk.bf16.vlgmr.msra.gmra.mrb[48].mxu1 %vm1266_vm0, %v6099_v11 }
  0xd9   : > { %1726 = vmatprep.mubr.bf16.mxu0 %v5729_v56  ;;  %1797 = vmatprep.mubr.bf16.mxu1 %v5729_v56 }
  0xda   : > { %1827 = vmatpush1.bf16.msra.mxu0 %v5537_v0  ;;  %1898 = vmatpush1.bf16.msra.mxu1 %v5540_v1 }
  0xdb   : > { %1828 = vmatprep.subr.bf16.mxu0 %v5545_v2  ;;  %1899 = vmatprep.subr.bf16.mxu1 %v5548_v3 }
  0xde   : > { %1829 = vmatpush1.bf16.msra.mxu0 %v5543_v4  ;;  %1900 = vmatpush1.bf16.msra.mxu1 %v5546_v5 }
  0xdf   : > { %1830 = vmatprep.subr.bf16.mxu0 %v5551_v6  ;;  %1901 = vmatprep.subr.bf16.mxu1 %v5554_v7 }
  0xe0   : > { %5350 = vmatmul.mubr.msk.bf16.gmra.mrb[52].mxu0 %vm1266_vm0, %v6117_v19  ;;  %5354 = vmatmul.mubr.msk.bf16.gmra.mrb[52].mxu1 %vm1266_vm0, %v6117_v19 }
  0xe1   : > { %1736 = vmatprep.mubr.bf16.mxu0 %v5729_v56  ;;  %1807 = vmatprep.mubr.bf16.mxu1 %v5729_v56 }
  0xe2   : > { %1831 = vmatpush1.bf16.msra.mxu0 %v5549_v8  ;;  %1902 = vmatpush1.bf16.msra.mxu1 %v5552_v9 }
  0xe3   : > { %1832 = vmatprep.subr.bf16.mxu0 %v5557_v10  ;;  %1903 = vmatprep.subr.bf16.mxu1 %v5560_v12 }
  0xe6   : > { %1833 = vmatpush1.bf16.msra.mxu0 %v5555_v13  ;;  %1904 = vmatpush1.bf16.msra.mxu1 %v5558_v14 }
  0xe7   : > { %1968 = vmatprep.subr.bf16.mxu0 %v5561_v15  ;;  %2039 = vmatprep.subr.bf16.mxu1 %v5564_v16 }
  0xe8   : > { %5351 = vmatmul.mubr.msk.bf16.gmra.mrb[56].mxu0 %vm1266_vm0, %v6136_v28  ;;  %5355 = vmatmul.mubr.msk.bf16.gmra.mrb[56].mxu1 %vm1266_vm0, %v6136_v28 }
  0xe9   : > { %1746 = vmatprep.mubr.bf16.mxu0 %v5729_v56  ;;  %1817 = vmatprep.mubr.bf16.mxu1 %v5729_v56 }
  0xf0   : > { %5352 = vmatmul.mubr.msk.bf16.gmra.mrb[60].mxu0 %vm1266_vm0, %v6148_v30  ;;  %5356 = vmatmul.mubr.msk.bf16.gmra.mrb[60].mxu1 %vm1266_vm0, %v6148_v30 }
  0xf1   : > { %1858 = vmatprep.mubr.bf16.mxu0 %v5729_v56  ;;  %1929 = vmatprep.mubr.bf16.mxu1 %v5729_v56 }
  0xf8   : > { %5357 = vmatmul.mubr.msk.bf16.vlgmr.msra.gmra.mrb[64].mxu0 %vm1266_vm0, %v6099_v11  ;;  %5361 = vmatmul.mubr.msk.bf16.vlgmr.msra.gmra.mrb[64].mxu1 %vm1266_vm0, %v6099_v11 }
  0xf9   : > { %1868 = vmatprep.mubr.bf16.mxu0 %v5729_v56  ;;  %1939 = vmatprep.mubr.bf16.mxu1 %v5729_v56 }
  0xfa   : > { %1969 = vmatpush1.bf16.msra.mxu0 %v5567_v18  ;;  %2040 = vmatpush1.bf16.msra.mxu1 %v5563_v17 }
  0xfb   : > { %1970 = vmatprep.subr.bf16.mxu0 %v5568_v20  ;;  %2041 = vmatprep.subr.bf16.mxu1 %v5571_v21 }
  0xfe   : > { %1971 = vmatpush1.bf16.msra.mxu0 %v5574_v23  ;;  %2042 = vmatpush1.bf16.msra.mxu1 %v5570_v22 }
  0xff   : > { %1972 = vmatprep.subr.bf16.mxu0 %v5575_v24  ;;  %2043 = vmatprep.subr.bf16.mxu1 %v5578_v25 }
 0x100   : > { %5358 = vmatmul.mubr.msk.bf16.gmra.mrb[68].mxu0 %vm1266_vm0, %v6117_v19  ;;  %5362 = vmatmul.mubr.msk.bf16.gmra.mrb[68].mxu1 %vm1266_vm0, %v6117_v19 }
 0x101   : > { %1878 = vmatprep.mubr.bf16.mxu0 %v5729_v56  ;;  %1949 = vmatprep.mubr.bf16.mxu1 %v5729_v56 }
 0x102   : > { %1973 = vmatpush1.bf16.msra.mxu0 %v5581_v27  ;;  %2044 = vmatpush1.bf16.msra.mxu1 %v5577_v26 }
 0x103   : > { %1974 = vmatprep.subr.bf16.mxu0 %v5582_v29  ;;  %2045 = vmatprep.subr.bf16.mxu1 %v5585_v31 }
 0x106   : > { %1975 = vmatpush1.bf16.msra.mxu0 %v5588_v33  ;;  %2046 = vmatpush1.bf16.msra.mxu1 %v5584_v32 }
 0x107   : > { %2108 = vmatprep.subr.bf16.mxu0 %v5589_v34  ;;  %2174 = vmatprep.subr.bf16.mxu1 %v5592_v35 }
 0x108   : > { %5359 = vmatmul.mubr.msk.bf16.gmra.mrb[72].mxu0 %vm1266_vm0, %v6136_v28  ;;  %5363 = vmatmul.mubr.msk.bf16.gmra.mrb[72].mxu1 %vm1266_vm0, %v6136_v28 }
 0x109   : > { %1888 = vmatprep.mubr.bf16.mxu0 %v5729_v56  ;;  %1959 = vmatprep.mubr.bf16.mxu1 %v5729_v56 }
 0x110   : > { %5360 = vmatmul.mubr.msk.bf16.gmra.mrb[76].mxu0 %vm1266_vm0, %v6148_v30  ;;  %5364 = vmatmul.mubr.msk.bf16.gmra.mrb[76].mxu1 %vm1266_vm0, %v6148_v30 }
 0x111   : > { %2000 = vmatprep.mubr.bf16.mxu0 %v5729_v56  ;;  %2071 = vmatprep.mubr.bf16.mxu1 %v5729_v56 }
 0x118   : > { %5365 = vmatmul.mubr.msk.bf16.vlgmr.msra.gmra.mrb[80].mxu0 %vm1266_vm0, %v6099_v11  ;;  %5369 = vmatmul.mubr.msk.bf16.vlgmr.msra.gmra.mrb[80].mxu1 %vm1266_vm0, %v6099_v11 }
 0x119   : > { %2010 = vmatprep.mubr.bf16.mxu0 %v5729_v56  ;;  %2079 = vmatprep.mubr.bf16.mxu1 %v5729_v56 }
 0x11a   : > { %2109 = vmatpush1.bf16.msra.mxu0 %v5566_v36  ;;  %2175 = vmatpush1.bf16.msra.mxu1 %v5591_v37 }
 0x11b   : > { %2110 = vmatprep.subr.bf16.mxu0 %v5593_v38  ;;  %2176 = vmatprep.subr.bf16.mxu1 %v5596_v39 }
 0x11e   : > { %2111 = vmatpush1.bf16.msra.mxu0 %v5573_v40  ;;  %2177 = vmatpush1.bf16.msra.mxu1 %v5595_v41 }
 0x11f   : > { %2112 = vmatprep.subr.bf16.mxu0 %v5597_v42  ;;  %2178 = vmatprep.subr.bf16.mxu1 %v5600_v43 }
 0x120   : > { %5366 = vmatmul.mubr.msk.bf16.gmra.mrb[84].mxu0 %vm1266_vm0, %v6117_v19  ;;  %5370 = vmatmul.mubr.msk.bf16.gmra.mrb[84].mxu1 %vm1266_vm0, %v6117_v19 }
 0x121   : > { %2020 = vmatprep.mubr.bf16.mxu0 %v5729_v56  ;;  %2089 = vmatprep.mubr.bf16.mxu1 %v5729_v56 }
 0x122   : > { %2113 = vmatpush1.bf16.msra.mxu0 %v5580_v44  ;;  %2179 = vmatpush1.bf16.msra.mxu1 %v5599_v45 }
 0x123   : > { %2114 = vmatprep.subr.bf16.mxu0 %v5601_v46  ;;  %2180 = vmatprep.subr.bf16.mxu1 %v5604_v47 }
 0x126   : > { %2115 = vmatpush1.bf16.msra.mxu0 %v5587_v48  ;;  %2181 = vmatpush1.bf16.msra.mxu1 %v5603_v49 }
 0x128   : > { %5367 = vmatmul.mubr.msk.bf16.gmra.mrb[88].mxu0 %vm1266_vm0, %v6136_v28  ;;  %5371 = vmatmul.mubr.msk.bf16.gmra.mrb[88].mxu1 %vm1266_vm0, %v6136_v28 }
 0x129   : > { %2030 = vmatprep.mubr.bf16.mxu0 %v5729_v56  ;;  %2099 = vmatprep.mubr.bf16.mxu1 %v5729_v56 }
 0x130   : > { %5368 = vmatmul.mubr.msk.bf16.gmra.mrb[92].mxu0 %vm1266_vm0, %v6148_v30  ;;  %5372 = vmatmul.mubr.msk.bf16.gmra.mrb[92].mxu1 %vm1266_vm0, %v6148_v30 }
 0x131   : > { %2140 = vmatprep.mubr.bf16.mxu0 %v5729_v56  ;;  %2206 = vmatprep.mubr.bf16.mxu1 %v5729_v56 }
 0x138   : > { %5373 = vmatmul.mubr.msk.bf16.vlgmr.msra.gmra.mrb[96].mxu0 %vm1266_vm0, %v6099_v11  ;;  %5377 = vmatmul.mubr.msk.bf16.vlgmr.msra.gmra.mrb[96].mxu1 %vm1266_vm0, %v6099_v11 }
 0x139   : > { %2146 = vmatprep.mubr.bf16.mxu0 %v5729_v56  ;;  %2212 = vmatprep.mubr.bf16.mxu1 %v5729_v56 }
 0x140   : > { %5374 = vmatmul.mubr.msk.bf16.gmra.mrb[100].mxu0 %vm1266_vm0, %v6117_v19  ;;  %5378 = vmatmul.mubr.msk.bf16.gmra.mrb[100].mxu1 %vm1266_vm0, %v6117_v19 }
 0x141   : > { %2155 = vmatprep.mubr.bf16.mxu0 %v5729_v56  ;;  %2218 = vmatprep.mubr.bf16.mxu1 %v5729_v56 }
 0x148   : > { %5375 = vmatmul.mubr.msk.bf16.gmra.mrb[104].mxu0 %vm1266_vm0, %v6136_v28  ;;  %5379 = vmatmul.mubr.msk.bf16.gmra.mrb[104].mxu1 %vm1266_vm0, %v6136_v28 }
 0x149   : > { %2165 = vmatprep.mubr.bf16.mxu0 %v5729_v56  ;;  %2227 = vmatprep.mubr.bf16.mxu1 %v5729_v56 }
 0x14b   : > { %v1313_v11 = vpop.f32.mrb[0].mxu0  ;;  %v1373_v50 = vpop.f32.mrb[0].mxu1 }
 0x14c   : > { %v2258_v51 = vrot.slane %v1373_v50, 7  ;;  %v1315_v52 = vpop.f32.mrb[1].mxu0  ;;  %v6376_v53 = vpop.f32.mrb[1].mxu1 }
 0x14d   : > { %v2257_v19 = vrot.slane %v1315_v52, 7  ;;  %v2259_v54 = vrot.slane %v6376_v53, 7  ;;  %v1317_v55 = vpop.f32.mrb[2].mxu0  ;;  %v1377_v57 = vpop.f32.mrb[2].mxu1 }
 0x14e   : > { %v2300_v58 = vadd.f32 %v2258_v51, %v1315_v52  ;;  %v2341_v59 = vrot.slane %v1377_v57, 6  ;;  %v2742_v60 = vrot.slane %v1377_v57, 7  ;;  %v1318_v61 = vpop.f32.mrb[3].mxu0  ;;  %v1379_v28 = vpop.f32.mrb[3].mxu1 }
 0x14f   : > { %v2299_v62 = vadd.f32 %v2257_v19, %v1313_v11  ;;  %v6379_v63 = vadd.f32 %v2259_v54, %v1373_v50  ;;  %v2741_v56 = vrot.slane %v1318_v61, 7  ;;  %v2342_v0 = vrot.slane %v1379_v28, 6 }
 0x150   : > { %v2786_v1 = vadd.f32 %v2742_v60, %v1315_v52  ;;  %v2743_v2 = vrot.slane %v1379_v28, 7  ;;  %5376 = vmatmul.mubr.msk.bf16.gmra.mrb[108].mxu0 %vm1266_vm0, %v6148_v30  ;;  %5380 = vmatmul.mubr.msk.bf16.gmra.mrb[108].mxu1 %vm1266_vm0, %v6148_v30 }
 0x151   : > { %v2383_v3 = vadd.f32 %v2341_v59, %v2299_v62  ;;  %v2785_v4 = vadd.f32 %v2741_v56, %v1313_v11  ;;  %v6385_v5 = vadd.f32 %v2342_v0, %v2300_v58 }
 0x152   : > { %v6387_v6 = vadd.f32 %v2743_v2, %v1373_v50  ;;  %v6389_v7 = vadd.f32 %v2786_v1, %v2342_v0 }
 0x153   : > { %v2810_v8 = vadd.f32 %v2785_v4, %v2341_v59  ;;  %v1322_v9 = vpop.f32.mrb[4].mxu0  ;;  %v1383_v10 = vpop.f32.mrb[4].mxu1 }
 0x154   : > { %v3085_v12 = vrot.slane %v1383_v10, 6  ;;  %v1323_v13 = vpop.f32.mrb[5].mxu0  ;;  %v1385_v14 = vpop.f32.mrb[5].mxu1 }
 0x155   : > { %v2425_v15 = vrot.slane %v1385_v14, 5  ;;  %v3086_v16 = vrot.slane %v1385_v14, 6  ;;  %v1324_v17 = vpop.f32.mrb[6].mxu0  ;;  %v1387_v18 = vpop.f32.mrb[6].mxu1 }
 0x156   : > { %v3129_v20 = vadd.f32 %v3085_v12, %v2785_v4  ;;  %v1325_v30 = vpop.f32.mrb[7].mxu0  ;;  %v1388_v21 = vpop.f32.mrb[7].mxu1 }
 0x157   : > { %v6391_v22 = vadd.f32 %v2425_v15, %v2383_v3  ;;  %v6393_v23 = vadd.f32 %v2810_v8, %v2425_v15  ;;  %v6395_v24 = vadd.f32 %v3086_v16, %v2786_v1  ;;  %v3392_v25 = vrot.slane %v1388_v21, 5 }
 0x158   : > { %v6397_v26 = vadd.f32 %v3129_v20, %v2425_v15 }
 0x159   : > { %v6399_v27 = vadd.f32 %v3392_v25, %v3129_v20 }
 0x15b   : > { %v1328_v29 = vpop.f32.mrb[8].mxu0  ;;  %v1392_v31 = vpop.f32.mrb[8].mxu1 }
 0x15c   : > { %v1329_v32 = vpop.f32.mrb[9].mxu0  ;;  %v1393_v33 = vpop.f32.mrb[9].mxu1 }
 0x15d   : > { %v1330_v34 = vpop.f32.mrb[10].mxu0  ;;  %v1394_v35 = vpop.f32.mrb[10].mxu1 }
 0x15e   : > { %v1331_v36 = vpop.f32.mrb[11].mxu0  ;;  %v1395_v37 = vpop.f32.mrb[11].mxu1 }
 0x163   : > { %v1334_v38 = vpop.f32.mrb[12].mxu0  ;;  %v1398_v39 = vpop.f32.mrb[12].mxu1 }
 0x164   : > { %v1335_v40 = vpop.f32.mrb[13].mxu0  ;;  %v1399_v41 = vpop.f32.mrb[13].mxu1 }
 0x165   : > { %v1336_v42 = vpop.f32.mrb[14].mxu0  ;;  %v1400_v43 = vpop.f32.mrb[14].mxu1 }
 0x166   : > { %v1337_v44 = vpop.f32.mrb[15].mxu0  ;;  %v1401_v45 = vpop.f32.mrb[15].mxu1 }
 0x16b   : > { %v1437_v46 = vpop.f32.mrb[16].mxu0  ;;  %v1505_v47 = vpop.f32.mrb[16].mxu1 }
 0x16c   : > { %v2260_v48 = vrot.slane %v1437_v46, 7  ;;  %v2262_v49 = vrot.slane %v1505_v47, 7  ;;  %v1439_v11 = vpop.f32.mrb[17].mxu0  ;;  %v6401_v50 = vpop.f32.mrb[17].mxu1 }
 0x16d   : > { %v2261_v51 = vrot.slane %v1439_v11, 7  ;;  %v2263_v52 = vrot.slane %v6401_v50, 7  ;;  %v1441_v19 = vpop.f32.mrb[18].mxu0  ;;  %v1509_v54 = vpop.f32.mrb[18].mxu1 }
 0x16e   : > { %v2302_v55 = vadd.f32 %v2260_v48, %v6376_v53  ;;  %v2304_v57 = vadd.f32 %v2262_v49, %v1439_v11  ;;  %v2343_v58 = vrot.slane %v1441_v19, 6  ;;  %v2744_v59 = vrot.slane %v1441_v19, 7  ;;  %v1443_v60 = vpop.f32.mrb[19].mxu0  ;;  %v1511_v61 = vpop.f32.mrb[19].mxu1 }
 0x16f   : > { %v2303_v28 = vadd.f32 %v2261_v51, %v1437_v46  ;;  %v6405_v62 = vadd.f32 %v2263_v52, %v1505_v47  ;;  %v2345_v56 = vrot.slane %v1509_v54, 6  ;;  %v2746_v0 = vrot.slane %v1509_v54, 7 }
 0x170   : > { %v2385_v1 = vadd.f32 %v2343_v58, %v6379_v63  ;;  %v2788_v2 = vadd.f32 %v2744_v59, %v6376_v53  ;;  %v2812_v3 = vadd.f32 %v6387_v6, %v2343_v58  ;;  %v2344_v4 = vrot.slane %v1443_v60, 6 }
 0x171   : > { %v2387_v8 = vadd.f32 %v2345_v56, %v2303_v28  ;;  %v2790_v9 = vadd.f32 %v2746_v0, %v1439_v11  ;;  %v2745_v10 = vrot.slane %v1443_v60, 7  ;;  %v2346_v12 = vrot.slane %v1511_v61, 6 }
 0x172   : > { %v2386_v13 = vadd.f32 %v2344_v4, %v2302_v55  ;;  %v2813_v14 = vadd.f32 %v2788_v2, %v2344_v4  ;;  %v2747_v15 = vrot.slane %v1511_v61, 7 }
 0x173   : > { %v2789_v16 = vadd.f32 %v2745_v10, %v1437_v46  ;;  %v6410_v17 = vadd.f32 %v2346_v12, %v2304_v57  ;;  %v6412_v18 = vadd.f32 %v2790_v9, %v2346_v12  ;;  %v1447_v20 = vpop.f32.mrb[20].mxu0  ;;  %v1515_v30 = vpop.f32.mrb[20].mxu1 }
 0x174   : > { %v6414_v63 = vadd.f32 %v2747_v15, %v1505_v47  ;;  %v2426_v53 = vrot.slane %v1447_v20, 5  ;;  %v3087_v21 = vrot.slane %v1447_v20, 6  ;;  %v2428_v25 = vrot.slane %v1515_v30, 5  ;;  %v1449_v29 = vpop.f32.mrb[21].mxu0  ;;  %v1517_v31 = vpop.f32.mrb[21].mxu1 }
 0x175   : > { %v2814_v32 = vadd.f32 %v2789_v16, %v2345_v56  ;;  %v3089_v33 = vrot.slane %v1515_v30, 6  ;;  %v2427_v34 = vrot.slane %v1449_v29, 5  ;;  %v3088_v35 = vrot.slane %v1449_v29, 6  ;;  %v1451_v36 = vpop.f32.mrb[22].mxu0  ;;  %v1519_v37 = vpop.f32.mrb[22].mxu1 }
 0x176   : > { %v2468_v38 = vadd.f32 %v2426_v53, %v6385_v5  ;;  %v6418_v39 = vadd.f32 %v6389_v7, %v2426_v53  ;;  %v3131_v40 = vadd.f32 %v3087_v21, %v6387_v6  ;;  %v3152_v41 = vadd.f32 %v6395_v24, %v2426_v53  ;;  %v1453_v42 = vpop.f32.mrb[23].mxu0  ;;  %v6422_v43 = vpop.f32.mrb[23].mxu1 }
 0x177   : > { %v6424_v44 = vadd.f32 %v2428_v25, %v2386_v13  ;;  %v6426_v45 = vadd.f32 %v2813_v14, %v2428_v25  ;;  %v3133_v46 = vadd.f32 %v3089_v33, %v2789_v16  ;;  %v2469_v47 = vadd.f32 %v2427_v34, %v2385_v1 }
 0x178   : > { %v6428_v48 = vadd.f32 %v2812_v3, %v2427_v34  ;;  %v3132_v49 = vadd.f32 %v3088_v35, %v2788_v2  ;;  %v6430_v5 = vadd.f32 %v3131_v40, %v2427_v34  ;;  %v2429_v7 = vrot.slane %v1517_v31, 5 }
 0x179   : > { %9136 = vst [vmem:[#allocation5_spill] sm:$0xff] %v6424_v44  ;;  %v3090_v11 = vrot.slane %v1517_v31, 6  ;;  %v6432_v51 = vrot.slane %v1451_v36, 4  ;;  %v3393_v6 = vrot.slane %v1451_v36, 5  ;;  %v6434_v52 = vrot.slane %v1519_v37, 4 }
 0x17a   : > { %v6436_v19 = vadd.f32 %v3132_v49, %v2428_v25  ;;  %v6438_v54 = vadd.f32 %v2429_v7, %v2387_v8  ;;  %v6440_v55 = vadd.f32 %v2814_v32, %v2429_v7  ;;  %v6442_v57 = vadd.f32 %v3133_v46, %v2429_v7 }
 0x17b   : > { %v6444_v58 = vadd.f32 %v3090_v11, %v2790_v9  ;;  %v6448_v59 = vadd.f32 %v6432_v51, %v6391_v22  ;;  %v3437_v60 = vadd.f32 %v3393_v6, %v6395_v24  ;;  %v6452_v61 = vadd.f32 %v6434_v52, %v2469_v47  ;;  %v1457_v28 = vpop.f32.mrb[24].mxu0  ;;  %v1525_v56 = vpop.f32.mrb[24].mxu1 }
 0x17c   : > { %v3395_v0 = vrot.slane %v1519_v37, 5  ;;  %v2510_v1 = vrot.slane %v1453_v42, 4  ;;  %v3394_v2 = vrot.slane %v1453_v42, 5  ;;  %v1459_v3 = vpop.f32.mrb[25].mxu0  ;;  %v6454_v4 = vpop.f32.mrb[25].mxu1  ;;  %v3396_v8 = vrot.slane %v6422_v43, 5 }
 0x17d   : > { %9137 = vst [vmem:[#allocation6_spill] sm:$0xff] %v6448_v59  ;;  %9138 = vst [vmem:[#allocation7_spill] sm:$0xff] %v6452_v61  ;;  %v3677_v9 = vrot.slane %v1457_v28, 4  ;;  %v3679_v10 = vrot.slane %v1525_v56, 4  ;;  %v1461_v12 = vpop.f32.mrb[26].mxu0  ;;  %v1529_v22 = vpop.f32.mrb[26].mxu1  ;;  %v2860_v6 = vadd.f32 %v6393_v23, %v6432_v51 }
 0x17e   : > { %v6457_v13 = vadd.f32 %v3395_v0, %v3132_v49  ;;  %v6459_v24 = vadd.f32 %v2510_v1, %v2468_v38  ;;  %v3438_v14 = vadd.f32 %v3394_v2, %v3131_v40  ;;  %v1462_v15 = vpop.f32.mrb[27].mxu0  ;;  %v1531_v16 = vpop.f32.mrb[27].mxu1  ;;  %v6461_v20 = vadd.f32 %v3396_v8, %v3133_v46 }
 0x17f   : > { %v3721_v30 = vadd.f32 %v3677_v9, %v6399_v27  ;;  %v6464_v53 = vrot.slane %v1525_v56, 3  ;;  %v3678_v21 = vrot.slane %v1459_v3, 4  ;;  %v6471_v31 = vrot.slane %v1459_v3, 3 }
 0x180   : > { %9139 = vst [vmem:[#allocation8_spill] sm:$0xff] %v6459_v24  ;;  %v6467_v25 = vadd.f32 %v3438_v14, %v6434_v52  ;;  %v6469_v29 = vadd.f32 %v3679_v10, %v3438_v14  ;;  %v3680_v32 = vrot.slane %v6454_v4, 4  ;;  %v6474_v34 = vrot.slane %v1529_v22, 2 }
 0x181   : > { %9140 = vst [vmem:[#allocation9_spill] sm:$0xff] %v6464_v53  ;;  %9141 = vst [vmem:[#allocation10_spill] sm:$0xff] %v6471_v31  ;;  %v3722_v33 = vadd.f32 %v3678_v21, %v3437_v60  ;;  %v3941_v35 = vrot.slane %v1529_v22, 3  ;;  %v3940_v36 = vrot.slane %v1462_v15, 3  ;;  %v6479_v38 = vrot.slane %v1531_v16, 2 }
 0x182   : > { %9142 = vst [vmem:[#allocation11_spill] sm:$0xff] %v6474_v34  ;;  %v6477_v37 = vadd.f32 %v3680_v32, %v6457_v13  ;;  %v3942_v40 = vrot.slane %v1531_v16, 3  ;;  %v3174_v42 = vadd.f32 %v3152_v41, %v2510_v1  ;;  %v3459_v8 = vadd.f32 %v3437_v60, %v2510_v1 }
 0x183   : > { %9143 = vst [vmem:[#allocation12_spill] sm:$0xff] %v6479_v38  ;;  %v3744_v46 = vadd.f32 %v3722_v33, %v6464_v53  ;;  %v3985_v47 = vadd.f32 %v3941_v35, %v3722_v33  ;;  %v3984_v49 = vadd.f32 %v3940_v36, %v3721_v30  ;;  %v1466_v7 = vpop.f32.mrb[28].mxu0  ;;  %v1535_v11 = vpop.f32.mrb[28].mxu1  ;;  %v2885_v41 = vadd.f32 %v2860_v6, %v6471_v31 }
 0x184   : > { %v6485_v28 = vadd.f32 %v3942_v40, %v6469_v29  ;;  %v4202_v56 = vrot.slane %v1535_v11, 2  ;;  %v1467_v0 = vpop.f32.mrb[29].mxu0  ;;  %v1537_v2 = vpop.f32.mrb[29].mxu1  ;;  %v3196_v3 = vadd.f32 %v3174_v42, %v6464_v53  ;;  %v2861_v22 = vadd.f32 %v6418_v39, %v2510_v1 }
 0x185   : > { %v4203_v9 = vrot.slane %v1537_v2, 2  ;;  %v1468_v10 = vpop.f32.mrb[30].mxu0  ;;  %v1539_v12 = vpop.f32.mrb[30].mxu1  ;;  %v6491_v14 = vadd.f32 %v3744_v46, %v6479_v38  ;;  %v3481_v21 = vadd.f32 %v3459_v8, %v6464_v53  ;;  %v3173_v60 = vadd.f32 %v6397_v26, %v6432_v51 }
 0x186   : > { %v6493_v23 = vadd.f32 %v4202_v56, %v3984_v49  ;;  %v3218_v15 = vadd.f32 %v3196_v3, %v6479_v38  ;;  %v1469_v16 = vpop.f32.mrb[31].mxu0  ;;  %v1540_v32 = vpop.f32.mrb[31].mxu1  ;;  %v2910_v35 = vadd.f32 %v2885_v41, %v6474_v34  ;;  %v2886_v39 = vadd.f32 %v2861_v22, %v6464_v53 }
 0x187   : > { %v6499_v33 = vadd.f32 %v4203_v9, %v3985_v47  ;;  %v3503_v36 = vadd.f32 %v3481_v21, %v6479_v38  ;;  %v3195_v40 = vadd.f32 %v3173_v60, %v6471_v31  ;;  %v3810_v7 = vrot.slane %v6491_v14, 4 }
 0x188   : > { %v3262_v1 = vrot.slane %v3218_v15, 2  ;;  %v2954_v42 = vrot.slane %v2910_v35, 1  ;;  %v2911_v46 = vadd.f32 %v2886_v39, %v6479_v38  ;;  %v3458_v11 = vadd.f32 %v6399_v27, %v6432_v51 }
 0x189   : > { %v3547_v6 = vrot.slane %v3503_v36, 3  ;;  %v3217_v56 = vadd.f32 %v3195_v40, %v6474_v34  ;;  %v6513_v0 = vadd.f32 %v3984_v49, %v6474_v34  ;;  %v3743_v27 = vadd.f32 %v3721_v30, %v6471_v31 }
 0x18a   : > { %3285 = vrot.lane.b32.xlu1 %v3262_v1, %s5730_s6  ;;  %2976 = vrot.lane.b32.xlu0 %v2954_v42, %s5731_s7  ;;  %v2955_v2 = vrot.slane %v2911_v46, 1  ;;  %v3480_v9 = vadd.f32 %v3458_v11, %v6471_v31  ;;  %v6520_v51 = vadd.f32 %v6430_v5, %v6434_v52  ;;  %v6525_v14 = vadd.f32 %v3985_v47, %v6479_v38 }
 0x18b   : > { %v1576_v3 = vpop.f32.mrb[32].mxu0  ;;  %v1647_v8 = vpop.f32.mrb[32].mxu1  ;;  %v3261_v49 = vrot.slane %v3217_v56, 2  ;;  %v4050_v60 = vrot.slane %v6513_v0, 5 }
 0x18c   : > { %v2264_v41 = vrot.slane %v1576_v3, 7  ;;  %v2266_v10 = vrot.slane %v1647_v8, 7  ;;  %v1578_v12 = vpop.f32.mrb[33].mxu0  ;;  %v6522_v22 = vpop.f32.mrb[33].mxu1  ;;  %v3502_v30 = vadd.f32 %v3480_v9, %v6474_v34 }
 0x18d   : > { %v2265_v15 = vrot.slane %v1578_v12, 7  ;;  %v2267_v16 = vrot.slane %v6522_v22, 7  ;;  %v1651_v21 = vpop.f32.mrb[34].mxu1  ;;  %v1580_v32 = vpop.f32.mrb[34].mxu0 }
 0x18e   : > { %3570 = vrot.lane.b32.xlu1 %v3547_v6, %s5732_s8  ;;  %v2306_v5 = vadd.f32 %v2264_v41, %v6401_v50  ;;  %v2308_v35 = vadd.f32 %v2266_v10, %v1578_v12  ;;  %v2349_v39 = vrot.slane %v1651_v21, 6  ;;  %v2750_v1 = vrot.slane %v1651_v21, 7  ;;  %v1582_v36 = vpop.f32.mrb[35].mxu0  ;;  %v1653_v47 = vpop.f32.mrb[35].mxu1  ;;  %2978 = vrot.lane.b32.xlu0 %v2955_v2, %s5731_s7 }
 0x18f   : > { %v2307_v40 = vadd.f32 %v2265_v15, %v1576_v3  ;;  %v6533_v42 = vadd.f32 %v2267_v16, %v1647_v8  ;;  %v2347_v46 = vrot.slane %v1580_v32, 6  ;;  %v2748_v11 = vrot.slane %v1580_v32, 7 }
 0x190   : > { %v2794_v56 = vadd.f32 %v2750_v1, %v1578_v12  ;;  %v2348_v9 = vrot.slane %v1582_v36, 6  ;;  %v2749_v0 = vrot.slane %v1582_v36, 7  ;;  %v2350_v26 = vrot.slane %v1653_v47, 6 }
 0x191   : > { %v2391_v61 = vadd.f32 %v2349_v39, %v2307_v40  ;;  %v2389_v6 = vadd.f32 %v2347_v46, %v6405_v62  ;;  %v2792_v41 = vadd.f32 %v2748_v11, %v6401_v50  ;;  %v2816_v10 = vadd.f32 %v6414_v63, %v2347_v46 }
 0x192   : > { %3833 = vrot.lane.b32.xlu1 %v3810_v7, %s5733_s9  ;;  %v2390_v2 = vadd.f32 %v2348_v9, %v2306_v5  ;;  %v2793_v15 = vadd.f32 %v2749_v0, %v1576_v3  ;;  %v6539_v16 = vadd.f32 %v2350_v26, %v2308_v35  ;;  %v2751_v21 = vrot.slane %v1653_v47, 7  ;;  %3283 = vrot.lane.b32.xlu0 %v3261_v49, %s5730_s6 }
 0x193   : > { %v2817_v12 = vadd.f32 %v2792_v41, %v2348_v9  ;;  %v6542_v32 = vadd.f32 %v2794_v56, %v2350_v26  ;;  %v3546_v1 = vrot.slane %v3502_v30, 3  ;;  %v1586_v36 = vpop.f32.mrb[36].mxu0  ;;  %v1657_v62 = vpop.f32.mrb[36].mxu1  ;;  %v3765_v50 = vadd.f32 %v3743_v27, %v6474_v34 }
 0x194   : > { %v2818_v40 = vadd.f32 %v2793_v15, %v2349_v39  ;;  %v6545_v46 = vadd.f32 %v2751_v21, %v1647_v8  ;;  %v2430_v11 = vrot.slane %v1586_v36, 5  ;;  %v3091_v7 = vrot.slane %v1586_v36, 6  ;;  %v1588_v5 = vpop.f32.mrb[37].mxu0  ;;  %v1659_v3 = vpop.f32.mrb[37].mxu1 }
 0x195   : > { %v2432_v35 = vrot.slane %v1657_v62, 5  ;;  %v3093_v0 = vrot.slane %v1657_v62, 6  ;;  %v2431_v47 = vrot.slane %v1588_v5, 5  ;;  %v3092_v38 = vrot.slane %v1588_v5, 6  ;;  %v6547_v49 = vpop.f32.mrb[38].mxu1  ;;  %v1590_v26 = vpop.f32.mrb[38].mxu0 }
 0x196   : > { %4072 = vrot.lane.b32.xlu1 %v4050_v60, %s5734_s10  ;;  %v6551_v30 = vadd.f32 %v2430_v11, %v6410_v17  ;;  %v6554_v8 = vadd.f32 %v6412_v18, %v2430_v11  ;;  %v3135_v27 = vadd.f32 %v3091_v7, %v6414_v63  ;;  %v6558_v39 = vadd.f32 %v6444_v58, %v2430_v11  ;;  %v1592_v9 = vpop.f32.mrb[39].mxu0  ;;  %v6560_v21 = vpop.f32.mrb[39].mxu1 }
 0x197   : > { %9145 = vst [vmem:[#allocation14_spill] sm:$0xff] %v6560_v21  ;;  %3568 = vrot.lane.b32.xlu0 %v3546_v1, %s5732_s8  ;;  %v6563_v36 = vadd.f32 %v2432_v35, %v2390_v2  ;;  %v6565_v62 = vadd.f32 %v2817_v12, %v2432_v35  ;;  %v3137_v60 = vadd.f32 %v3093_v0, %v2793_v15  ;;  %v2433_v63 = vrot.slane %v1659_v3, 5 }
 0x198   : > { %9144 = vst [vmem:[#allocation13_spill] sm:$0xff] %v6551_v30  ;;  %v6567_v17 = vadd.f32 %v2431_v47, %v2389_v6  ;;  %v6569_v5 = vadd.f32 %v2816_v10, %v2431_v47  ;;  %v3136_v18 = vadd.f32 %v3092_v38, %v2792_v41  ;;  %v6571_v30 = vadd.f32 %v3135_v27, %v2431_v47 }
 0x199   : > { %9146 = vst [vmem:[#allocation15_spill] sm:$0xff] %v6563_v36  ;;  %9147 = vst [vmem:[#allocation16_spill] sm:$0xff] %v6565_v62  ;;  %v3094_v11 = vrot.slane %v1659_v3, 6  ;;  %v3399_v7 = vrot.slane %v6547_v49, 5  ;;  %v3809_v53 = vrot.slane %v3765_v50, 4  ;;  %v6574_v24 = vrot.slane %v1590_v26, 4 }
 0x19a   : > { %9148 = vst [vmem:[#allocation17_spill] sm:$0xff] %v6567_v17  ;;  %9149 = vst [vmem:[#allocation18_spill] sm:$0xff] %v6569_v5  ;;  %v6576_v1 = vadd.f32 %v3136_v18, %v2432_v35  ;;  %v6578_v2 = vadd.f32 %v2433_v63, %v2391_v61  ;;  %v6580_v12 = vadd.f32 %v2818_v40, %v2433_v63  ;;  %v9155_v38 = vrot.slane %v6493_v23, 6 }
 0x19b   : > { %9150 = vst [vmem:[#allocation19_spill] sm:$0xff] %v6571_v30  ;;  %v6582_v6 = vadd.f32 %v3137_v60, %v2433_v63  ;;  %v6587_v41 = vadd.f32 %v3094_v11, %v2794_v56  ;;  %v6589_v10 = vadd.f32 %v3399_v7, %v3136_v18  ;;  %3831 = vrot.lane.b32.xlu0 %v3809_v53, %s5733_s9  ;;  %v3397_v61 = vrot.slane %v1590_v26, 5  ;;  %v1596_v50 = vpop.f32.mrb[40].mxu0  ;;  %v1667_v40 = vpop.f32.mrb[40].mxu1 }
 0x19c   : > { %9151 = vst [vmem:[#allocation20_spill] sm:$0xff] %v6576_v1  ;;  %9152 = vst [vmem:[#allocation21_spill] sm:$0xff] %v6578_v2  ;;  %4312 = vrot.lane.b32.xlu1 %v9155_v38, %s5735_s11  ;;  %v6594_v15 = vadd.f32 %v6574_v24, %v6438_v54  ;;  %v3398_v3 = vrot.slane %v1592_v9, 5  ;;  %v3400_v35 = vrot.slane %v6560_v21, 5  ;;  %v1598_v0 = vpop.f32.mrb[41].mxu0  ;;  %v6597_v47 = vpop.f32.mrb[41].mxu1 }
 0x19d   : > { %9153 = vst [vmem:[#allocation22_spill] sm:$0xff] %v6580_v12  ;;  %9154 = vst [vmem:[#allocation23_spill] sm:$0xff] %v6582_v6  ;;  %v6600_v23 = vadd.f32 %v3397_v61, %v6444_v58  ;;  %v4051_v56 = vrot.slane %v6525_v14, 5  ;;  %v3681_v18 = vrot.slane %v1596_v50, 4  ;;  %v1671_v53 = vpop.f32.mrb[42].mxu1  ;;  %v1600_v63 = vpop.f32.mrb[42].mxu0 }
 0x19e   : > { %9156 = vst [vmem:[#allocation24_spill] sm:$0xff] %v6589_v10  ;;  %9157 = vst [vmem:[#allocation25_spill] sm:$0xff] %v6594_v15  ;;  %v6603_v11 = vadd.f32 %v3398_v3, %v3135_v27  ;;  %v6605_v54 = vadd.f32 %v3400_v35, %v3137_v60  ;;  %v3683_v26 = vrot.slane %v1667_v40, 4  ;;  %v1602_v7 = vpop.f32.mrb[43].mxu0  ;;  %v1673_v38 = vpop.f32.mrb[43].mxu1  ;;  %v6608_v36 = vrot.slane %v6422_v43, 4 }
 0x19f   : > { %4074 = vrot.lane.b32.xlu0 %v4051_v56, %s5734_s10  ;;  %v6612_v58 = vadd.f32 %v3681_v18, %v6461_v20  ;;  %v3682_v61 = vrot.slane %v1598_v0, 4  ;;  %v6615_v14 = vrot.slane %v6454_v4, 3  ;;  %v4291_v27 = vrot.slane %v6499_v33, 6 }
 0x1a0   : > { %9158 = vst [vmem:[#allocation26_spill] sm:$0xff] %v6603_v11  ;;  %9159 = vst [vmem:[#allocation27_spill] sm:$0xff] %v6608_v36  ;;  %v6619_v60 = vadd.f32 %v3683_v26, %v6603_v11  ;;  %v3684_v3 = vrot.slane %v6597_v47, 4  ;;  %v6622_v35 = vrot.slane %v1592_v9, 4  ;;  %v3945_v56 = vrot.slane %v1671_v53, 3 }
 0x1a1   : > { %9160 = vst [vmem:[#allocation28_spill] sm:$0xff] %v6615_v14  ;;  %v6625_v43 = vadd.f32 %v3682_v61, %v6600_v23  ;;  %v3943_v17 = vrot.slane %v1600_v63, 3  ;;  %v6627_v18 = vrot.slane %v1596_v50, 3  ;;  %v6632_v4 = vrot.slane %v1600_v63, 2 }
 0x1a2   : > { %9161 = vst [vmem:[#allocation29_spill] sm:$0xff] %v6619_v60  ;;  %9162 = vst [vmem:[#allocation30_spill] sm:$0xff] %v6622_v35  ;;  %v6630_v2 = vadd.f32 %v3684_v3, %v6589_v10  ;;  %v3944_v33 = vrot.slane %v1602_v7, 3  ;;  %v6634_v15 = vrot.slane %v1667_v40, 3  ;;  %v3946_v61 = vrot.slane %v1673_v38, 3 }
 0x1a3   : > { %9163 = vst [vmem:[#allocation31_spill] sm:$0xff] %v6627_v18  ;;  %9165 = vst [vmem:[#allocation33_spill] sm:$0xff] %v6632_v4  ;;  %v6637_v26 = vadd.f32 %v3945_v56, %v6625_v43  ;;  %4314 = vrot.lane.b32.xlu0 %v4291_v27, %s5735_s11  ;;  %v6641_v9 = vadd.f32 %v3943_v17, %v6477_v37  ;;  %v1606_v44 = vpop.f32.mrb[44].mxu0  ;;  %v1677_v50 = vpop.f32.mrb[44].mxu1  ;;  %v3197_v40 = vadd.f32 %v6520_v51, %v6615_v14 }
 0x1a4   : > { %9164 = vst [vmem:[#allocation32_spill] sm:$0xff] %v6630_v2  ;;  %9166 = vst [vmem:[#allocation34_spill] sm:$0xff] %v6634_v15  ;;  %v6644_v34 = vadd.f32 %v3944_v33, %v6612_v58  ;;  %v4204_v3 = vrot.slane %v1606_v44, 2  ;;  %v4206_v63 = vrot.slane %v1677_v50, 2  ;;  %v1679_v31 = vpop.f32.mrb[45].mxu1  ;;  %v1608_v59 = vpop.f32.mrb[45].mxu0  ;;  %v6649_v56 = vadd.f32 %v3946_v61, %v6619_v60 }
 0x1a5   : > { %v4207_v27 = vrot.slane %v1679_v31, 2  ;;  %v2862_v17 = vadd.f32 %v6428_v48, %v6434_v52  ;;  %v4205_v10 = vrot.slane %v1608_v59, 2  ;;  %v1610_v1 = vpop.f32.mrb[46].mxu0  ;;  %v1681_v6 = vpop.f32.mrb[46].mxu1  ;;  %v3219_v50 = vadd.f32 %v3197_v40, %v6632_v4 }
 0x1a6   : > { %9167 = vst [vmem:[#allocation35_spill] sm:$0xff] %v6644_v34  ;;  %v6654_v33 = vadd.f32 %v4204_v3, %v6485_v28  ;;  %v6657_v44 = vadd.f32 %v4206_v63, %v6644_v34  ;;  %v3482_v51 = vadd.f32 %v6467_v25, %v6615_v14  ;;  %v1611_v61 = vpop.f32.mrb[47].mxu0  ;;  %v1682_v12 = vpop.f32.mrb[47].mxu1  ;;  %v4008_v59 = vadd.f32 %v6485_v28, %v6632_v4 }
 0x1a7   : > { %v6663_v31 = vadd.f32 %v4207_v27, %v6637_v26  ;;  %v2887_v48 = vadd.f32 %v2862_v17, %v6615_v14  ;;  %v6667_v52 = vadd.f32 %v4205_v10, %v6641_v9  ;;  %v6671_v1 = vrot.slane %v1598_v0, 3 }
 0x1a8   : > { %9168 = vst [vmem:[#allocation36_spill] sm:$0xff] %v6654_v33  ;;  %9169 = vst [vmem:[#allocation37_spill] sm:$0xff] %v6657_v44  ;;  %v6673_v6 = vrot.slane %v1671_v53, 2  ;;  %v3263_v3 = vrot.slane %v3219_v50, 2  ;;  %v3504_v25 = vadd.f32 %v3482_v51, %v6632_v4  ;;  %v6676_v63 = vrot.slane %v1602_v7, 2 }
 0x1a9   : > { %9170 = vst [vmem:[#allocation38_spill] sm:$0xff] %v6671_v1  ;;  %v6678_v12 = vrot.slane %v1673_v38, 2  ;;  %v2912_v40 = vadd.f32 %v2887_v48, %v6632_v4  ;;  %v4052_v27 = vrot.slane %v4008_v59, 5  ;;  %v3745_v28 = vadd.f32 %v6469_v29, %v6615_v14 }
 0x1aa   : > { %9171 = vst [vmem:[#allocation39_spill] sm:$0xff] %v6673_v6  ;;  %9172 = vst [vmem:[#allocation40_spill] sm:$0xff] %v6676_v63  ;;  %3287 = vrot.lane.b32.xlu0 %v3263_v3, %s5730_s6  ;;  %v3548_v10 = vrot.slane %v3504_v25, 3  ;;  %v2863_v0 = vadd.f32 %v6426_v45, %v6608_v36  ;;  %v2864_v53 = vadd.f32 %v6440_v55, %v6574_v24 }
 0x1ab   : > { %9173 = vst [vmem:[#allocation41_spill] sm:$0xff] %v6678_v12  ;;  %v2956_v17 = vrot.slane %v2912_v40, 1  ;;  %v1718_v7 = vpop.f32.mrb[48].mxu0  ;;  %v1789_v50 = vpop.f32.mrb[48].mxu1  ;;  %v2865_v38 = vadd.f32 %v6554_v8, %v6622_v35  ;;  %v3177_v51 = vadd.f32 %v6442_v57, %v6574_v24  ;;  %v6694_v61 = vadd.f32 %v6436_v19, %v6608_v36 }
 0x1ac   : > { %v2268_v29 = vrot.slane %v1718_v7, 7  ;;  %v3767_v48 = vadd.f32 %v3745_v28, %v6632_v4  ;;  %v2888_v45 = vadd.f32 %v2863_v0, %v6627_v18  ;;  %v1720_v59 = vpop.f32.mrb[49].mxu0  ;;  %v2270_v55 = vrot.slane %v1789_v50, 7  ;;  %v6698_v3 = vpop.f32.mrb[49].mxu1 }
 0x1ad   : > { %9174 = vst [vmem:[#allocation42_spill] sm:$0xff] %v6698_v3  ;;  %2980 = vrot.lane.b32.xlu1 %v2956_v17, %s5731_s7  ;;  %v2269_v25 = vrot.slane %v1720_v59, 7  ;;  %v1722_v8 = vpop.f32.mrb[50].mxu0  ;;  %v2271_v40 = vrot.slane %v6698_v3, 7  ;;  %v2889_v57 = vadd.f32 %v2864_v53, %v6671_v1  ;;  %v2890_v19 = vadd.f32 %v2865_v38, %v6634_v15  ;;  %v1793_v14 = vpop.f32.mrb[50].mxu1 }
 0x1ae   : > { %3572 = vrot.lane.b32.xlu0 %v3548_v10, %s5732_s8  ;;  %v2310_v28 = vadd.f32 %v2268_v29, %v6522_v22  ;;  %v3811_v0 = vrot.slane %v3767_v48, 4  ;;  %v2913_v4 = vadd.f32 %v2888_v45, %v6676_v63  ;;  %v2351_v62 = vrot.slane %v1722_v8, 6  ;;  %v1724_v60 = vpop.f32.mrb[51].mxu0  ;;  %v1795_v44 = vpop.f32.mrb[51].mxu1 }
 0x1af   : > { %v2311_v17 = vadd.f32 %v2269_v25, %v1718_v7  ;;  %v2752_v21 = vrot.slane %v1722_v8, 7  ;;  %v2352_v33 = vrot.slane %v1724_v60, 6  ;;  %v2753_v30 = vrot.slane %v1724_v60, 7 }
 0x1b0   : > { %v2957_v11 = vrot.slane %v2913_v4, 1  ;;  %v2393_v53 = vadd.f32 %v2351_v62, %v6533_v42  ;;  %v2820_v38 = vadd.f32 %v6545_v46, %v2351_v62  ;;  %v2312_v5 = vadd.f32 %v2270_v55, %v1720_v59 }
 0x1b1   : > { %4076 = vrot.lane.b32.xlu1 %v4052_v27, %s5734_s10  ;;  %v2796_v10 = vadd.f32 %v2752_v21, %v6522_v22  ;;  %v2394_v29 = vadd.f32 %v2352_v33, %v2310_v28  ;;  %v2797_v48 = vadd.f32 %v2753_v30, %v1718_v7  ;;  %v6711_v45 = vadd.f32 %v2271_v40, %v1789_v50 }
 0x1b2   : > { %3835 = vrot.lane.b32.xlu0 %v3811_v0, %s5733_s9  ;;  %v2914_v25 = vadd.f32 %v2889_v57, %v6673_v6  ;;  %v2915_v60 = vadd.f32 %v2890_v19, %v6678_v12  ;;  %v2353_v4 = vrot.slane %v1793_v14, 6  ;;  %v2754_v8 = vrot.slane %v1793_v14, 7 }
 0x1b3   : > { %v2821_v42 = vadd.f32 %v2796_v10, %v2352_v33  ;;  %v2354_v34 = vrot.slane %v1795_v44, 6  ;;  %v2755_v62 = vrot.slane %v1795_v44, 7  ;;  %v1728_v55 = vpop.f32.mrb[52].mxu0  ;;  %v1799_v3 = vpop.f32.mrb[52].mxu1  ;;  %v3199_v27 = vadd.f32 %v3177_v51, %v6671_v1 }
 0x1b4   : > { %v2958_v22 = vrot.slane %v2914_v25, 1  ;;  %v2959_v21 = vrot.slane %v2915_v60, 1  ;;  %v2395_v30 = vadd.f32 %v2353_v4, %v2311_v17  ;;  %v2798_v7 = vadd.f32 %v2754_v8, %v1720_v59  ;;  %v1801_v40 = vpop.f32.mrb[53].mxu1  ;;  %v1730_v28 = vpop.f32.mrb[53].mxu0 }
 0x1b5   : > { %2982 = vrot.lane.b32.xlu1 %v2957_v11, %s5731_s7  ;;  %v2822_v57 = vadd.f32 %v2797_v48, %v2353_v4  ;;  %v6718_v0 = vadd.f32 %v2354_v34, %v2312_v5  ;;  %v6720_v19 = vadd.f32 %v2755_v62, %v1789_v50  ;;  %v2434_v14 = vrot.slane %v1728_v55, 5  ;;  %v6722_v33 = vpop.f32.mrb[54].mxu0  ;;  %v6724_v44 = vpop.f32.mrb[54].mxu1 }
 0x1b6   : > { %9175 = vst [vmem:[#allocation43_spill] sm:$0xff] %v6724_v44  ;;  %2984 = vrot.lane.b32.xlu0 %v2958_v22, %s5731_s7  ;;  %v6727_v51 = vadd.f32 %v2798_v7, %v2354_v34  ;;  %v3095_v17 = vrot.slane %v1728_v55, 6  ;;  %v2436_v59 = vrot.slane %v1799_v3, 5  ;;  %v3097_v25 = vrot.slane %v1799_v3, 6  ;;  %v6729_v60 = vpop.f32.mrb[55].mxu0  ;;  %v6731_v11 = vpop.f32.mrb[55].mxu1 }
 0x1b7   : > { %9176 = vst [vmem:[#allocation44_spill] sm:$0xff] %v6731_v11  ;;  %v6734_v5 = vadd.f32 %v2434_v14, %v6539_v16  ;;  %v6737_v50 = vadd.f32 %v6542_v32, %v2434_v14  ;;  %v6740_v4 = vadd.f32 %v6587_v41, %v2434_v14  ;;  %v2437_v8 = vrot.slane %v1801_v40, 5 }
 0x1b8   : > { %v3139_v34 = vadd.f32 %v3095_v17, %v6545_v46  ;;  %v6743_v62 = vadd.f32 %v2436_v59, %v2394_v29  ;;  %v6745_v55 = vadd.f32 %v2821_v42, %v2436_v59  ;;  %v3141_v3 = vadd.f32 %v3097_v25, %v2797_v48 }
 0x1b9   : > { %9177 = vst [vmem:[#allocation45_spill] sm:$0xff] %v6734_v5  ;;  %9178 = vst [vmem:[#allocation46_spill] sm:$0xff] %v6737_v50  ;;  %2986 = vrot.lane.b32.xlu1 %v2959_v21, %s5731_s7  ;;  %v6748_v22 = vadd.f32 %v2437_v8, %v2395_v30  ;;  %v6750_v16 = vadd.f32 %v2822_v57, %v2437_v8  ;;  %v3098_v5 = vrot.slane %v1801_v40, 6  ;;  %v2435_v46 = vrot.slane %v1730_v28, 5 }
 0x1ba   : > { %9179 = vst [vmem:[#allocation47_spill] sm:$0xff] %v6743_v62  ;;  %9180 = vst [vmem:[#allocation48_spill] sm:$0xff] %v6745_v55  ;;  %v3221_v32 = vadd.f32 %v3199_v27, %v6673_v6  ;;  %v6753_v50 = vadd.f32 %v3141_v3, %v2437_v8  ;;  %v3198_v14 = vadd.f32 %v6694_v61, %v6627_v18  ;;  %v3096_v29 = vrot.slane %v1730_v28, 6 }
 0x1bb   : > { %9181 = vst [vmem:[#allocation49_spill] sm:$0xff] %v6748_v22  ;;  %9182 = vst [vmem:[#allocation50_spill] sm:$0xff] %v6750_v16  ;;  %v6757_v17 = vadd.f32 %v3098_v5, %v2798_v7  ;;  %v3401_v48 = vrot.slane %v6722_v33, 5  ;;  %v6760_v21 = vpop.f32.mrb[56].mxu0  ;;  %v6762_v30 = vpop.f32.mrb[56].mxu1  ;;  %v6765_v57 = vadd.f32 %v2435_v46, %v2393_v53  ;;  %v6767_v27 = vadd.f32 %v2820_v38, %v2435_v46 }
 0x1bc   : > { %9183 = vst [vmem:[#allocation51_spill] sm:$0xff] %v6753_v50  ;;  %v3265_v42 = vrot.slane %v3221_v32, 2  ;;  %v3220_v40 = vadd.f32 %v3198_v14, %v6676_v63  ;;  %v3140_v25 = vadd.f32 %v3096_v29, %v2796_v10  ;;  %v6769_v8 = vpop.f32.mrb[57].mxu1  ;;  %v6771_v61 = vpop.f32.mrb[57].mxu0  ;;  %v6774_v7 = vadd.f32 %v3139_v34, %v2435_v46 }
 0x1bd   : > { %9184 = vst [vmem:[#allocation52_spill] sm:$0xff] %v6765_v57  ;;  %9185 = vst [vmem:[#allocation53_spill] sm:$0xff] %v6767_v27  ;;  %v6777_v28 = vadd.f32 %v3401_v48, %v6587_v41  ;;  %v3403_v5 = vrot.slane %v6724_v44, 5  ;;  %v6780_v32 = vpop.f32.mrb[58].mxu0  ;;  %v6782_v53 = vpop.f32.mrb[58].mxu1  ;;  %v3402_v10 = vrot.slane %v6729_v60, 5 }
 0x1be   : > { %9186 = vst [vmem:[#allocation54_spill] sm:$0xff] %v6769_v8  ;;  %3291 = vrot.lane.b32.xlu0 %v3265_v42, %s5730_s6  ;;  %9187 = vst [vmem:[#allocation55_spill] sm:$0xff] %v6774_v7  ;;  %v3264_v38 = vrot.slane %v3220_v40, 2  ;;  %v6784_v14 = vadd.f32 %v3140_v25, %v2436_v59  ;;  %v6787_v29 = vpop.f32.mrb[59].mxu0  ;;  %v6789_v22 = vpop.f32.mrb[59].mxu1  ;;  %v3404_v41 = vrot.slane %v6731_v11, 5  ;;  %v3462_v42 = vadd.f32 %v6461_v20, %v6574_v24 }
 0x1bf   : > { %v6791_v46 = vadd.f32 %v3403_v5, %v3140_v25  ;;  %v6797_v48 = vadd.f32 %v3402_v10, %v3139_v34  ;;  %v3178_v59 = vadd.f32 %v6558_v39, %v6622_v35  ;;  %v3685_v40 = vrot.slane %v6760_v21, 4 }
 0x1c0   : > { %9188 = vst [vmem:[#allocation56_spill] sm:$0xff] %v6784_v14  ;;  %3289 = vrot.lane.b32.xlu1 %v3264_v38, %s5730_s6  ;;  %v6802_v62 = vadd.f32 %v3404_v41, %v3141_v3  ;;  %v3484_v57 = vadd.f32 %v3462_v42, %v6671_v1  ;;  %v3687_v25 = vrot.slane %v6762_v30, 4  ;;  %v3688_v39 = vrot.slane %v6769_v8, 4 }
 0x1c1   : > { %9189 = vst [vmem:[#allocation57_spill] sm:$0xff] %v6791_v46  ;;  %9190 = vst [vmem:[#allocation58_spill] sm:$0xff] %v6797_v48  ;;  %v3200_v5 = vadd.f32 %v3178_v59, %v6634_v15  ;;  %v6808_v50 = vadd.f32 %v3685_v40, %v6605_v54  ;;  %v3747_v34 = vadd.f32 %v6612_v58, %v6671_v1  ;;  %v3686_v42 = vrot.slane %v6771_v61, 4 }
 0x1c2   : > { %9191 = vst [vmem:[#allocation59_spill] sm:$0xff] %v6802_v62  ;;  %v3506_v24 = vadd.f32 %v3484_v57, %v6673_v6  ;;  %v6812_v20 = vadd.f32 %v3687_v25, %v6797_v48  ;;  %v3461_v41 = vadd.f32 %v6457_v13, %v6608_v36  ;;  %v6822_v25 = vadd.f32 %v3688_v39, %v6791_v46 }
 0x1c3   : > { %v1748_v3 = vpop.f32.mrb[60].mxu0  ;;  %v1819_v38 = vpop.f32.mrb[60].mxu1  ;;  %v3222_v10 = vadd.f32 %v3200_v5, %v6678_v12  ;;  %v3769_v14 = vadd.f32 %v3747_v34, %v6673_v6  ;;  %v6827_v5 = vadd.f32 %v3686_v42, %v6777_v28  ;;  %v3947_v13 = vrot.slane %v6780_v32, 3 }
 0x1c4   : > { %9192 = vst [vmem:[#allocation60_spill] sm:$0xff] %v6812_v20  ;;  %v1821_v59 = vpop.f32.mrb[61].mxu1  ;;  %v1750_v40 = vpop.f32.mrb[61].mxu0  ;;  %v3550_v57 = vrot.slane %v3506_v24, 3  ;;  %9193 = vst [vmem:[#allocation61_spill] sm:$0xff] %v6822_v25  ;;  %v3483_v1 = vadd.f32 %v3461_v41, %v6627_v18  ;;  %v3949_v24 = vrot.slane %v6782_v53, 3  ;;  %v3748_v39 = vadd.f32 %v6625_v43, %v6634_v15 }
 0x1c5   : > { %v1752_v16 = vpop.f32.mrb[62].mxu0  ;;  %v1823_v55 = vpop.f32.mrb[62].mxu1  ;;  %v3266_v58 = vrot.slane %v3222_v10, 2  ;;  %v3948_v34 = vrot.slane %v6787_v29, 3  ;;  %v3813_v10 = vrot.slane %v3769_v14, 4  ;;  %v4009_v41 = vadd.f32 %v6641_v9, %v6676_v63 }
 0x1c6   : > { %v1753_v36 = vpop.f32.mrb[63].mxu0  ;;  %v1824_v7 = vpop.f32.mrb[63].mxu1  ;;  %3576 = vrot.lane.b32.xlu0 %v3550_v57, %s5732_s8  ;;  %v3505_v55 = vadd.f32 %v3483_v1, %v6676_v63  ;;  %v6837_v16 = vadd.f32 %v3947_v13, %v6630_v2  ;;  %v3463_v1 = vadd.f32 %v6600_v23, %v6622_v35  ;;  %v4208_v57 = vrot.slane %v1748_v3, 2 }
 0x1c7   : > { %3293 = vrot.lane.b32.xlu1 %v3266_v58, %s5730_s6  ;;  %v6841_v36 = vadd.f32 %v3949_v24, %v6827_v5  ;;  %v3950_v7 = vrot.slane %v6789_v22, 3  ;;  %v6847_v43 = vadd.f32 %v3948_v34, %v6808_v50  ;;  %v4053_v58 = vrot.slane %v4009_v41, 5 }
 0x1c8   : > { %9194 = vst [vmem:[#allocation62_spill] sm:$0xff] %v6837_v16  ;;  %v3549_v42 = vrot.slane %v3505_v55, 3  ;;  %v4210_v13 = vrot.slane %v1819_v38, 2  ;;  %v4211_v24 = vrot.slane %v1821_v59, 2  ;;  %v3485_v9 = vadd.f32 %v3463_v1, %v6634_v15 }
 0x1c9   : > { %9195 = vst [vmem:[#allocation63_spill] sm:$0xff] %v6841_v36  ;;  %9196 = vst [vmem:[#allocation64_spill] sm:$0xff] %v6847_v43  ;;  %v6853_v14 = vadd.f32 %v3950_v7, %v6812_v20  ;;  %v6860_v55 = vadd.f32 %v4208_v57, %v6649_v56  ;;  %v4011_v23 = vadd.f32 %v6637_v26, %v6678_v12  ;;  %v4209_v7 = vrot.slane %v1750_v40, 2 }
 0x1ca   : > { %3839 = vrot.lane.b32.xlu0 %v3813_v10, %s5733_s9  ;;  %v3746_v3 = vadd.f32 %v6477_v37, %v6627_v18  ;;  %v6869_v38 = vadd.f32 %v4210_v13, %v6847_v43  ;;  %v6872_v59 = vadd.f32 %v4211_v24, %v6841_v36  ;;  %v6875_v41 = vadd.f32 %v3748_v39, %v6678_v12 }
 0x1cb   : > { %v1860_v46 = vpop.f32.mrb[64].mxu0  ;;  %v6855_v27 = vpop.f32.mrb[64].mxu1  ;;  %3574 = vrot.lane.b32.xlu1 %v3549_v42, %s5732_s8  ;;  %9197 = vst [vmem:[#allocation65_spill] sm:$0xff] %v6860_v55  ;;  %v6878_v26 = vrot.slane %v6547_v49, 4  ;;  %v6881_v37 = vrot.slane %v6597_v47, 3  ;;  %v3507_v57 = vadd.f32 %v3485_v9, %v6678_v12  ;;  %v4293_v40 = vrot.slane %v6667_v52, 6 }
 0x1cc   : > { %v1862_v34 = vpop.f32.mrb[65].mxu0  ;;  %v6866_v10 = vpop.f32.mrb[65].mxu1  ;;  %9198 = vst [vmem:[#allocation66_spill] sm:$0xff] %v6869_v38  ;;  %9199 = vst [vmem:[#allocation67_spill] sm:$0xff] %v6872_v59  ;;  %v3768_v13 = vadd.f32 %v3746_v3, %v6676_v63  ;;  %v6888_v39 = vrot.slane %v6780_v32, 2  ;;  %v6892_v49 = vadd.f32 %v4209_v7, %v6837_v16  ;;  %v4055_v18 = vrot.slane %v4011_v23, 5 }
 0x1cd   : > { %v1864_v42 = vpop.f32.mrb[66].mxu0  ;;  %v1935_v1 = vpop.f32.mrb[66].mxu1  ;;  %9200 = vst [vmem:[#allocation68_spill] sm:$0xff] %v6878_v26  ;;  %9201 = vst [vmem:[#allocation69_spill] sm:$0xff] %v6881_v37  ;;  %v3551_v47 = vrot.slane %v3507_v57, 3  ;;  %v3814_v9 = vrot.slane %v6875_v41, 4 }
 0x1ce   : > { %v1866_v15 = vpop.f32.mrb[67].mxu0  ;;  %v1937_v35 = vpop.f32.mrb[67].mxu1  ;;  %9202 = vst [vmem:[#allocation70_spill] sm:$0xff] %v6888_v39  ;;  %4078 = vrot.lane.b32.xlu0 %v4053_v58, %s5734_s10  ;;  %9203 = vst [vmem:[#allocation71_spill] sm:$0xff] %v6892_v49  ;;  %v2272_v12 = vrot.slane %v1860_v46, 7  ;;  %v3812_v3 = vrot.slane %v3768_v13, 4 }
 0x1cf   : > { %v2273_v63 = vrot.slane %v1862_v34, 7  ;;  %v2355_v20 = vrot.slane %v1864_v42, 6  ;;  %v2756_v38 = vrot.slane %v1864_v42, 7  ;;  %3578 = vrot.lane.b32.xlu1 %v3551_v47, %s5732_s8  ;;  %v9204_v52 = vld [vmem:[#allocation42_spill] sm:$0xff]  ;;  %v9205_v32 = vld [vmem:[#allocation35_spill] sm:$0xff]  ;;  %v2356_v58 = vrot.slane %v1866_v15, 6 }
 0x1d0   : > { %v2314_v24 = vadd.f32 %v2272_v12, %v9204_v52  ;;  %v6899_v55 = vadd.f32 %v9205_v32, %v6673_v6  ;;  %v2757_v7 = vrot.slane %v1866_v15, 7  ;;  %v2274_v32 = vrot.slane %v6855_v27, 7 }
 0x1d1   : > { %v2315_v23 = vadd.f32 %v2273_v63, %v1860_v46  ;;  %v6903_v41 = vadd.f32 %v2355_v20, %v6711_v45  ;;  %v6906_v57 = vadd.f32 %v2756_v38, %v9204_v52  ;;  %v6909_v42 = vadd.f32 %v6720_v19, %v2355_v20  ;;  %v9206_v45 = vld [vmem:[#allocation18_spill] sm:$0xff] }
 0x1d2   : > { %4082 = vrot.lane.b32.xlu0 %v4055_v18, %s5734_s10  ;;  %v2398_v47 = vadd.f32 %v2356_v58, %v2314_v24  ;;  %v2801_v43 = vadd.f32 %v2757_v7, %v1860_v46  ;;  %v2275_v15 = vrot.slane %v6866_v10, 7  ;;  %v2866_v38 = vadd.f32 %v9206_v45, %v6878_v26 }
 0x1d3   : > { %v1870_v13 = vpop.f32.mrb[68].mxu0  ;;  %v1941_v12 = vpop.f32.mrb[68].mxu1  ;;  %v2825_v63 = vadd.f32 %v6906_v57, %v2356_v58  ;;  %v2357_v52 = vrot.slane %v1935_v1, 6  ;;  %v2758_v59 = vrot.slane %v1935_v1, 7  ;;  %3837 = vrot.lane.b32.xlu1 %v3812_v3, %s5733_s9  ;;  %v2316_v46 = vadd.f32 %v2274_v32, %v1862_v34 }
 0x1d4   : > { %v1943_v6 = vpop.f32.mrb[69].mxu1  ;;  %v6913_v18 = vpop.f32.mrb[69].mxu0  ;;  %v6924_v24 = vadd.f32 %v2275_v15, %v6855_v27  ;;  %v2358_v7 = vrot.slane %v1937_v35, 6  ;;  %v2759_v11 = vrot.slane %v1937_v35, 7  ;;  %v2891_v1 = vadd.f32 %v2866_v38, %v6881_v37 }
 0x1d5   : > { %v6918_v20 = vpop.f32.mrb[70].mxu0  ;;  %v6920_v8 = vpop.f32.mrb[70].mxu1  ;;  %v2399_v45 = vadd.f32 %v2357_v52, %v2315_v23  ;;  %v2802_v49 = vadd.f32 %v2758_v59, %v1862_v34  ;;  %v2826_v44 = vadd.f32 %v2801_v43, %v2357_v52  ;;  %v2438_v32 = vrot.slane %v1870_v13, 5 }
 0x1d6   : > { %9207 = vst [vmem:[#allocation42_spill] sm:$0xff] %v6924_v24  ;;  %v6926_v48 = vpop.f32.mrb[71].mxu0  ;;  %v6928_v58 = vpop.f32.mrb[71].mxu1  ;;  %4318 = vrot.lane.b32.xlu0 %v4293_v40, %s5735_s11  ;;  %v6932_v2 = vadd.f32 %v2358_v7, %v2316_v46  ;;  %v6935_v3 = vadd.f32 %v2759_v11, %v6855_v27  ;;  %v3099_v15 = vrot.slane %v1870_v13, 6  ;;  %v2916_v35 = vadd.f32 %v2891_v1, %v6888_v39  ;;  %v9211_v27 = vld [vmem:[#allocation26_spill] sm:$0xff] }
 0x1d7   : > { %9208 = vst [vmem:[#allocation35_spill] sm:$0xff] %v6928_v58  ;;  %v6938_v36 = vadd.f32 %v2802_v49, %v2358_v7  ;;  %v2440_v24 = vrot.slane %v1941_v12, 5  ;;  %v3101_v16 = vrot.slane %v1941_v12, 6  ;;  %3841 = vrot.lane.b32.xlu1 %v3814_v9, %s5733_s9  ;;  %v6942_v40 = vadd.f32 %v2438_v32, %v6718_v0 }
 0x1d8   : > { %v6945_v34 = vadd.f32 %v6727_v51, %v2438_v32  ;;  %v3143_v59 = vadd.f32 %v3099_v15, %v6720_v19  ;;  %v6949_v11 = vadd.f32 %v6757_v17, %v2438_v32  ;;  %v3464_v23 = vadd.f32 %v9211_v27, %v6878_v26 }
 0x1d9   : > { %9209 = vst [vmem:[#allocation18_spill] sm:$0xff] %v6942_v40  ;;  %v9212_v13 = vrot.slane %v6663_v31, 6  ;;  %v6956_v12 = vadd.f32 %v2440_v24, %v2398_v47  ;;  %v6958_v9 = vadd.f32 %v2825_v63, %v2440_v24  ;;  %v3145_v0 = vadd.f32 %v3101_v16, %v2801_v43  ;;  %v9216_v47 = vld [vmem:[#allocation19_spill] sm:$0xff] }
 0x1da   : > { %9210 = vst [vmem:[#allocation72_spill] sm:$0xff] %v6949_v11  ;;  %v4054_v19 = vrot.slane %v6899_v55, 5  ;;  %v2441_v52 = vrot.slane %v1943_v6, 5  ;;  %v3102_v46 = vrot.slane %v1943_v6, 6  ;;  %v2439_v7 = vrot.slane %v6913_v18, 5 }
 0x1db   : > { %4322 = vrot.lane.b32.xlu0 %v9212_v13, %s5735_s11  ;;  %9213 = vst [vmem:[#allocation26_spill] sm:$0xff] %v6956_v12  ;;  %9214 = vst [vmem:[#allocation73_spill] sm:$0xff] %v6958_v9  ;;  %v6960_v38 = vpop.f32.mrb[72].mxu0  ;;  %v6962_v51 = vpop.f32.mrb[72].mxu1  ;;  %v2960_v31 = vrot.slane %v2916_v35, 1  ;;  %v3179_v63 = vadd.f32 %v9216_v47, %v6878_v26  ;;  %v3100_v16 = vrot.slane %v6913_v18, 6 }
 0x1dc   : > { %v6966_v1 = vpop.f32.mrb[73].mxu1  ;;  %v6968_v32 = vpop.f32.mrb[73].mxu0  ;;  %v3405_v43 = vrot.slane %v6918_v20, 5  ;;  %4080 = vrot.lane.b32.xlu1 %v4054_v19, %s5734_s10  ;;  %v6979_v6 = vadd.f32 %v2441_v52, %v2399_v45  ;;  %v6981_v55 = vadd.f32 %v2826_v44, %v2441_v52  ;;  %v6983_v13 = vadd.f32 %v3102_v46, %v2802_v49  ;;  %v9222_v49 = vld [vmem:[#allocation36_spill] sm:$0xff]  ;;  %v9230_v26 = vld [vmem:[#allocation37_spill] sm:$0xff] }
 0x1dd   : > { %9215 = vst [vmem:[#allocation74_spill] sm:$0xff] %v6966_v1  ;;  %v6974_v15 = vpop.f32.mrb[74].mxu0  ;;  %v6976_v27 = vpop.f32.mrb[74].mxu1  ;;  %v6985_v35 = vadd.f32 %v3145_v0, %v2441_v52  ;;  %v3201_v18 = vadd.f32 %v3179_v63, %v6881_v37  ;;  %v6994_v40 = vadd.f32 %v2439_v7, %v6903_v41  ;;  %v6997_v45 = vadd.f32 %v6909_v42, %v2439_v7 }
 0x1de   : > { %9217 = vst [vmem:[#allocation19_spill] sm:$0xff] %v6979_v6  ;;  %9218 = vst [vmem:[#allocation75_spill] sm:$0xff] %v6981_v55  ;;  %v6987_v12 = vpop.f32.mrb[75].mxu0  ;;  %v6989_v47 = vpop.f32.mrb[75].mxu1  ;;  %v3144_v44 = vadd.f32 %v3100_v16, %v6906_v57  ;;  %v4292_v19 = vrot.slane %v9222_v49, 6  ;;  %v7001_v52 = vadd.f32 %v3143_v59, %v2439_v7  ;;  %v7004_v46 = vadd.f32 %v3405_v43, %v6757_v17 }
 0x1df   : > { %9219 = vst [vmem:[#allocation76_spill] sm:$0xff] %v6985_v35  ;;  %2988 = vrot.lane.b32.xlu0 %v2960_v31, %s5731_s7  ;;  %9220 = vst [vmem:[#allocation77_spill] sm:$0xff] %v6994_v40  ;;  %v3407_v6 = vrot.slane %v6920_v8, 5  ;;  %v3223_v31 = vadd.f32 %v3201_v18, %v6888_v39  ;;  %v3406_v41 = vrot.slane %v6926_v48, 5  ;;  %v9226_v40 = vld [vmem:[#allocation14_spill] sm:$0xff]  ;;  %v3408_v7 = vrot.slane %v6928_v58, 5 }
 0x1e0   : > { %9221 = vst [vmem:[#allocation78_spill] sm:$0xff] %v6997_v45  ;;  %9223 = vst [vmem:[#allocation36_spill] sm:$0xff] %v7001_v52  ;;  %v7008_v63 = vadd.f32 %v3144_v44, %v2440_v24  ;;  %v7012_v42 = vrot.slane %v9226_v40, 4  ;;  %4316 = vrot.lane.b32.xlu1 %v4292_v19, %s5735_s11  ;;  %v3486_v17 = vadd.f32 %v3464_v23, %v6881_v37  ;;  %v3689_v18 = vrot.slane %v6960_v38, 4  ;;  %v9238_v35 = vld [vmem:[#allocation16_spill] sm:$0xff] }
 0x1e1   : > { %9224 = vst [vmem:[#allocation79_spill] sm:$0xff] %v7004_v46  ;;  %v7015_v57 = vadd.f32 %v3407_v6, %v3144_v44  ;;  %v3267_v16 = vrot.slane %v3223_v31, 2  ;;  %v7019_v43 = vadd.f32 %v3406_v41, %v3143_v59  ;;  %v4012_v24 = vadd.f32 %v6649_v56, %v6888_v39 }
 0x1e2   : > { %9225 = vst [vmem:[#allocation80_spill] sm:$0xff] %v7008_v63  ;;  %9227 = vst [vmem:[#allocation14_spill] sm:$0xff] %v7012_v42  ;;  %v4294_v19 = vrot.slane %v9230_v26, 6  ;;  %v7030_v6 = vrot.slane %v6760_v21, 3  ;;  %v7032_v44 = vadd.f32 %v3408_v7, %v3145_v0  ;;  %v3508_v23 = vadd.f32 %v3486_v17, %v6888_v39  ;;  %v9237_v63 = vld [vmem:[#allocation29_spill] sm:$0xff] }
 0x1e3   : > { %9228 = vst [vmem:[#allocation81_spill] sm:$0xff] %v7015_v57  ;;  %9229 = vst [vmem:[#allocation82_spill] sm:$0xff] %v7019_v43  ;;  %v7024_v49 = vpop.f32.mrb[76].mxu0  ;;  %v7026_v40 = vpop.f32.mrb[76].mxu1  ;;  %v7040_v56 = vrot.slane %v6722_v33, 4  ;;  %v7043_v41 = vrot.slane %v6729_v60, 4  ;;  %3295 = vrot.lane.b32.xlu0 %v3267_v16, %s5730_s6  ;;  %v7047_v26 = vadd.f32 %v3689_v18, %v6802_v62  ;;  %v3749_v60 = vadd.f32 %v9237_v63, %v6881_v37 }
 0x1e4   : > { %9231 = vst [vmem:[#allocation37_spill] sm:$0xff] %v7030_v6  ;;  %9232 = vst [vmem:[#allocation83_spill] sm:$0xff] %v7032_v44  ;;  %v7035_v59 = vpop.f32.mrb[77].mxu1  ;;  %v7037_v31 = vpop.f32.mrb[77].mxu0  ;;  %v3691_v21 = vrot.slane %v6962_v51, 4  ;;  %v7051_v17 = vrot.slane %v6787_v29, 2  ;;  %4320 = vrot.lane.b32.xlu1 %v4294_v19, %s5735_s11  ;;  %v2867_v16 = vadd.f32 %v9238_v35, %v7012_v42 }
 0x1e5   : > { %9233 = vst [vmem:[#allocation84_spill] sm:$0xff] %v7040_v56  ;;  %9234 = vst [vmem:[#allocation85_spill] sm:$0xff] %v7043_v41  ;;  %v1894_v0 = vpop.f32.mrb[78].mxu0  ;;  %v1965_v7 = vpop.f32.mrb[78].mxu1  ;;  %v3692_v33 = vrot.slane %v6966_v1, 4  ;;  %v4056_v9 = vrot.slane %v4012_v24, 5  ;;  %v3771_v19 = vadd.f32 %v3749_v60, %v6888_v39 }
 0x1e6   : > { %9235 = vst [vmem:[#allocation86_spill] sm:$0xff] %v7047_v26  ;;  %9236 = vst [vmem:[#allocation87_spill] sm:$0xff] %v7051_v17  ;;  %v1895_v55 = vpop.f32.mrb[79].mxu0  ;;  %v1966_v18 = vpop.f32.mrb[79].mxu1  ;;  %v3552_v52 = vrot.slane %v3508_v23, 3  ;;  %v7060_v0 = vadd.f32 %v3691_v21, %v7019_v43  ;;  %v3690_v29 = vrot.slane %v6968_v32, 4  ;;  %v2892_v45 = vadd.f32 %v2867_v16, %v7030_v6 }
 0x1e7   : > { %v7064_v7 = vadd.f32 %v3692_v33, %v7015_v57  ;;  %v3951_v63 = vrot.slane %v6974_v15, 3  ;;  %v7070_v35 = vrot.slane %v6762_v30, 3  ;;  %v7073_v55 = vrot.slane %v6771_v61, 3  ;;  %v9250_v37 = vld [vmem:[#allocation46_spill] sm:$0xff] }
 0x1e8   : > { %9239 = vst [vmem:[#allocation29_spill] sm:$0xff] %v7060_v0  ;;  %3580 = vrot.lane.b32.xlu0 %v3552_v52, %s5732_s8  ;;  %v7077_v24 = vadd.f32 %v3690_v29, %v7004_v46  ;;  %v3953_v23 = vrot.slane %v6976_v27, 3  ;;  %v7081_v21 = vrot.slane %v6782_v53, 2  ;;  %4084 = vrot.lane.b32.xlu1 %v4056_v9, %s5734_s10  ;;  %v2917_v33 = vadd.f32 %v2892_v45, %v7051_v17 }
 0x1e9   : > { %9240 = vst [vmem:[#allocation16_spill] sm:$0xff] %v7064_v7  ;;  %9241 = vst [vmem:[#allocation88_spill] sm:$0xff] %v7070_v35  ;;  %v7086_v30 = vadd.f32 %v3951_v63, %v6822_v25  ;;  %v3952_v61 = vrot.slane %v6987_v12, 3  ;;  %v7090_v60 = vrot.slane %v6789_v22, 2  ;;  %v3815_v52 = vrot.slane %v3771_v19, 4  ;;  %v9249_v63 = vld [vmem:[#allocation22_spill] sm:$0xff] }
 0x1ea   : > { %9242 = vst [vmem:[#allocation89_spill] sm:$0xff] %v7073_v55  ;;  %9243 = vst [vmem:[#allocation90_spill] sm:$0xff] %v7077_v24  ;;  %v7093_v16 = vadd.f32 %v3953_v23, %v7077_v24  ;;  %v3954_v18 = vrot.slane %v6989_v47, 3  ;;  %v2961_v9 = vrot.slane %v2917_v33, 1  ;;  %v2868_v39 = vadd.f32 %v9249_v63, %v7040_v56 }
 0x1eb   : > { %9244 = vst [vmem:[#allocation91_spill] sm:$0xff] %v7081_v21  ;;  %9245 = vst [vmem:[#allocation92_spill] sm:$0xff] %v7086_v30  ;;  %v7096_v53 = vpop.f32.mrb[80].mxu0  ;;  %v2073_v29 = vpop.f32.mrb[80].mxu1  ;;  %v7099_v45 = vadd.f32 %v3952_v61, %v7047_v26  ;;  %v2869_v22 = vadd.f32 %v9250_v37, %v7043_v41  ;;  %v4214_v33 = vrot.slane %v7026_v40, 2  ;;  %v4215_v61 = vrot.slane %v7035_v59, 2 }
 0x1ec   : > { %9246 = vst [vmem:[#allocation93_spill] sm:$0xff] %v7090_v60  ;;  %9247 = vst [vmem:[#allocation94_spill] sm:$0xff] %v7093_v16  ;;  %v7105_v57 = vpop.f32.mrb[81].mxu0  ;;  %v2074_v19 = vpop.f32.mrb[81].mxu1  ;;  %3843 = vrot.lane.b32.xlu0 %v3815_v52, %s5733_s9  ;;  %v7109_v23 = vadd.f32 %v3954_v18, %v7060_v0  ;;  %v4212_v29 = vrot.slane %v7024_v49, 2  ;;  %2990 = vrot.lane.b32.xlu1 %v2961_v9, %s5731_s7  ;;  %v2893_v37 = vadd.f32 %v2868_v39, %v7073_v55  ;;  %v9252_v52 = vld [vmem:[#allocation23_spill] sm:$0xff] }
 0x1ed   : > { %9248 = vst [vmem:[#allocation95_spill] sm:$0xff] %v7099_v45  ;;  %v7114_v25 = vpop.f32.mrb[82].mxu0  ;;  %v7116_v63 = vpop.f32.mrb[82].mxu1  ;;  %v2894_v19 = vadd.f32 %v2869_v22, %v7070_v35  ;;  %v3181_v18 = vadd.f32 %v9252_v52, %v7040_v56  ;;  %v9253_v0 = vld [vmem:[#allocation20_spill] sm:$0xff]  ;;  %v7133_v26 = vadd.f32 %v4214_v33, %v7099_v45  ;;  %v7136_v39 = vadd.f32 %v4215_v61, %v7093_v16 }
 0x1ee   : > { %9251 = vst [vmem:[#allocation22_spill] sm:$0xff] %v7109_v23  ;;  %v3180_v49 = vadd.f32 %v9253_v0, %v7012_v42  ;;  %v7125_v46 = vpop.f32.mrb[83].mxu0  ;;  %v7127_v40 = vpop.f32.mrb[83].mxu1  ;;  %v7130_v59 = vadd.f32 %v4212_v29, %v6853_v14  ;;  %v4213_v9 = vrot.slane %v7037_v31, 2  ;;  %v2918_v22 = vadd.f32 %v2893_v37, %v7081_v21 }
 0x1ef   : > { %9255 = vst [vmem:[#allocation23_spill] sm:$0xff] %v7133_v26  ;;  %9256 = vst [vmem:[#allocation20_spill] sm:$0xff] %v7136_v39  ;;  %v2919_v52 = vadd.f32 %v2894_v19, %v7090_v60  ;;  %v3203_v0 = vadd.f32 %v3181_v18, %v7073_v55  ;;  %v3466_v31 = vadd.f32 %v6605_v54, %v7040_v56  ;;  %v2277_v16 = vrot.slane %v7105_v57, 7  ;;  %v9261_v39 = vld [vmem:[#allocation42_spill] sm:$0xff] }
 0x1f0   : > { %9254 = vst [vmem:[#allocation46_spill] sm:$0xff] %v7130_v59  ;;  %v3202_v24 = vadd.f32 %v3180_v49, %v7030_v6  ;;  %v7144_v11 = vadd.f32 %v4213_v9, %v7086_v30  ;;  %v2962_v29 = vrot.slane %v2918_v22, 1  ;;  %v3182_v37 = vadd.f32 %v6740_v4, %v7043_v41  ;;  %v9258_v9 = vld [vmem:[#allocation24_spill] sm:$0xff] }
 0x1f1   : > { %v2963_v59 = vrot.slane %v2919_v52, 1  ;;  %v3225_v33 = vadd.f32 %v3203_v0, %v7081_v21  ;;  %v3751_v19 = vadd.f32 %v6808_v50, %v7073_v55  ;;  %v3465_v22 = vadd.f32 %v9258_v9, %v7012_v42 }
 0x1f2   : > { %9257 = vst [vmem:[#allocation96_spill] sm:$0xff] %v7144_v11  ;;  %v3224_v61 = vadd.f32 %v3202_v24, %v7051_v17  ;;  %2992 = vrot.lane.b32.xlu0 %v2962_v29, %s5731_s7  ;;  %v2276_v24 = vrot.slane %v7096_v53, 7  ;;  %v3488_v50 = vadd.f32 %v3466_v31, %v7073_v55  ;;  %v3204_v56 = vadd.f32 %v3182_v37, %v7070_v35 }
 0x1f3   : > { %v2012_v18 = vpop.f32.mrb[84].mxu0  ;;  %v7154_v49 = vpop.f32.mrb[84].mxu1  ;;  %2994 = vrot.lane.b32.xlu1 %v2963_v59, %s5731_s7  ;;  %v3269_v4 = vrot.slane %v3225_v33, 2  ;;  %v3487_v59 = vadd.f32 %v3465_v22, %v7030_v6  ;;  %v3467_v42 = vadd.f32 %v6777_v28, %v7043_v41  ;;  %v3773_v22 = vadd.f32 %v3751_v19, %v7081_v21  ;;  %v9260_v28 = vld [vmem:[#allocation62_spill] sm:$0xff] }
 0x1f4   : > { %v7161_v52 = vpop.f32.mrb[85].mxu0  ;;  %v7163_v54 = vpop.f32.mrb[85].mxu1  ;;  %v3268_v0 = vrot.slane %v3224_v61, 2  ;;  %v2318_v9 = vadd.f32 %v2276_v24, %v6866_v10  ;;  %v7182_v61 = vadd.f32 %v6827_v5, %v7070_v35  ;;  %v3510_v31 = vadd.f32 %v3488_v50, %v7081_v21 }
 0x1f5   : > { %v7167_v45 = vpop.f32.mrb[86].mxu0  ;;  %v7169_v29 = vpop.f32.mrb[86].mxu1  ;;  %v3226_v37 = vadd.f32 %v3204_v56, %v7090_v60  ;;  %v7191_v24 = vadd.f32 %v9260_v28, %v7051_v17  ;;  %v3489_v41 = vadd.f32 %v3467_v42, %v7070_v35  ;;  %v2319_v55 = vadd.f32 %v2277_v16, %v7096_v53 }
 0x1f6   : > { %9259 = vst [vmem:[#allocation24_spill] sm:$0xff] %v7167_v45  ;;  %v7176_v30 = vpop.f32.mrb[87].mxu0  ;;  %v7178_v33 = vpop.f32.mrb[87].mxu1  ;;  %3299 = vrot.lane.b32.xlu0 %v3269_v4, %s5730_s6  ;;  %v2359_v5 = vrot.slane %v7114_v25, 6  ;;  %v3554_v11 = vrot.slane %v3510_v31, 3  ;;  %v3509_v50 = vadd.f32 %v3487_v59, %v7051_v17  ;;  %v2760_v56 = vrot.slane %v7114_v25, 7 }
 0x1f7   : > { %3297 = vrot.lane.b32.xlu1 %v3268_v0, %s5730_s6  ;;  %v2360_v19 = vrot.slane %v7125_v46, 6  ;;  %v3270_v4 = vrot.slane %v3226_v37, 2  ;;  %v3511_v0 = vadd.f32 %v3489_v41, %v7090_v60  ;;  %v2761_v16 = vrot.slane %v7125_v46, 7 }
 0x1f8   : > { %v2401_v26 = vadd.f32 %v2359_v5, %v9261_v39  ;;  %v2828_v28 = vadd.f32 %v6935_v3, %v2359_v5  ;;  %v2804_v42 = vadd.f32 %v2760_v56, %v6866_v10  ;;  %v2442_v1 = vrot.slane %v2012_v18, 5  ;;  %v9264_v39 = vld [vmem:[#allocation63_spill] sm:$0xff]  ;;  %v9265_v10 = vld [vmem:[#allocation32_spill] sm:$0xff] }
 0x1f9   : > { %v2402_v35 = vadd.f32 %v2360_v19, %v2318_v9  ;;  %v3817_v25 = vrot.slane %v3773_v22, 4  ;;  %v3103_v41 = vrot.slane %v2012_v18, 6  ;;  %v7212_v37 = vadd.f32 %v9264_v39, %v7090_v60 }
 0x1fa   : > { %3584 = vrot.lane.b32.xlu0 %v3554_v11, %s5732_s8  ;;  %v3750_v9 = vadd.f32 %v9265_v10, %v7030_v6  ;;  %v2805_v56 = vadd.f32 %v2761_v16, %v7096_v53  ;;  %v2829_v62 = vadd.f32 %v2804_v42, %v2360_v19  ;;  %v7222_v11 = vadd.f32 %v2442_v1, %v6932_v2 }
 0x1fb   : > { %v7204_v31 = vpop.f32.mrb[88].mxu1  ;;  %v7206_v59 = vpop.f32.mrb[88].mxu0  ;;  %3301 = vrot.lane.b32.xlu1 %v3270_v4, %s5730_s6  ;;  %v7225_v22 = vadd.f32 %v6938_v36, %v2442_v1  ;;  %v3553_v39 = vrot.slane %v3509_v50, 3  ;;  %v4057_v10 = vrot.slane %v7191_v24, 5  ;;  %v3147_v6 = vadd.f32 %v3103_v41, %v6935_v3 }
 0x1fc   : > { %9262 = vst [vmem:[#allocation62_spill] sm:$0xff] %v7204_v31  ;;  %9263 = vst [vmem:[#allocation42_spill] sm:$0xff] %v7206_v59  ;;  %v7216_v5 = vpop.permute.xlu1 %3285  ;;  %v7218_v46 = vpop.f32.mrb[89].mxu1  ;;  %v7234_v43 = vadd.f32 %v6983_v13, %v2442_v1  ;;  %v3555_v2 = vrot.slane %v3511_v0, 3  ;;  %v2443_v36 = vrot.slane %v7161_v52, 5  ;;  %v3104_v16 = vrot.slane %v7161_v52, 6 }
 0x1fd   : > { %9266 = vst [vmem:[#allocation63_spill] sm:$0xff] %v7218_v46  ;;  %9267 = vst [vmem:[#allocation32_spill] sm:$0xff] %v7222_v11  ;;  %v7227_v18 = vpop.permute.xlu0 %2976  ;;  %v7229_v4 = vpop.f32.mrb[89].mxu0  ;;  %v3409_v11 = vrot.slane %v7167_v45, 5  ;;  %v4059_v3 = vrot.slane %v7212_v37, 5  ;;  %v3772_v1 = vadd.f32 %v3750_v9, %v7051_v17  ;;  %v2361_v24 = vrot.slane %v7116_v63, 6 }
 0x1fe   : > { %9268 = vst [vmem:[#allocation97_spill] sm:$0xff] %v7225_v22  ;;  %9269 = vst [vmem:[#allocation98_spill] sm:$0xff] %v7229_v4  ;;  %v7236_v53 = vpop.f32.mrb[90].mxu0  ;;  %v7238_v19 = vpop.f32.mrb[90].mxu1  ;;  %3847 = vrot.lane.b32.xlu0 %v3817_v25, %s5733_s9  ;;  %v2762_v0 = vrot.slane %v7116_v63, 7  ;;  %v7253_v41 = vadd.f32 %v2443_v36, %v2401_v26  ;;  %v7255_v52 = vadd.f32 %v2828_v28, %v2443_v36  ;;  %v3410_v17 = vrot.slane %v7176_v30, 5 }
 0x1ff   : > { %9270 = vst [vmem:[#allocation99_spill] sm:$0xff] %v7234_v43  ;;  %v7243_v22 = vpop.f32.mrb[91].mxu0  ;;  %v7245_v50 = vpop.f32.mrb[91].mxu1  ;;  %3582 = vrot.lane.b32.xlu1 %v3553_v39, %s5732_s8  ;;  %v3148_v43 = vadd.f32 %v3104_v16, %v2804_v42  ;;  %v7257_v45 = vadd.f32 %v3147_v6, %v2443_v36  ;;  %v7262_v25 = vadd.f32 %v3409_v11, %v6983_v13  ;;  %v2808_v63 = vrot.slane %v7127_v40, 6 }
 0x200   : > { %9271 = vst [vmem:[#allocation100_spill] sm:$0xff] %v7253_v41  ;;  %9272 = vst [vmem:[#allocation101_spill] sm:$0xff] %v7255_v52  ;;  %v2403_v39 = vadd.f32 %v2361_v24, %v2319_v55  ;;  %v2806_v37 = vadd.f32 %v2762_v0, %v7105_v57  ;;  %v2830_v9 = vadd.f32 %v2805_v56, %v2361_v24  ;;  %v2444_v26 = vrot.slane %v7154_v49, 5  ;;  %v7279_v11 = vpop.permute.xlu1 %3570 }
 0x201   : > { %9273 = vst [vmem:[#allocation102_spill] sm:$0xff] %v7257_v45  ;;  %v7259_v58 = vpop.permute.xlu0 %2978  ;;  %9274 = vst [vmem:[#allocation103_spill] sm:$0xff] %v7262_v25  ;;  %v3105_v28 = vrot.slane %v7154_v49, 6  ;;  %v3816_v13 = vrot.slane %v3772_v1, 4  ;;  %v2445_v57 = vrot.slane %v7163_v54, 5  ;;  %v3106_v55 = vrot.slane %v7163_v54, 6 }
 0x202   : > { %4086 = vrot.lane.b32.xlu0 %v4057_v10, %s5734_s10  ;;  %v3774_v40 = vadd.f32 %v7182_v61, %v7090_v60  ;;  %9275 = vst [vmem:[#allocation104_spill] sm:$0xff] %v7279_v11  ;;  %v7283_v49 = vadd.f32 %v3410_v17, %v3147_v6  ;;  %v7285_v24 = vadd.f32 %v2808_v63, %v2806_v37 }
 0x203   : > { %v7269_v42 = vpop.f32.mrb[92].mxu1  ;;  %v7271_v36 = vpop.f32.mrb[92].mxu0  ;;  %3586 = vrot.lane.b32.xlu1 %v3555_v2, %s5732_s8  ;;  %v7287_v0 = vadd.f32 %v2444_v26, %v2402_v35  ;;  %v7289_v10 = vadd.f32 %v2829_v62, %v2444_v26  ;;  %v3149_v54 = vadd.f32 %v3105_v28, %v2805_v56  ;;  %v7295_v41 = vadd.f32 %v3148_v43, %v2444_v26 }
 0x204   : > { %v7281_v16 = vpop.f32.mrb[93].mxu1  ;;  %9276 = vst [vmem:[#allocation105_spill] sm:$0xff] %v7283_v49  ;;  %v7293_v1 = vpop.f32.mrb[93].mxu0  ;;  %v7297_v61 = vadd.f32 %v2445_v57, %v2403_v39  ;;  %v7299_v60 = vadd.f32 %v2830_v9, %v2445_v57  ;;  %v7301_v17 = vadd.f32 %v3106_v55, %v2806_v37  ;;  %v3411_v56 = vrot.slane %v7169_v29, 5  ;;  %v9285_v37 = vld [vmem:[#allocation71_spill] sm:$0xff] }
 0x205   : > { %9277 = vst [vmem:[#allocation106_spill] sm:$0xff] %v7287_v0  ;;  %9278 = vst [vmem:[#allocation107_spill] sm:$0xff] %v7289_v10  ;;  %v7291_v2 = vpop.permute.xlu0 %3283  ;;  %v2036_v45 = vpop.f32.mrb[94].mxu0  ;;  %v7305_v62 = vadd.f32 %v3149_v54, %v2445_v57  ;;  %v3412_v26 = vrot.slane %v7178_v33, 5  ;;  %v3695_v39 = vrot.slane %v7204_v31, 4  ;;  %v4297_v55 = vrot.slane %v9285_v37, 6 }
 0x206   : > { %9279 = vst [vmem:[#allocation108_spill] sm:$0xff] %v7295_v41  ;;  %9280 = vst [vmem:[#allocation109_spill] sm:$0xff] %v7297_v61  ;;  %v2105_v6 = vpop.f32.mrb[94].mxu1  ;;  %v2037_v63 = vpop.f32.mrb[95].mxu0  ;;  %4090 = vrot.lane.b32.xlu0 %v4059_v3, %s5734_s10  ;;  %v9283_v45 = vld [vmem:[#allocation43_spill] sm:$0xff]  ;;  %v9287_v61 = vld [vmem:[#allocation58_spill] sm:$0xff] }
 0x207   : > { %9281 = vst [vmem:[#allocation110_spill] sm:$0xff] %v7299_v60  ;;  %v2106_v35 = vpop.f32.mrb[95].mxu1  ;;  %3845 = vrot.lane.b32.xlu1 %v3816_v13, %s5733_s9  ;;  %9282 = vst [vmem:[#allocation111_spill] sm:$0xff] %v7305_v62  ;;  %v7313_v28 = vrot.slane %v9283_v45, 4  ;;  %v3818_v6 = vrot.slane %v3774_v40, 4  ;;  %v7316_v63 = vadd.f32 %v3411_v56, %v3148_v43  ;;  %v7318_v3 = vadd.f32 %v3412_v26, %v3149_v54  ;;  %v9288_v62 = vld [vmem:[#allocation44_spill] sm:$0xff]  ;;  %v7336_v40 = vpop.permute.xlu1 %3833 }
 0x208   : > { %v7321_v13 = vadd.f32 %v3695_v39, %v7283_v49  ;;  %v7328_v60 = vrot.slane %v9288_v62, 4  ;;  %v9290_v45 = vld [vmem:[#allocation54_spill] sm:$0xff]  ;;  %v3693_v43 = vrot.slane %v7206_v59, 4  ;;  %v9293_v56 = vld [vmem:[#allocation67_spill] sm:$0xff]  ;;  %v9294_v39 = vld [vmem:[#allocation64_spill] sm:$0xff]  ;;  %v3694_v37 = vrot.slane %v7229_v4, 4 }
 0x209   : > { %v7310_v9 = vpop.permute.xlu0 %3568  ;;  %9284 = vst [vmem:[#allocation43_spill] sm:$0xff] %v7313_v28  ;;  %v7325_v0 = vadd.f32 %v9287_v61, %v7313_v28  ;;  %v7331_v41 = vrot.slane %v9290_v45, 3  ;;  %9292 = vst [vmem:[#allocation54_spill] sm:$0xff] %v7336_v40  ;;  %v4299_v26 = vrot.slane %v9293_v56, 6  ;;  %v3696_v61 = vrot.slane %v7218_v46, 4  ;;  %v9298_v46 = vld [vmem:[#allocation65_spill] sm:$0xff] }
 0x20a   : > { %9286 = vst [vmem:[#allocation71_spill] sm:$0xff] %v7321_v13  ;;  %9289 = vst [vmem:[#allocation58_spill] sm:$0xff] %v7328_v60  ;;  %4326 = vrot.lane.b32.xlu0 %v4297_v55, %s5735_s11  ;;  %v4014_v62 = vadd.f32 %v9294_v39, %v7081_v21  ;;  %v9296_v55 = vld [vmem:[#allocation10_spill] sm:$0xff]  ;;  %v7348_v59 = vadd.f32 %v3693_v43, %v7032_v44  ;;  %v4296_v10 = vrot.slane %v9298_v46, 6 }
 0x20b   : > { %v2142_v57 = vpop.f32.mrb[96].mxu0  ;;  %v2208_v35 = vpop.f32.mrb[96].mxu1  ;;  %9291 = vst [vmem:[#allocation44_spill] sm:$0xff] %v7331_v41  ;;  %3849 = vrot.lane.b32.xlu1 %v3818_v6, %s5733_s9  ;;  %v9295_v6 = vld [vmem:[#allocation6_spill] sm:$0xff]  ;;  %v7353_v39 = vadd.f32 %v3696_v61, %v7316_v63  ;;  %v7356_v4 = vadd.f32 %v3694_v37, %v7262_v25  ;;  %v7366_v61 = vrot.slane %v6974_v15, 2  ;;  %v9305_v15 = vld [vmem:[#allocation53_spill] sm:$0xff] }
 0x20c   : > { %v2143_v54 = vpop.f32.mrb[97].mxu0  ;;  %v2635_v45 = vadd.f32 %v9296_v55, %v9295_v6  ;;  %9297 = vst [vmem:[#allocation67_spill] sm:$0xff] %v7348_v59  ;;  %v2209_v31 = vpop.f32.mrb[97].mxu1  ;;  %v4058_v21 = vrot.slane %v4014_v62, 5  ;;  %v9300_v49 = vld [vmem:[#allocation66_spill] sm:$0xff]  ;;  %v3957_v6 = vrot.slane %v7238_v19, 3  ;;  %v3021_v62 = vsel %vm3020_vm1, %v7227_v18, %v7259_v58 }
 0x20d   : > { %v7343_v57 = vpop.permute.xlu0 %3831  ;;  %v2144_v35 = vpop.f32.mrb[98].mxu0  ;;  %v3955_v54 = vrot.slane %v7236_v53, 3  ;;  %9299 = vst [vmem:[#allocation64_spill] sm:$0xff] %v7353_v39  ;;  %v4298_v52 = vrot.slane %v9300_v49, 6  ;;  %v3956_v31 = vrot.slane %v7243_v22, 3  ;;  %9302 = vst [vmem:[#allocation10_spill] sm:$0xff] %v7366_v61 }
 0x20e   : > { %v2145_v56 = vpop.f32.mrb[99].mxu0  ;;  %v2210_v35 = vpop.f32.mrb[98].mxu1  ;;  %4330 = vrot.lane.b32.xlu0 %v4299_v26, %s5735_s11  ;;  %v3958_v49 = vrot.slane %v7245_v50, 3  ;;  %v9303_v26 = vld [vmem:[#allocation11_spill] sm:$0xff]  ;;  %v7375_v55 = vadd.f32 %v3957_v6, %v7356_v4  ;;  %v4216_v25 = vrot.slane %v7271_v36, 2 }
 0x20f   : > { %v7361_v43 = vadd.f32 %v3955_v54, %v7064_v7  ;;  %v2211_v46 = vpop.f32.mrb[99].mxu1  ;;  %4088 = vrot.lane.b32.xlu1 %v4058_v21, %s5734_s10  ;;  %v2719_v37 = vadd.f32 %v9303_v26, %v2635_v45  ;;  %v7378_v54 = vadd.f32 %v3956_v31, %v7348_v59  ;;  %v2870_v56 = vadd.f32 %v9305_v15, %v7313_v28  ;;  %v4073_v35 = vpop.permute.xlu1 %4072 }
 0x210   : > { %9304 = vst [vmem:[#allocation65_spill] sm:$0xff] %v7375_v55  ;;  %v7385_v18 = vadd.f32 %v3958_v49, %v7321_v13  ;;  %v3328_v21 = vsel %vm3327_vm2, %v7291_v2, %v7216_v5  ;;  %v4218_v45 = vrot.slane %v7269_v42, 2  ;;  %v7394_v26 = vrot.slane %v6918_v20, 4  ;;  %v9309_v20 = vld [vmem:[#allocation55_spill] sm:$0xff] }
 0x211   : > { %9301 = vst [vmem:[#allocation6_spill] sm:$0xff] %v7361_v43  ;;  %v7382_v46 = vpop.permute.xlu0 %4074  ;;  %v3063_v15 = vadd.f32 %v3021_v62, %v2719_v37  ;;  %v2895_v7 = vadd.f32 %v2870_v56, %v7331_v41  ;;  %v3613_v42 = vsel %vm3612_vm3, %v7310_v9, %v7279_v11  ;;  %v3183_v62 = vadd.f32 %v9309_v20, %v7313_v28 }
 0x212   : > { %9306 = vst [vmem:[#allocation66_spill] sm:$0xff] %v7382_v46  ;;  %9307 = vst [vmem:[#allocation11_spill] sm:$0xff] %v7394_v26  ;;  %v7400_v2 = vadd.f32 %v4218_v45, %v7378_v54  ;;  %v4217_v56 = vrot.slane %v7293_v1, 2  ;;  %v3876_v1 = vsel %vm3875_vm4, %v7343_v57, %v7336_v40  ;;  %v7471_v28 = vstv %s7408_s12  ;;  %v9331_v40 = vld [vmem:[#allocation27_spill] sm:$0xff] }
 0x213   : > { %v7391_v6 = vpop.f32.mrb[100].mxu0  ;;  %v2214_v31 = vpop.f32.mrb[100].mxu1  ;;  %4324 = vrot.lane.b32.xlu1 %v4296_v10, %s5735_s11  ;;  %v3370_v36 = vadd.f32 %v3328_v21, %v3063_v15  ;;  %v7414_v10 = vadd.f32 %v4216_v25, %v7109_v23  ;;  %v3205_v20 = vadd.f32 %v3183_v62, %v7331_v41 }
 0x214   : > { %v2150_v49 = vpop.f32.mrb[101].mxu0  ;;  %v2215_v13 = vpop.f32.mrb[101].mxu1  ;;  %9308 = vst [vmem:[#allocation53_spill] sm:$0xff] %v7400_v2  ;;  %v4219_v31 = vrot.slane %v7281_v16, 2  ;;  %v7420_v16 = vrot.slane %v6926_v48, 4  ;;  %v7427_v25 = vadd.f32 %v4217_v56, %v7361_v43  ;;  %v7435_v48 = vrot.slane %v6960_v38, 3 }
 0x215   : > { %v7410_v37 = vpop.f32.mrb[102].mxu0  ;;  %v2920_v13 = vadd.f32 %v2895_v7, %v7366_v61  ;;  %9310 = vst [vmem:[#allocation55_spill] sm:$0xff] %v7414_v10  ;;  %v2216_v9 = vpop.f32.mrb[102].mxu1  ;;  %v3655_v7 = vadd.f32 %v3613_v42, %v3370_v36  ;;  %v3227_v62 = vadd.f32 %v3205_v20, %v7366_v61  ;;  %v4016_v42 = vadd.f32 %v6853_v14, %v7366_v61  ;;  %v9319_v14 = vld [vmem:[#allocation48_spill] sm:$0xff] }
 0x216   : > { %v7417_v45 = vpop.f32.mrb[103].mxu0  ;;  %9311 = vst [vmem:[#allocation112_spill] sm:$0xff] %v7420_v16  ;;  %v7423_v49 = vadd.f32 %v4219_v31, %v7375_v55  ;;  %v2217_v21 = vpop.f32.mrb[103].mxu1  ;;  %9313 = vst [vmem:[#allocation114_spill] sm:$0xff] %v7427_v25  ;;  %v7438_v31 = vrot.slane %v6962_v51, 3  ;;  %v7445_v36 = vrot.slane %v6968_v32, 3  ;;  %v3490_v38 = vadd.f32 %v7325_v0, %v7331_v41 }
 0x217   : > { %v2964_v15 = vrot.slane %v2920_v13, 1  ;;  %v7432_v9 = vpop.permute.xlu0 %4314  ;;  %9315 = vst [vmem:[#allocation116_spill] sm:$0xff] %v7435_v48  ;;  %4328 = vrot.lane.b32.xlu1 %v4298_v52, %s5735_s11  ;;  %v3918_v57 = vadd.f32 %v3876_v1, %v3655_v7  ;;  %v4313_v13 = vpop.permute.xlu1 %4312  ;;  %v7451_v51 = vrot.slane %v6987_v12, 2  ;;  %v4060_v52 = vrot.slane %v4016_v42, 5  ;;  %9321 = vst [vmem:[#allocation48_spill] sm:$0xff] %v7471_v28 }
 0x218   : > { %9312 = vst [vmem:[#allocation113_spill] sm:$0xff] %v7423_v49  ;;  %9314 = vst [vmem:[#allocation115_spill] sm:$0xff] %v7432_v9  ;;  %v4117_v56 = vsel %vm4116_vm5, %v4073_v35, %v7382_v46  ;;  %v2871_v32 = vadd.f32 %v9319_v14, %v7328_v60  ;;  %v3512_v7 = vadd.f32 %v3490_v38, %v7366_v61  ;;  %v9320_v35 = vld [vmem:[#allocation60_spill] sm:$0xff]  ;;  %v7478_v38 = vrot.slane %v6976_v27, 2 }
 0x219   : > { %9316 = vst [vmem:[#allocation117_spill] sm:$0xff] %v7438_v31  ;;  %9317 = vst [vmem:[#allocation118_spill] sm:$0xff] %v7445_v36  ;;  %2996 = vrot.lane.b32.xlu0 %v2964_v15, %s5731_s7  ;;  %v3271_v15 = vrot.slane %v3227_v62, 2  ;;  %v4159_v0 = vadd.f32 %v4117_v56, %v3918_v57  ;;  %v3753_v42 = vadd.f32 %v9320_v35, %v7331_v41  ;;  %v9347_v49 = vld [vmem:[#allocation20_spill] sm:$0xff] }
 0x21a   : > { %9318 = vst [vmem:[#allocation119_spill] sm:$0xff] %v7451_v51  ;;  %v2896_v14 = vadd.f32 %v2871_v32, %v7435_v48  ;;  %v4357_v62 = vsel %vm4356_vm6, %v4313_v13, %v7432_v9  ;;  %9322 = vst [vmem:[#allocation60_spill] sm:$0xff] %v7478_v38  ;;  %v2873_v32 = vadd.f32 %v6945_v34, %v7420_v16  ;;  %v7490_v13 = vrot.slane %v6989_v47, 2 }
 0x21b   : > { %v7457_v20 = vpop.f32.mrb[104].mxu0  ;;  %v7459_v21 = vpop.f32.mrb[104].mxu1  ;;  %4092 = vrot.lane.b32.xlu1 %v4060_v52, %s5734_s10  ;;  %v4399_v56 = vadd.f32 %v4357_v62, %v4159_v0  ;;  %v9323_v52 = vld [vmem:[#allocation50_spill] sm:$0xff]  ;;  %v3556_v59 = vrot.slane %v3512_v7, 3 }
 0x21c   : > { %v7462_v1 = vpop.permute.xlu0 %3287  ;;  %v7464_v12 = vpop.f32.mrb[105].mxu0  ;;  %v2872_v43 = vadd.f32 %v9323_v52, %v7394_v26  ;;  %9324 = vst [vmem:[#allocation50_spill] sm:$0xff] %v7490_v13  ;;  %v2921_v27 = vadd.f32 %v2896_v14, %v7451_v51  ;;  %v2898_v47 = vadd.f32 %v2873_v32, %v7438_v31 }
 0x21d   : > { %v7475_v55 = vpop.f32.mrb[106].mxu0  ;;  %v2222_v57 = vpop.f32.mrb[105].mxu1  ;;  %3303 = vrot.lane.b32.xlu0 %v3271_v15, %s5730_s6  ;;  %v9325_v15 = vld [vmem:[#allocation56_spill] sm:$0xff]  ;;  %v7501_v34 = vadd.f32 %v7471_v28, %v4399_v56  ;;  %v9334_v56 = vld [vmem:[#allocation35_spill] sm:$0xff] }
 0x21e   : > { %v7485_v35 = vpop.f32.mrb[107].mxu0  ;;  %v7487_v41 = vpop.f32.mrb[106].mxu1  ;;  %v3775_v57 = vadd.f32 %v3753_v42, %v7366_v61  ;;  %v3184_v0 = vadd.f32 %v9325_v15, %v7328_v60  ;;  %v2897_v44 = vadd.f32 %v2872_v43, %v7445_v36  ;;  %v2965_v9 = vrot.slane %v2921_v27, 1  ;;  %v9328_v42 = vld [vmem:[#allocation51_spill] sm:$0xff]  ;;  %v9330_v15 = vld [vmem:[#allocation5_spill] sm:$0xff] }
 0x21f   : > { %v7496_v62 = vpop.permute.xlu1 %2980  ;;  %v7498_v52 = vpop.f32.mrb[107].mxu1  ;;  %9327 = vst [vmem:[#allocation120_spill] sm:$0xff] %v7501_v34  ;;  %v3185_v61 = vadd.f32 %v9328_v42, %v7394_v26  ;;  %v7512_v46 = vadd.f32 %v9331_v40, %v9330_v15  ;;  %v4527_v7 = vand.u32 2147483647, %v7501_v34  ;;  %v7517_v43 = vrot.slane %v6920_v8, 4 }
 0x220   : > { %9326 = vst [vmem:[#allocation56_spill] sm:$0xff] %v7498_v52  ;;  %v3206_v14 = vadd.f32 %v3184_v0, %v7435_v48  ;;  %v7508_v23 = vpop.permute.xlu0 %3572  ;;  %v7520_v32 = vrot.slane %v9334_v56, 4  ;;  %2998 = vrot.lane.b32.xlu1 %v2965_v9, %s5731_s7  ;;  %v2923_v27 = vadd.f32 %v2898_v47, %v7490_v13  ;;  %v3819_v15 = vrot.slane %v3775_v57, 4  ;;  %v9337_v56 = vld [vmem:[#allocation82_spill] sm:$0xff] }
 0x221   : > { %9329 = vst [vmem:[#allocation51_spill] sm:$0xff] %v7508_v23  ;;  %9332 = vst [vmem:[#allocation5_spill] sm:$0xff] %v7512_v46  ;;  %3588 = vrot.lane.b32.xlu0 %v3556_v59, %s5732_s8  ;;  %v3207_v0 = vadd.f32 %v3185_v61, %v7445_v36  ;;  %v4548_v59 = vsub.f32 0.0, %v4527_v7  ;;  %v2922_v52 = vadd.f32 %v2897_v44, %v7478_v38  ;;  %v2833_v8 = vrot.slane %v7391_v6, 5  ;;  %v9339_v61 = vld [vmem:[#allocation59_spill] sm:$0xff]  ;;  %v9340_v7 = vld [vmem:[#allocation74_spill] sm:$0xff] }
 0x222   : > { %9333 = vst [vmem:[#allocation27_spill] sm:$0xff] %v7517_v43  ;;  %9335 = vst [vmem:[#allocation35_spill] sm:$0xff] %v7520_v32  ;;  %v7535_v32 = vadd.f32 %v9337_v56, %v7517_v43  ;;  %v2967_v9 = vrot.slane %v2923_v27, 1  ;;  %v3228_v47 = vadd.f32 %v3206_v14, %v7451_v51  ;;  %v3470_v46 = vadd.f32 %v9339_v61, %v7394_v26 }
 0x223   : > { %v7525_v42 = vpop.permute.xlu1 %4076  ;;  %v7527_v40 = vpop.f32.mrb[108].mxu0  ;;  %v7543_v34 = vrot.slane %v9340_v7, 3  ;;  %v4569_v44 = vmul.f32 1.442695, %v4548_v59  ;;  %v2856_v6 = vadd.f32 %v2833_v8, %v7285_v24  ;;  %v3172_v56 = vadd.f32 %v7301_v17, %v2833_v8  ;;  %v9344_v24 = vld [vmem:[#allocation90_spill] sm:$0xff] }
 0x224   : > { %9336 = vst [vmem:[#allocation121_spill] sm:$0xff] %v7525_v42  ;;  %v7531_v28 = vpop.f32.mrb[109].mxu0  ;;  %9338 = vst [vmem:[#allocation82_spill] sm:$0xff] %v7535_v32  ;;  %v7540_v42 = vpop.f32.mrb[108].mxu1  ;;  %3002 = vrot.lane.b32.xlu1 %v2967_v9, %s5731_s7  ;;  %v3229_v14 = vadd.f32 %v3207_v0, %v7478_v38  ;;  %v3492_v61 = vadd.f32 %v3470_v46, %v7445_v36  ;;  %v3413_v26 = vrot.slane %v7410_v37, 5  ;;  %v2966_v9 = vrot.slane %v2922_v52, 1 }
 0x225   : > { %v2171_v57 = vpop.f32.mrb[110].mxu0  ;;  %9341 = vst [vmem:[#allocation59_spill] sm:$0xff] %v7543_v34  ;;  %3851 = vrot.lane.b32.xlu0 %v3819_v15, %s5733_s9  ;;  %v7548_v32 = vpop.f32.mrb[109].mxu1  ;;  %v7560_v8 = vadd.f32 %v9344_v24, %v7438_v31  ;;  %v9345_v34 = vld [vmem:[#allocation46_spill] sm:$0xff]  ;;  %5605 = vpow2.f32 %v4569_v44  ;;  %v3272_v10 = vrot.slane %v3228_v47, 2  ;;  %v7570_v23 = vrot.slane %v7169_v29, 4 }
 0x226   : > { %v2172_v27 = vpop.f32.mrb[111].mxu0  ;;  %v9342_v57 = vld [vmem:[#allocation72_spill] sm:$0xff]  ;;  %v7556_v15 = vpop.permute.xlu0 %3835  ;;  %v3457_v44 = vadd.f32 %v3413_v26, %v7301_v17  ;;  %v2858_v52 = vrot.slane %v7417_v45, 4  ;;  %v3273_v24 = vrot.slane %v3229_v14, 2  ;;  %v9350_v29 = vld [vmem:[#allocation86_spill] sm:$0xff] }
 0x227   : > { %v3186_v7 = vadd.f32 %v9342_v57, %v7420_v16  ;;  %9343 = vst [vmem:[#allocation74_spill] sm:$0xff] %v7556_v15  ;;  %v2233_v59 = vpop.f32.mrb[110].mxu1  ;;  %v7563_v43 = vpop.permute.xlu1 %2982  ;;  %v9348_v15 = vld [vmem:[#allocation96_spill] sm:$0xff]  ;;  %9349 = vst [vmem:[#allocation72_spill] sm:$0xff] %v7570_v23 }
 0x228   : > { %v2234_v0 = vpop.f32.mrb[111].mxu1  ;;  %3305 = vrot.lane.b32.xlu1 %v3272_v10, %s5730_s6  ;;  %v2881_v25 = vadd.f32 %v2858_v52, %v2856_v6  ;;  %v3194_v27 = vadd.f32 %v3172_v56, %v2858_v52  ;;  %v3479_v57 = vadd.f32 %v3457_v44, %v2858_v52  ;;  %v3755_v59 = vadd.f32 %v9350_v29, %v7445_v36  ;;  %v9353_v10 = vld [vmem:[#allocation57_spill] sm:$0xff]  ;;  %v9359_v29 = vld [vmem:[#allocation102_spill] sm:$0xff] }
 0x229   : > { %v3208_v11 = vadd.f32 %v3186_v7, %v7438_v31  ;;  %3000 = vrot.lane.b32.xlu0 %v2966_v9, %s5731_s7  ;;  %v3514_v0 = vadd.f32 %v3492_v61, %v7478_v38  ;;  %v3697_v7 = vrot.slane %v7457_v20, 4  ;;  %v7582_v9 = vrot.slane %v7178_v33, 4  ;;  %v9417_v2 = vld [vmem:[#allocation5_spill] sm:$0xff] }
 0x22a   : > { %v3469_v45 = vadd.f32 %v9353_v10, %v7328_v60  ;;  %v7589_v14 = vpop.permute.xlu0 %2984  ;;  %v7595_v6 = vrot.slane %v7176_v30, 4  ;;  %v3698_v33 = vrot.slane %v7464_v12, 4  ;;  %v3959_v56 = vrot.slane %v7475_v55, 3 }
 0x22b   : > { %v3230_v47 = vadd.f32 %v3208_v11, %v7490_v13  ;;  %9351 = vst [vmem:[#allocation90_spill] sm:$0xff] %v7582_v9  ;;  %v7585_v26 = vadd.f32 %v3697_v7, %v7318_v3  ;;  %v9354_v11 = vld [vmem:[#allocation24_spill] sm:$0xff]  ;;  %v7600_v52 = vpop.permute.xlu1 %2986  ;;  %v7608_v10 = vadd.f32 %v9359_v29, %v7570_v23  ;;  %v3558_v36 = vrot.slane %v3514_v0, 3  ;;  %v9366_v29 = vld [vmem:[#allocation62_spill] sm:$0xff] }
 0x22c   : > { %v7592_v61 = vrot.slane %v9354_v11, 4  ;;  %9356 = vst [vmem:[#allocation96_spill] sm:$0xff] %v7595_v6  ;;  %v9361_v11 = vld [vmem:[#allocation105_spill] sm:$0xff]  ;;  %v3777_v60 = vadd.f32 %v3755_v59, %v7478_v38  ;;  %v3742_v6 = vadd.f32 %v3698_v33, %v3457_v44  ;;  %v7618_v46 = vadd.f32 %v3959_v56, %v7353_v39  ;;  %v9368_v0 = vld [vmem:[#allocation108_spill] sm:$0xff]  ;;  %v9370_v44 = vld [vmem:[#allocation42_spill] sm:$0xff] }
 0x22d   : > { %v3274_v17 = vrot.slane %v3230_v47, 2  ;;  %9352 = vst [vmem:[#allocation46_spill] sm:$0xff] %v7585_v26  ;;  %3307 = vrot.lane.b32.xlu0 %v3273_v24, %s5730_s6  ;;  %v9357_v47 = vld [vmem:[#allocation101_spill] sm:$0xff]  ;;  %9360 = vst [vmem:[#allocation57_spill] sm:$0xff] %v7608_v10  ;;  %v7612_v30 = vadd.f32 %v9361_v11, %v7570_v23  ;;  %v3491_v24 = vadd.f32 %v3469_v45, %v7435_v48  ;;  %v7625_v10 = vrot.slane %v9366_v29, 3  ;;  %v9372_v33 = vld [vmem:[#allocation79_spill] sm:$0xff] }
 0x22e   : > { %9355 = vst [vmem:[#allocation20_spill] sm:$0xff] %v7592_v61  ;;  %v7604_v7 = vadd.f32 %v9357_v47, %v7570_v23  ;;  %9363 = vst [vmem:[#allocation101_spill] sm:$0xff] %v7618_v46  ;;  %v9364_v47 = vld [vmem:[#allocation107_spill] sm:$0xff]  ;;  %v7633_v59 = vadd.f32 %v9368_v0, %v7582_v9  ;;  %v7636_v45 = vrot.slane %v9370_v44, 3  ;;  %v3471_v56 = vadd.f32 %v9372_v33, %v7420_v16  ;;  %v9376_v0 = vld [vmem:[#allocation9_spill] sm:$0xff] }
 0x22f   : > { %9362 = vst [vmem:[#allocation24_spill] sm:$0xff] %v7612_v30  ;;  %3309 = vrot.lane.b32.xlu1 %v3274_v17, %s5730_s6  ;;  %9367 = vst [vmem:[#allocation105_spill] sm:$0xff] %v7625_v10  ;;  %v3513_v11 = vadd.f32 %v3491_v24, %v7451_v51  ;;  %v3960_v17 = vrot.slane %v7485_v35, 3  ;;  %v7629_v23 = vpop.eup %5605  ;;  %v7644_v24 = vadd.f32 %v7316_v63, %v7582_v9  ;;  %v9374_v29 = vld [vmem:[#allocation63_spill] sm:$0xff]  ;;  %v3821_v61 = vrot.slane %v3777_v60, 4  ;;  %v9378_v33 = vld [vmem:[#allocation92_spill] sm:$0xff] }
 0x230   : > { %9358 = vst [vmem:[#allocation86_spill] sm:$0xff] %v7604_v7  ;;  %v7622_v7 = vadd.f32 %v9364_v47, %v7582_v9  ;;  %9369 = vst [vmem:[#allocation107_spill] sm:$0xff] %v7633_v59  ;;  %v2883_v47 = vrot.slane %v7459_v21, 3  ;;  %v7647_v39 = vrot.slane %v9374_v29, 3  ;;  %v7651_v44 = vpop.permute.xlu0 %3291  ;;  %v4017_v21 = vadd.f32 %v9378_v33, %v7451_v51  ;;  %v9379_v9 = vld [vmem:[#allocation98_spill] sm:$0xff] }
 0x231   : > { %9371 = vst [vmem:[#allocation62_spill] sm:$0xff] %v7636_v45  ;;  %3592 = vrot.lane.b32.xlu0 %v3558_v36, %s5732_s8  ;;  %9373 = vst [vmem:[#allocation108_spill] sm:$0xff] %v7644_v24  ;;  %v3557_v30 = vrot.slane %v3513_v11, 3  ;;  %v7654_v36 = vadd.f32 %v3960_v17, %v7585_v26  ;;  %v3493_v16 = vadd.f32 %v3471_v56, %v7438_v31  ;;  %v7662_v29 = vrot.slane %v9379_v9, 3 }
 0x232   : > { %9365 = vst [vmem:[#allocation102_spill] sm:$0xff] %v7622_v7  ;;  %v9375_v7 = vld [vmem:[#allocation8_spill] sm:$0xff]  ;;  %v7659_v63 = vpop.permute.xlu1 %3289  ;;  %v4611_v24 = vadd.f32 1.0, %v7629_v23  ;;  %v7669_v60 = vadd.f32 %v2883_v47, %v2881_v25  ;;  %v7673_v17 = vadd.f32 %v3194_v27, %v2883_v47  ;;  %v7675_v56 = vadd.f32 %v3479_v57, %v2883_v47 }
 0x233   : > { %v2636_v59 = vadd.f32 %v9376_v0, %v9375_v7  ;;  %9377 = vst [vmem:[#allocation42_spill] sm:$0xff] %v7654_v36  ;;  %v3022_v7 = vsel %vm3020_vm1, %v7259_v58, %v7496_v62  ;;  %3590 = vrot.lane.b32.xlu1 %v3557_v30, %s5732_s8  ;;  %v3515_v11 = vadd.f32 %v3493_v16, %v7490_v13  ;;  %v7680_v0 = vrot.slane %v7236_v53, 2  ;;  %v9387_v25 = vld [vmem:[#allocation12_spill] sm:$0xff] }
 0x234   : > { %9380 = vst [vmem:[#allocation79_spill] sm:$0xff] %v7669_v60  ;;  %9381 = vst [vmem:[#allocation63_spill] sm:$0xff] %v7673_v17  ;;  %v7677_v9 = vadd.f32 %v3742_v6, %v2883_v47  ;;  %v7683_v33 = vrot.slane %v7238_v19, 2  ;;  %v7686_v58 = vrot.slane %v7243_v22, 2  ;;  %v7691_v16 = vadd.f32 %v7356_v4, %v7625_v10 }
 0x235   : > { %3855 = vrot.lane.b32.xlu0 %v3821_v61, %s5733_s9  ;;  %9382 = vst [vmem:[#allocation8_spill] sm:$0xff] %v7675_v56  ;;  %9384 = vst [vmem:[#allocation92_spill] sm:$0xff] %v7680_v0  ;;  %v2720_v30 = vadd.f32 %v9387_v25, %v2636_v59  ;;  %v4061_v27 = vrot.slane %v4017_v21, 5  ;;  %v3559_v57 = vrot.slane %v3515_v11, 3  ;;  %v4220_v61 = vrot.slane %v7527_v40, 2  ;;  %v9390_v59 = vld [vmem:[#allocation94_spill] sm:$0xff] }
 0x236   : > { %9383 = vst [vmem:[#allocation9_spill] sm:$0xff] %v7677_v9  ;;  %9385 = vst [vmem:[#allocation98_spill] sm:$0xff] %v7683_v33  ;;  %v7696_v53 = vadd.f32 %v7378_v54, %v7683_v33  ;;  %5607 = vlog2.f32 %v4611_v24  ;;  %v3961_v47 = vrot.slane %v7487_v41, 3  ;;  %v4019_v40 = vadd.f32 %v9390_v59, %v7490_v13  ;;  %v9391_v21 = vld [vmem:[#allocation61_spill] sm:$0xff]  ;;  %v9412_v9 = vld [vmem:[#allocation54_spill] sm:$0xff] }
 0x237   : > { %9386 = vst [vmem:[#allocation122_spill] sm:$0xff] %v7686_v58  ;;  %v3064_v19 = vadd.f32 %v3022_v7, %v2720_v30  ;;  %3594 = vrot.lane.b32.xlu1 %v3559_v57, %s5732_s8  ;;  %v7704_v4 = vadd.f32 %v4220_v61, %v7385_v18  ;;  %v3754_v54 = vadd.f32 %v9391_v21, %v7435_v48  ;;  %v4221_v24 = vrot.slane %v7531_v28, 2 }
 0x238   : > { %9388 = vst [vmem:[#allocation12_spill] sm:$0xff] %v7696_v53  ;;  %v7699_v22 = vpop.permute.xlu0 %3576  ;;  %v3329_v11 = vsel %vm3327_vm2, %v7216_v5, %v7462_v1  ;;  %v7716_v25 = vadd.f32 %v3961_v47, %v3742_v6  ;;  %v4222_v30 = vrot.slane %v7540_v42, 2  ;;  %v7721_v57 = vrot.slane %v7410_v37, 4  ;;  %v9397_v47 = vld [vmem:[#allocation51_spill] sm:$0xff] }
 0x239   : > { %4094 = vrot.lane.b32.xlu0 %v4061_v27, %s5734_s10  ;;  %9389 = vst [vmem:[#allocation123_spill] sm:$0xff] %v7704_v4  ;;  %v7711_v7 = vpop.permute.xlu1 %3293  ;;  %v4223_v27 = vrot.slane %v7548_v32, 2  ;;  %v4063_v61 = vrot.slane %v4019_v40, 5  ;;  %v3776_v59 = vadd.f32 %v3754_v54, %v7451_v51  ;;  %v7725_v28 = vadd.f32 %v4221_v24, %v7618_v46  ;;  %v9398_v40 = vld [vmem:[#allocation104_spill] sm:$0xff]  ;;  %v9419_v24 = vld [vmem:[#allocation59_spill] sm:$0xff] }
 0x23a   : > { %9392 = vst [vmem:[#allocation94_spill] sm:$0xff] %v7716_v25  ;;  %9393 = vst [vmem:[#allocation61_spill] sm:$0xff] %v7721_v57  ;;  %v7728_v21 = vrot.slane %v7245_v50, 2  ;;  %v3371_v31 = vadd.f32 %v3329_v11, %v3064_v19  ;;  %v7731_v5 = vadd.f32 %v4222_v30, %v7654_v36  ;;  %v3614_v54 = vsel %vm3612_vm3, %v9398_v40, %v9397_v47  ;;  %v9400_v30 = vld [vmem:[#allocation113_spill] sm:$0xff]  ;;  %v9402_v4 = vld [vmem:[#allocation120_spill] sm:$0xff] }
 0x23b   : > { %9394 = vst [vmem:[#allocation124_spill] sm:$0xff] %v7725_v28  ;;  %v7734_v42 = vadd.f32 %v4223_v27, %v7716_v25  ;;  %v3820_v50 = vrot.slane %v3776_v59, 4  ;;  %v3778_v37 = vadd.f32 %v7560_v8, %v7490_v13  ;;  %v9403_v40 = vld [vmem:[#allocation110_spill] sm:$0xff]  ;;  %v9406_v11 = vld [vmem:[#allocation111_spill] sm:$0xff]  ;;  %v7769_v8 = vadd.f32 %v7318_v3, %v7721_v57  ;;  %v9416_v46 = vld [vmem:[#allocation28_spill] sm:$0xff] }
 0x23c   : > { %9395 = vst [vmem:[#allocation125_spill] sm:$0xff] %v7731_v5  ;;  %v7736_v32 = vpop.permute.xlu0 %3839  ;;  %v9401_v5 = vld [vmem:[#allocation114_spill] sm:$0xff]  ;;  %v7755_v51 = vadd.f32 %v9403_v40, %v7721_v57  ;;  %v7765_v27 = vadd.f32 %v9406_v11, %v7721_v57  ;;  %v3656_v6 = vadd.f32 %v3614_v54, %v3371_v31  ;;  %v9409_v28 = vld [vmem:[#allocation27_spill] sm:$0xff]  ;;  %v7776_v36 = vrot.slane %v7457_v20, 3 }
 0x23d   : > { %9396 = vst [vmem:[#allocation126_spill] sm:$0xff] %v7734_v42  ;;  %4098 = vrot.lane.b32.xlu0 %v4063_v61, %s5734_s10  ;;  %v7744_v19 = vpop.permute.xlu1 %3574  ;;  %v4614_v42 = vmul.f32 -0.5, %v7629_v23  ;;  %v9404_v61 = vld [vmem:[#allocation121_spill] sm:$0xff]  ;;  %v9405_v59 = vld [vmem:[#allocation66_spill] sm:$0xff]  ;;  %3853 = vrot.lane.b32.xlu1 %v3820_v50, %s5733_s9  ;;  %9408 = vst [vmem:[#allocation104_spill] sm:$0xff] %v7769_v8  ;;  %v3822_v56 = vrot.slane %v3778_v37, 4  ;;  %vm4485_vm7 = vcmp.ne.f32.partialorder %v9402_v4, %v9402_v4 }
 0x23e   : > { %v7760_v48 = vsel %vm4116_vm5, %v9405_v59, %v9404_v61  ;;  %9407 = vst [vmem:[#allocation51_spill] sm:$0xff] %v7765_v27  ;;  %v9410_v13 = vld [vmem:[#allocation78_spill] sm:$0xff]  ;;  %v9413_v11 = vrot.slane %v9348_v15, 6  ;;  %v9414_v3 = vld [vmem:[#allocation95_spill] sm:$0xff]  ;;  %v7795_v37 = vrot.slane %v7475_v55, 2  ;;  %v3023_v15 = vsel %vm3020_vm1, %v7496_v62, %v7563_v43 }
 0x23f   : > { %v2874_v40 = vadd.f32 %v9410_v13, %v9409_v28  ;;  %v9411_v59 = vld [vmem:[#allocation74_spill] sm:$0xff]  ;;  %v4018_v31 = vadd.f32 %v9414_v3, %v7478_v38  ;;  %v4615_v57 = vadd.f32 1.0, %v4614_v42  ;;  %v9415_v13 = vld [vmem:[#allocation7_spill] sm:$0xff]  ;;  %v9424_v60 = vrot.slane %v9347_v49, 6 }
 0x240   : > { %v7773_v25 = vpop.permute.xlu0 %4078  ;;  %v3877_v50 = vsel %vm3875_vm4, %v9412_v9, %v9411_v59  ;;  %v5608_v54 = vpop.eup %5607  ;;  %v2637_v26 = vadd.f32 %v9416_v46, %v9415_v13  ;;  %v9418_v20 = vld [vmem:[#allocation31_spill] sm:$0xff]  ;;  %v7792_v9 = vrot.slane %v7464_v12, 3  ;;  %v9420_v46 = vld [vmem:[#allocation36_spill] sm:$0xff]  ;;  %v9422_v12 = vld [vmem:[#allocation25_spill] sm:$0xff]  ;;  %v3330_v49 = vsel %vm3327_vm2, %v7462_v1, %v7659_v63 }
 0x241   : > { %4334 = vrot.lane.b32.xlu0 %v9413_v11, %s5735_s11  ;;  %v2638_v17 = vadd.f32 %v9418_v20, %v9417_v2  ;;  %v2899_v8 = vadd.f32 %v2874_v40, %v9419_v24  ;;  %3857 = vrot.lane.b32.xlu1 %v3822_v56, %s5733_s9  ;;  %v7801_v42 = vpop.permute.xlu1 %3578  ;;  %v3187_v11 = vadd.f32 %v9420_v46, %v9409_v28  ;;  %v4617_v2 = vand.u32 2147483647, %v7629_v23  ;;  %v9421_v40 = vld [vmem:[#allocation33_spill] sm:$0xff]  ;;  %v9423_v13 = vld [vmem:[#allocation38_spill] sm:$0xff] }
 0x242   : > { %v2721_v3 = vadd.f32 %v9421_v40, %v2637_v26  ;;  %v2639_v20 = vadd.f32 %v9423_v13, %v9422_v12  ;;  %v4613_v27 = vmul.f32 0.6931472, %v5608_v54  ;;  %v7812_v62 = vadd.f32 %v3877_v50, %v3656_v6  ;;  %v9425_v40 = vld [vmem:[#allocation40_spill] sm:$0xff]  ;;  %v9431_v12 = vld [vmem:[#allocation73_spill] sm:$0xff] }
 0x243   : > { %v2924_v55 = vadd.f32 %v2899_v8, %v7680_v0  ;;  %v4062_v56 = vrot.slane %v4018_v31, 5  ;;  %v3209_v46 = vadd.f32 %v3187_v11, %v9419_v24  ;;  %v4616_v28 = vmul.f32 %v7629_v23, %v4615_v57  ;;  %v9429_v31 = vld [vmem:[#allocation82_spill] sm:$0xff]  ;;  %v9436_v57 = vld [vmem:[#allocation75_spill] sm:$0xff] }
 0x244   : > { %v7810_v38 = vpop.permute.xlu0 %4082  ;;  %v3065_v26 = vadd.f32 %v3023_v15, %v2721_v3  ;;  %v2722_v53 = vadd.f32 %v9425_v40, %v2638_v17  ;;  %v3024_v8 = vsel %vm3020_vm1, %v7563_v43, %v7589_v14  ;;  %v3025_v6 = vsel %vm3020_vm1, %v7589_v14, %v7600_v52  ;;  %v9428_v43 = vld [vmem:[#allocation39_spill] sm:$0xff] }
 0x245   : > { %4338 = vrot.lane.b32.xlu0 %v9424_v60, %s5735_s11  ;;  %4096 = vrot.lane.b32.xlu1 %v4062_v56, %s5734_s10  ;;  %v2968_v23 = vrot.slane %v2924_v55, 1  ;;  %v3231_v60 = vadd.f32 %v3209_v46, %v7680_v0  ;;  %v3838_v17 = vpop.permute.xlu1 %3837  ;;  %vm7833_vm8 = vcmp.lt.f32.partialorder %v4617_v2, 0.0004427343  ;;  %v2723_v50 = vadd.f32 %v9428_v43, %v2639_v20  ;;  %v9430_v3 = vld [vmem:[#allocation35_spill] sm:$0xff] }
 0x246   : > { %v3331_v14 = vsel %vm3327_vm2, %v7659_v63, %v7651_v44  ;;  %v3494_v54 = vadd.f32 %v9429_v31, %v9419_v24  ;;  %v4619_v15 = vsel %vm7833_vm8, %v4616_v28, %v4613_v27  ;;  %v7848_v11 = vrot.slane %v7485_v35, 2 }
 0x247   : > { %v3066_v2 = vadd.f32 %v3024_v8, %v2722_v53  ;;  %v2875_v13 = vadd.f32 %v9431_v12, %v9430_v3  ;;  %v3067_v20 = vadd.f32 %v3025_v6, %v2723_v50  ;;  %v3372_v55 = vadd.f32 %v3330_v49, %v3065_v26  ;;  %v9434_v6 = vld [vmem:[#allocation29_spill] sm:$0xff]  ;;  %v9438_v12 = vld [vmem:[#allocation23_spill] sm:$0xff] }
 0x248   : > { %v7843_v1 = vpop.permute.xlu0 %4318  ;;  %v3615_v63 = vsel %vm3612_vm3, %v9397_v47, %v7744_v19  ;;  %v3516_v56 = vadd.f32 %v3494_v54, %v7680_v0  ;;  %v3332_v35 = vsel %vm3327_vm2, %v7651_v44, %v7711_v7  ;;  %v9432_v53 = vrot.slane %v9345_v34, 6  ;;  %v9435_v44 = vld [vmem:[#allocation20_spill] sm:$0xff] }
 0x249   : > { %3004 = vrot.lane.b32.xlu0 %v2968_v23, %s5731_s7  ;;  %v3373_v46 = vadd.f32 %v3331_v14, %v3066_v2  ;;  %v3275_v28 = vrot.slane %v3231_v60, 2  ;;  %v7863_v27 = vpop.permute.xlu1 %3841  ;;  %v2900_v26 = vadd.f32 %v2875_v13, %v7636_v45  ;;  %v9433_v40 = vmax.f32 %v9402_v4, 0.0 }
 0x24a   : > { %4332 = vrot.lane.b32.xlu1 %v9432_v53, %s5735_s11  ;;  %v3878_v47 = vsel %vm3875_vm4, %v9411_v59, %v3838_v17  ;;  %v3757_v49 = vadd.f32 %v9434_v6, %v9419_v24  ;;  %v2876_v34 = vadd.f32 %v9436_v57, %v9435_v44  ;;  %v3616_v60 = vsel %vm3612_vm3, %v7744_v19, %v7699_v22  ;;  %v9437_v59 = vld [vmem:[#allocation22_spill] sm:$0xff]  ;;  %v9440_v53 = vld [vmem:[#allocation96_spill] sm:$0xff] }
 0x24b   : > { %v4800_v8 = vadd.f32 %v4619_v15, %v9433_v40  ;;  %v3657_v43 = vadd.f32 %v3615_v63, %v3372_v55  ;;  %v3617_v50 = vsel %vm3612_vm3, %v7699_v22, %v7801_v42  ;;  %v4020_v14 = vadd.f32 %v9437_v59, %v7680_v0  ;;  %v9442_v57 = vld [vmem:[#allocation76_spill] sm:$0xff] }
 0x24c   : > { %v3374_v31 = vadd.f32 %v3332_v35, %v3067_v20  ;;  %v3560_v54 = vrot.slane %v3516_v56, 3  ;;  %v3779_v15 = vadd.f32 %v3757_v49, %v7680_v0  ;;  %v2901_v2 = vadd.f32 %v2876_v34, %v7662_v29 }
 0x24d   : > { %v7872_v23 = vpop.permute.xlu0 %4322  ;;  %3311 = vrot.lane.b32.xlu0 %v3275_v28, %s5730_s6  ;;  %v9439_v13 = vrot.slane %v9438_v12, 6  ;;  %v3879_v19 = vsel %vm3875_vm4, %v3838_v17, %v7736_v32  ;;  %v3920_v55 = vadd.f32 %v3878_v47, %v3657_v43  ;;  %v2925_v22 = vadd.f32 %v2900_v26, %v7686_v58  ;;  %v9441_v28 = vld [vmem:[#allocation97_spill] sm:$0xff] }
 0x24e   : > { %v4081_v63 = vpop.permute.xlu1 %4080  ;;  %v2877_v40 = vadd.f32 %v9441_v28, %v9440_v53  ;;  %v7899_v20 = vsel %vm4485_vm7, %v9402_v4, %v4800_v8  ;;  %v3658_v56 = vadd.f32 %v3616_v60, %v3373_v46  ;;  %v4119_v35 = vsel %vm4116_vm5, %v9404_v61, %v7773_v25 }
 0x24f   : > { %4336 = vrot.lane.b32.xlu1 %v9439_v13, %s5735_s11  ;;  %v3659_v6 = vadd.f32 %v3617_v50, %v3374_v31  ;;  %v4064_v47 = vrot.slane %v4020_v14, 5  ;;  %v4160_v49 = vadd.f32 %v7760_v48, %v7812_v62  ;;  %v3189_v8 = vadd.f32 %v9442_v57, %v9435_v44  ;;  %v9443_v14 = vld [vmem:[#allocation80_spill] sm:$0xff]  ;;  %v9444_v62 = vld [vmem:[#allocation115_spill] sm:$0xff] }
 0x250   : > { %v2902_v26 = vadd.f32 %v2877_v40, %v7625_v10  ;;  %v3921_v34 = vadd.f32 %v3879_v19, %v3658_v56  ;;  %v3823_v46 = vrot.slane %v3779_v15, 4  ;;  %v2926_v60 = vadd.f32 %v2901_v2, %v7683_v33  ;;  %v9445_v2 = vld [vmem:[#allocation83_spill] sm:$0xff] }
 0x251   : > { %v7904_v17 = vpop.permute.xlu0 %2988  ;;  %3596 = vrot.lane.b32.xlu0 %v3560_v54, %s5732_s8  ;;  %v2969_v61 = vrot.slane %v2925_v22, 1  ;;  %v4161_v43 = vadd.f32 %v4119_v35, %v3920_v55  ;;  %v3211_v59 = vadd.f32 %v3189_v8, %v7662_v29  ;;  %v3188_v31 = vadd.f32 %v9443_v14, %v9430_v3  ;;  %v9446_v35 = vld [vmem:[#allocation99_spill] sm:$0xff]  ;;  %v9447_v8 = vld [vmem:[#allocation48_spill] sm:$0xff]  ;;  %v9449_v14 = vld [vmem:[#allocation30_spill] sm:$0xff] }
 0x252   : > { %v4317_v50 = vpop.permute.xlu1 %4316  ;;  %v3880_v48 = vsel %vm3875_vm4, %v7736_v32, %v7863_v27  ;;  %v3474_v12 = vadd.f32 %v9445_v2, %v9435_v44  ;;  %v2927_v13 = vadd.f32 %v2902_v26, %v7728_v21  ;;  %v4120_v32 = vsel %vm4116_vm5, %v7773_v25, %v4081_v63 }
 0x253   : > { %4100 = vrot.lane.b32.xlu1 %v4064_v47, %s5734_s10  ;;  %v4358_v54 = vsel %vm4356_vm6, %v9444_v62, %v4317_v50  ;;  %v4359_v15 = vsel %vm4356_vm6, %v4317_v50, %v7843_v1  ;;  %v3210_v22 = vadd.f32 %v3188_v31, %v7636_v45  ;;  %v9126_v28 = vlaneseq  ;;  %v9448_v50 = vld [vmem:[#allocation13_spill] sm:$0xff] }
 0x254   : > { %v4400_v19 = vadd.f32 %v4358_v54, %v4160_v49  ;;  %v4401_v55 = vadd.f32 %v4359_v15, %v4161_v43  ;;  %v3496_v56 = vadd.f32 %v3474_v12, %v7662_v29  ;;  %v3190_v47 = vadd.f32 %v9446_v35, %v9440_v53 }
 0x255   : > { %3859 = vrot.lane.b32.xlu0 %v3823_v46, %s5733_s9  ;;  %v7931_v40 = vpop.permute.xlu0 %3295  ;;  %v2970_v57 = vrot.slane %v2926_v60, 1  ;;  %v3233_v46 = vadd.f32 %v3211_v59, %v7683_v33  ;;  %vm4443_vm9 = vcmp.gt.f32.partialorder %v9402_v4, 20.0  ;;  %v3922_v43 = vadd.f32 %v3880_v48, %v3659_v6 }
 0x256   : > { %v7938_v26 = vadd.f32 %v9447_v8, %v4400_v19  ;;  %v7941_v49 = vadd.f32 %v9447_v8, %v4401_v55  ;;  %v4321_v25 = vpop.permute.xlu1 %4320  ;;  %v2556_v31 = vadd.f32 %v9449_v14, %v9448_v50  ;;  %v3212_v60 = vadd.f32 %v3190_v47, %v7625_v10 }
 0x257   : > { %3006 = vrot.lane.b32.xlu1 %v2969_v61, %s5731_s7  ;;  %v4360_v62 = vsel %vm4356_vm6, %v7843_v1, %v4321_v25  ;;  %v4121_v61 = vsel %vm4116_vm5, %v4081_v63, %v7810_v38  ;;  %v4162_v54 = vadd.f32 %v4120_v32, %v3921_v34  ;;  %v2971_v15 = vrot.slane %v2927_v13, 1  ;;  %v9450_v1 = vld [vmem:[#allocation67_spill] sm:$0xff] }
 0x258   : > { %v3232_v59 = vadd.f32 %v3210_v22, %v7686_v58  ;;  %v4528_v2 = vand.u32 2147483647, %v7938_v26  ;;  %v4529_v6 = vand.u32 2147483647, %v7941_v49  ;;  %v3518_v48 = vadd.f32 %v3496_v56, %v7683_v33  ;;  %v9451_v22 = vld [vmem:[#allocation81_spill] sm:$0xff] }
 0x259   : > { %3008 = vrot.lane.b32.xlu0 %v2970_v57, %s5731_s7  ;;  %v3759_v19 = vadd.f32 %v9450_v1, %v7662_v29  ;;  %v3277_v63 = vrot.slane %v3233_v46, 2  ;;  %v4361_v34 = vsel %vm4356_vm6, %v4321_v25, %v7872_v23  ;;  %v4402_v13 = vadd.f32 %v4360_v62, %v4162_v54  ;;  %v9452_v25 = vld [vmem:[#allocation103_spill] sm:$0xff] }
 0x25a   : > { %v7957_v12 = vpop.permute.xlu0 %3580  ;;  %v7964_v55 = vpop.permute.xlu1 %4084  ;;  %v3473_v32 = vadd.f32 %v9451_v22, %v9430_v3  ;;  %v4163_v35 = vadd.f32 %v4121_v61, %v3922_v43  ;;  %v4549_v47 = vsub.f32 0.0, %v4528_v2  ;;  %v4550_v56 = vsub.f32 0.0, %v4529_v6  ;;  %v9481_v3 = vld [vmem:[#allocation51_spill] sm:$0xff] }
 0x25b   : > { %3010 = vrot.lane.b32.xlu1 %v2971_v15, %s5731_s7  ;;  %v3234_v57 = vadd.f32 %v3212_v60, %v7728_v21  ;;  %v3276_v50 = vrot.slane %v3232_v59, 2  ;;  %v7971_v14 = vadd.f32 %v9447_v8, %v4402_v13  ;;  %v3475_v62 = vadd.f32 %v9452_v25, %v9440_v53  ;;  %v9453_v13 = vld [vmem:[#allocation56_spill] sm:$0xff] }
 0x25c   : > { %v3495_v46 = vadd.f32 %v3473_v32, %v7636_v45  ;;  %v5736_v54 = vmov 1966171168   ;;  %v4571_v1 = vmul.f32 1.442695, %v4549_v47  ;;  %v4573_v22 = vmul.f32 1.442695, %v4550_v56 }
 0x25d   : > { %3315 = vrot.lane.b32.xlu0 %v3277_v63, %s5730_s6  ;;  %v4889_v15 = vunpack.c.l.s4 %v5736_v54  ;;  %v4403_v43 = vadd.f32 %v4361_v34, %v4163_v35  ;;  %v7977_v61 = vrot.slane %v7487_v41, 2  ;;  %v3562_v60 = vrot.slane %v3518_v48, 3  ;;  %v9454_v47 = vld [vmem:[#allocation34_spill] sm:$0xff] }
 0x25e   : > { %v3781_v59 = vadd.f32 %v3759_v19, %v7683_v33  ;;  %v7981_v2 = vpop.permute.xlu0 %3843  ;;  %v7983_v6 = vpop.permute.xlu1 %2990  ;;  %v3497_v63 = vadd.f32 %v3475_v62, %v7625_v10  ;;  %v7987_v32 = vrot.slane %v9453_v13, 2  ;;  %5609 = vpow2.f32 %v4571_v1  ;;  %v9455_v54 = vld [vmem:[#allocation6_spill] sm:$0xff]  ;;  %v9456_v1 = vld [vmem:[#allocation21_spill] sm:$0xff]  ;;  %v9459_v13 = vld [vmem:[#allocation16_spill] sm:$0xff] }
 0x25f   : > { %3313 = vrot.lane.b32.xlu1 %v3276_v50, %s5730_s6  ;;  %v2640_v34 = vadd.f32 %v9454_v47, %v2556_v31  ;;  %v4530_v41 = vand.u32 2147483647, %v7971_v14  ;;  %v7995_v48 = vsel %vm4443_vm9, %v9402_v4, %v7899_v20  ;;  %5611 = vpow2.f32 %v4573_v22  ;;  %v9457_v22 = vld [vmem:[#allocation84_spill] sm:$0xff] }
 0x260   : > { %v3278_v19 = vrot.slane %v3234_v57, 2  ;;  %v3517_v35 = vadd.f32 %v3495_v46, %v7686_v58  ;;  %v4890_v56 = vunpack.c.0.s8 %v4889_v15  ;;  %v4892_v50 = vshrl.u32 %v9126_v28, 7  ;;  %v9462_v28 = vld [vmem:[#allocation89_spill] sm:$0xff] }
 0x261   : > { %3600 = vrot.lane.b32.xlu0 %v3562_v60, %s5732_s8  ;;  %v8001_v25 = vadd.f32 %v9447_v8, %v4403_v43  ;;  %v4551_v31 = vsub.f32 0.0, %v4530_v41  ;;  %v3825_v62 = vrot.slane %v3781_v59, 4  ;;  %v4021_v4 = vadd.f32 %v9455_v54, %v7686_v58  ;;  %v9458_v60 = vld [vmem:[#allocation41_spill] sm:$0xff] }
 0x262   : > { %v3519_v20 = vadd.f32 %v3497_v63, %v7728_v21  ;;  %v2559_v57 = vadd.f32 %v9457_v22, %v9456_v1  ;;  %v2724_v46 = vadd.f32 %v9458_v60, %v2640_v34  ;;  %v3026_v15 = vsel %vm3020_vm1, %v7600_v52, %v7904_v17  ;;  %v9460_v41 = vld [vmem:[#allocation17_spill] sm:$0xff]  ;;  %v9463_v34 = vld [vmem:[#allocation86_spill] sm:$0xff] }
 0x263   : > { %3317 = vrot.lane.b32.xlu1 %v3278_v19, %s5730_s6  ;;  %v4575_v43 = vmul.f32 1.442695, %v4551_v31  ;;  %v3758_v47 = vadd.f32 %v9459_v13, %v7636_v45  ;;  %v3561_v59 = vrot.slane %v3517_v35, 3  ;;  %v9461_v19 = vld [vmem:[#allocation68_spill] sm:$0xff]  ;;  %v2903_v60 = vadd.f32 %v9463_v34, %v7647_v39 }
 0x264   : > { %v2557_v54 = vadd.f32 %v9461_v19, %v9460_v41  ;;  %v8018_v63 = vpop.permute.xlu0 %2992  ;;  %v2643_v1 = vadd.f32 %v9462_v28, %v2559_v57  ;;  %v4531_v52 = vand.u32 2147483647, %v8001_v25  ;;  %v3333_v31 = vsel %vm3327_vm2, %v7711_v7, %v7931_v40  ;;  %v9464_v57 = vld [vmem:[#allocation91_spill] sm:$0xff]  ;;  %v9465_v41 = vld [vmem:[#allocation65_spill] sm:$0xff] }
 0x265   : > { %3863 = vrot.lane.b32.xlu0 %v3825_v62, %s5733_s9  ;;  %v8021_v22 = vpop.permute.xlu1 %2994  ;;  %5613 = vpow2.f32 %v4575_v43  ;;  %v4065_v62 = vrot.slane %v4021_v4, 5  ;;  %v3563_v28 = vrot.slane %v3519_v20, 3  ;;  %v4023_v19 = vadd.f32 %v9465_v41, %v7728_v21  ;;  %v9466_v7 = vld [vmem:[#allocation57_spill] sm:$0xff] }
 0x266   : > { %v3029_v35 = vsel %vm3020_vm1, %v8018_v63, %v8021_v22  ;;  %v2727_v13 = vadd.f32 %v9464_v57, %v2643_v1  ;;  %v3780_v34 = vadd.f32 %v3758_v47, %v7686_v58  ;;  %v8038_v43 = vadd.f32 %v2903_v60, %v7795_v37  ;;  %v9467_v1 = vld [vmem:[#allocation24_spill] sm:$0xff]  ;;  %v9468_v47 = vld [vmem:[#allocation71_spill] sm:$0xff]  ;;  %v9469_v60 = vld [vmem:[#allocation102_spill] sm:$0xff] }
 0x267   : > { %3598 = vrot.lane.b32.xlu1 %v3561_v59, %s5732_s8  ;;  %v3213_v0 = vadd.f32 %v9466_v7, %v7647_v39  ;;  %v8044_v24 = vadd.f32 %v7385_v18, %v7795_v37  ;;  %v3498_v57 = vadd.f32 %v9467_v1, %v7647_v39  ;;  %v3761_v41 = vadd.f32 %v9468_v47, %v7647_v39  ;;  %v9470_v47 = vld [vmem:[#allocation69_spill] sm:$0xff] }
 0x268   : > { %v3071_v4 = vadd.f32 %v3029_v35, %v2727_v13  ;;  %v3300_v20 = vpop.permute.xlu0 %3299  ;;  %v2904_v58 = vadd.f32 %v9469_v60, %v7776_v36  ;;  %v8053_v10 = vpop.eup %5609  ;;  %v8055_v7 = vsub.s32 %v4890_v56, %v4892_v50  ;;  %v3068_v18 = vadd.f32 %v3026_v15, %v2724_v46  ;;  %v9472_v15 = vld [vmem:[#allocation14_spill] sm:$0xff] }
 0x269   : > { %4102 = vrot.lane.b32.xlu0 %v4065_v62, %s5734_s10  ;;  %v3298_v59 = vpop.permute.xlu1 %3297  ;;  %v4552_v45 = vsub.f32 0.0, %v4531_v52  ;;  %v8058_v62 = vadd.f32 %v3213_v0, %v7795_v37  ;;  %v8060_v35 = vpop.eup %5611  ;;  %v4620_v13 = vadd.f32 1.0, %v8053_v10  ;;  %v3618_v1 = vsel %vm3612_vm3, %v7801_v42, %v7957_v12  ;;  %v9471_v0 = vld [vmem:[#allocation15_spill] sm:$0xff] }
 0x26a   : > { %v2641_v53 = vadd.f32 %v9470_v47, %v2557_v54  ;;  %v4067_v60 = vrot.slane %v4023_v19, 5  ;;  %v4465_v56 = vmax.f32 %v7938_v26, 0.0  ;;  %v4629_v50 = vadd.f32 1.0, %v8060_v35 }
 0x26b   : > { %3602 = vrot.lane.b32.xlu1 %v3563_v28, %s5732_s8  ;;  %v3375_v46 = vadd.f32 %v3333_v31, %v3068_v18  ;;  %v2558_v52 = vadd.f32 %v9472_v15, %v9471_v0  ;;  %5615 = vlog2.f32 %v4620_v13  ;;  %v3824_v33 = vrot.slane %v3780_v34, 4  ;;  %v9473_v13 = vld [vmem:[#allocation37_spill] sm:$0xff] }
 0x26c   : > { %v3782_v42 = vadd.f32 %v7691_v16, %v7728_v21  ;;  %v8076_v54 = vpop.permute.xlu0 %3584  ;;  %5617 = vlog2.f32 %v4629_v50  ;;  %v4577_v19 = vmul.f32 1.442695, %v4552_v45  ;;  %v3881_v18 = vsel %vm3875_vm4, %v7863_v27, %v7981_v2 }
 0x26d   : > { %4106 = vrot.lane.b32.xlu0 %v4067_v60, %s5734_s10  ;;  %v8078_v28 = vpop.permute.xlu1 %3301  ;;  %v3660_v47 = vadd.f32 %v3618_v1, %v3375_v46  ;;  %v2642_v60 = vadd.f32 %v9473_v13, %v2558_v52  ;;  %v8088_v16 = vadd.f32 %v3498_v57, %v7795_v37  ;;  %v4623_v45 = vmul.f32 -0.5, %v8053_v10  ;;  %v9475_v52 = vld [vmem:[#allocation70_spill] sm:$0xff]  ;;  %v9476_v13 = vld [vmem:[#allocation87_spill] sm:$0xff] }
 0x26e   : > { %v3336_v31 = vsel %vm3327_vm2, %v3300_v20, %v8078_v28  ;;  %v8094_v1 = vadd.f32 %v3761_v41, %v7795_v37  ;;  %v8097_v50 = vadd.f32 %v2904_v58, %v7848_v11  ;;  %v2905_v27 = vadd.f32 %v7755_v51, %v7792_v9 }
 0x26f   : > { %3861 = vrot.lane.b32.xlu1 %v3824_v33, %s5733_s9  ;;  %v3378_v34 = vadd.f32 %v3336_v31, %v3071_v4  ;;  %v8090_v0 = vpop.eup %5613  ;;  %v4632_v46 = vmul.f32 -0.5, %v8060_v35  ;;  %v3027_v4 = vsel %vm3020_vm1, %v7904_v17, %v7983_v6  ;;  %v3826_v57 = vrot.slane %v3782_v42, 4 }
 0x270   : > { %v4638_v33 = vadd.f32 1.0, %v8090_v0  ;;  %v9474_v15 = vrot.slane %v9401_v5, 6  ;;  %v8109_v41 = vpop.permute.xlu0 %3847  ;;  %5619 = vpow2.f32 %v4577_v19  ;;  %v8114_v51 = vsel %vm4116_vm5, %v7810_v38, %v7964_v55 }
 0x271   : > { %v3583_v58 = vpop.permute.xlu1 %3582  ;;  %v2725_v31 = vadd.f32 %v9475_v52, %v2641_v53  ;;  %v3028_v17 = vsel %vm3020_vm1, %v7983_v6, %v8018_v63  ;;  %v8121_v5 = vadd.f32 %v3881_v18, %v3660_v47  ;;  %vm4486_vm10 = vcmp.ne.f32.partialorder %v7938_v26, %v7938_v26 }
 0x272   : > { %4342 = vrot.lane.b32.xlu0 %v9474_v15, %s5735_s11  ;;  %5621 = vlog2.f32 %v4638_v33  ;;  %v2726_v15 = vadd.f32 %v9476_v13, %v2642_v60  ;;  %v4624_v38 = vadd.f32 1.0, %v4623_v45  ;;  %v3334_v53 = vsel %vm3327_vm2, %v7931_v40, %v3298_v59  ;;  %v9480_v13 = vld [vmem:[#allocation79_spill] sm:$0xff] }
 0x273   : > { %3865 = vrot.lane.b32.xlu1 %v3826_v57, %s5733_s9  ;;  %v3069_v19 = vadd.f32 %v3027_v4, %v2725_v31  ;;  %v3335_v52 = vsel %vm3327_vm2, %v3298_v59, %v3300_v20  ;;  %vm4444_vm11 = vcmp.gt.f32.partialorder %v7938_v26, 20.0  ;;  %v4626_v6 = vand.u32 2147483647, %v8053_v10 }
 0x274   : > { %v4633_v63 = vadd.f32 1.0, %v4632_v46  ;;  %v3070_v47 = vadd.f32 %v3028_v17, %v2726_v15  ;;  %v9477_v18 = vrot.slane %v9400_v30, 6  ;;  %v2972_v60 = vrot.slane %v8038_v43, 1  ;;  %v8136_v33 = vpop.permute.xlu0 %4086  ;;  %v9478_v43 = vld [vmem:[#allocation12_spill] sm:$0xff] }
 0x275   : > { %v8138_v45 = vpop.permute.xlu1 %3586  ;;  %v4635_v40 = vand.u32 2147483647, %v8060_v35  ;;  %v4641_v20 = vmul.f32 -0.5, %v8090_v0  ;;  %v8146_v46 = vadd.f32 %v2905_v27, %v7977_v61  ;;  %v5616_v4 = vpop.eup %5615  ;;  %v3376_v30 = vadd.f32 %v3334_v53, %v3069_v19  ;;  %v9482_v53 = vld [vmem:[#allocation107_spill] sm:$0xff] }
 0x276   : > { %4346 = vrot.lane.b32.xlu0 %v9477_v18, %s5735_s11  ;;  %v3621_v59 = vsel %vm3612_vm3, %v8076_v54, %v8138_v45  ;;  %v3377_v57 = vadd.f32 %v3335_v52, %v3070_v47  ;;  %v9479_v31 = vrot.slane %v9478_v43, 5  ;;  %v8153_v15 = vadd.f32 %v7987_v32, %v9480_v13  ;;  %v5618_v18 = vpop.eup %5617 }
 0x277   : > { %v3663_v17 = vadd.f32 %v3621_v59, %v3378_v34  ;;  %vm4487_vm12 = vcmp.ne.f32.partialorder %v7941_v49, %v7941_v49  ;;  %v4622_v42 = vmul.f32 0.6931472, %v5616_v4  ;;  %v4625_v27 = vmul.f32 %v8053_v10, %v4624_v38  ;;  %v9483_v4 = vld [vmem:[#allocation104_spill] sm:$0xff] }
 0x278   : > { %4104 = vrot.lane.b32.xlu1 %v9479_v31, %s5734_s10  ;;  %v3215_v19 = vadd.f32 %v9481_v3, %v7792_v9  ;;  %v3214_v52 = vadd.f32 %v9482_v53, %v7776_v36  ;;  %vm4627_vm13 = vcmp.lt.f32.partialorder %v4626_v6, 0.0004427343  ;;  %v4631_v47 = vmul.f32 0.6931472, %v5618_v18  ;;  %v8164_v59 = vpop.permute.xlu0 %4090 }
 0x279   : > { %v4634_v34 = vmul.f32 %v8060_v35, %v4633_v63  ;;  %v8166_v43 = vpop.permute.xlu1 %3845  ;;  %v3500_v31 = vadd.f32 %v9483_v4, %v7792_v9  ;;  %v4628_v10 = vsel %vm4627_vm13, %v4625_v27, %v4622_v42  ;;  %vm8170_vm14 = vcmp.lt.f32.partialorder %v4635_v40, 0.0004427343 }
 0x27a   : > { %3012 = vrot.lane.b32.xlu0 %v2972_v60, %s5731_s7  ;;  %vm4488_vm15 = vcmp.ne.f32.partialorder %v7971_v14, %v7971_v14  ;;  %v4642_v3 = vadd.f32 1.0, %v4641_v20  ;;  %v8177_v35 = vadd.f32 %v3215_v19, %v7977_v61  ;;  %vm4445_vm0 = vcmp.gt.f32.partialorder %v7941_v49, 20.0  ;;  %v9486_v60 = vld [vmem:[#allocation55_spill] sm:$0xff]  ;;  %v8190_v13 = vpop.eup %5619 }
 0x27b   : > { %v4637_v6 = vsel %vm8170_vm14, %v4634_v34, %v4631_v47  ;;  %v4801_v63 = vadd.f32 %v4628_v10, %v4465_v56  ;;  %vm4446_vm7 = vcmp.gt.f32.partialorder %v7971_v14, 20.0  ;;  %v4644_v42 = vand.u32 2147483647, %v8090_v0 }
 0x27c   : > { %v9487_v40 = vrot.slane %v9486_v60, 6  ;;  %v3279_v20 = vrot.slane %v8058_v62, 2  ;;  %v3619_v18 = vsel %vm3612_vm3, %v7957_v12, %v3583_v58  ;;  %v3620_v27 = vsel %vm3612_vm3, %v3583_v58, %v8076_v54  ;;  %v5622_v53 = vpop.eup %5621 }
 0x27d   : > { %v3564_v56 = vrot.slane %v8088_v16, 3  ;;  %v8198_v19 = vadd.f32 %v3214_v52, %v7848_v11  ;;  %v9488_v47 = vmax.f32 %v7941_v49, 0.0  ;;  %v4822_v62 = vsel %vm4486_vm10, %v7938_v26, %v4801_v63  ;;  %v8207_v12 = vpop.permute.xlu1 %3849  ;;  %v9489_v16 = vld [vmem:[#allocation63_spill] sm:$0xff] }
 0x27e   : > { %4340 = vrot.lane.b32.xlu1 %v9487_v40, %s5735_s11  ;;  %3319 = vrot.lane.b32.xlu0 %v3279_v20, %s5730_s6  ;;  %v8210_v54 = vadd.f32 %v3500_v31, %v7977_v61  ;;  %v8214_v58 = vadd.f32 %v9489_v16, %v7987_v32  ;;  %v4843_v52 = vsel %vm4444_vm11, %v7938_v26, %v4822_v62  ;;  %v4640_v4 = vmul.f32 0.6931472, %v5622_v53  ;;  %v9490_v31 = vld [vmem:[#allocation53_spill] sm:$0xff]  ;;  %v4327_v26 = vpop.permute.xlu0 %4326 }
 0x27f   : > { %v4802_v34 = vadd.f32 %v4637_v6, %v9488_v47  ;;  %v4643_v10 = vmul.f32 %v8090_v0, %v4642_v3  ;;  %v3884_v38 = vsel %vm3875_vm4, %v8109_v41, %v8207_v12  ;;  %v4884_v6 = vcombine.low %v7995_v48, %v4843_v52 }
 0x280   : > { %vm4645_vm8 = vcmp.lt.f32.partialorder %v4644_v42, 0.0004427343  ;;  %v9491_v63 = vrot.slane %v9490_v31, 6  ;;  %v3882_v60 = vsel %vm3875_vm4, %v7981_v2, %v8166_v43  ;;  %v3926_v40 = vadd.f32 %v3884_v38, %v3663_v17  ;;  %v9493_v2 = vld [vmem:[#allocation46_spill] sm:$0xff] }
 0x281   : > { %v4646_v20 = vsel %vm4645_vm8, %v4643_v10, %v4640_v4  ;;  %v4647_v0 = vadd.f32 1.0, %v8190_v13  ;;  %v3661_v3 = vadd.f32 %v3619_v18, %v3376_v30  ;;  %v4068_v53 = vrot.slane %v8044_v24, 5  ;;  %v4089_v30 = vpop.permute.xlu1 %4088  ;;  %v9494_v24 = vld [vmem:[#allocation108_spill] sm:$0xff]  ;;  %v9495_v4 = vld [vmem:[#allocation101_spill] sm:$0xff] }
 0x282   : > { %4344 = vrot.lane.b32.xlu1 %v9491_v63, %s5735_s11  ;;  %v4823_v48 = vsel %vm4487_vm12, %v7941_v49, %v4802_v34  ;;  %v9492_v42 = vmax.f32 %v7971_v14, 0.0  ;;  %v3662_v62 = vadd.f32 %v3620_v27, %v3377_v57  ;;  %3604 = vrot.lane.b32.xlu0 %v3564_v56, %s5732_s8  ;;  %v3763_v17 = vadd.f32 %v9493_v2, %v7792_v9 }
 0x283   : > { %v3924_v16 = vadd.f32 %v3882_v60, %v3661_v3  ;;  %v3827_v52 = vrot.slane %v8094_v1, 4  ;;  %v3499_v18 = vadd.f32 %v9494_v24, %v7776_v36  ;;  %v8246_v10 = vadd.f32 %v9495_v4, %v7848_v11  ;;  %v8269_v60 = vpop.permute.xlu0 %4330  ;;  %v9496_v3 = vld [vmem:[#allocation45_spill] sm:$0xff] }
 0x284   : > { %v4803_v47 = vadd.f32 %v4646_v20, %v9492_v42  ;;  %v2973_v27 = vrot.slane %v8097_v50, 1  ;;  %v4125_v1 = vsel %vm4116_vm5, %v4089_v30, %v8164_v59  ;;  %v8257_v56 = vadd.f32 %v3763_v17, %v7977_v61 }
 0x285   : > { %v4844_v34 = vsel %vm4445_vm0, %v7941_v49, %v4823_v48  ;;  %v4123_v31 = vsel %vm4116_vm5, %v7964_v55, %v8136_v33  ;;  %v4167_v63 = vadd.f32 %v4125_v1, %v3926_v40  ;;  %v4164_v20 = vadd.f32 %v8114_v51, %v8121_v5  ;;  %v4325_v42 = vpop.permute.xlu1 %4324 }
 0x286   : > { %v4824_v57 = vsel %vm4488_vm15, %v7971_v14, %v4803_v47  ;;  %4108 = vrot.lane.b32.xlu1 %v4068_v53, %s5734_s10  ;;  %3867 = vrot.lane.b32.xlu0 %v3827_v52, %s5733_s9  ;;  %v9497_v53 = vld [vmem:[#allocation85_spill] sm:$0xff]  ;;  %v8276_v48 = vadd.f32 %v3499_v18, %v7848_v11  ;;  %v2974_v55 = vrot.slane %v8146_v46, 1  ;;  %v4165_v40 = vadd.f32 %v4123_v31, %v3924_v16  ;;  %v9498_v47 = vld [vmem:[#allocation8_spill] sm:$0xff] }
 0x287   : > { %v4845_v38 = vsel %vm4446_vm7, %v7971_v14, %v4824_v57  ;;  %v2560_v49 = vadd.f32 %v9497_v53, %v9496_v3  ;;  %v3883_v14 = vsel %vm3875_vm4, %v8166_v43, %v8109_v41  ;;  %v8284_v2 = vadd.f32 %v9498_v47, %v7987_v32  ;;  %v9499_v52 = vld [vmem:[#allocation88_spill] sm:$0xff]  ;;  %v9500_v57 = vld [vmem:[#allocation9_spill] sm:$0xff] }
 0x288   : > { %v4885_v50 = vcombine.low %v4844_v34, %v4845_v38  ;;  %v8287_v51 = vrot.slane %v4884_v6, %v8055_v7  ;;  %v4362_v17 = vsel %vm4356_vm6, %v7872_v23, %v4325_v42  ;;  %v4363_v41 = vsel %vm4356_vm6, %v4325_v42, %v4327_v26  ;;  %v9501_v34 = vld [vmem:[#allocation64_spill] sm:$0xff] }
 0x289   : > { %v2975_v46 = vrot.slane %v8153_v15, 1  ;;  %v4404_v43 = vadd.f32 %v4362_v17, %v4164_v20  ;;  %v4405_v16 = vadd.f32 %v4363_v41, %v4165_v40  ;;  %v2644_v24 = vadd.f32 %v9499_v52, %v2560_v49  ;;  %v4329_v1 = vpop.permute.xlu1 %4328 }
 0x28a   : > { %v8290_v5 = vrot.slane %v4885_v50, %v8055_v7  ;;  %3014 = vrot.lane.b32.xlu1 %v2973_v27, %s5731_s7  ;;  %v3925_v18 = vadd.f32 %v3883_v14, %v3662_v62  ;;  %v4124_v4 = vsel %vm4116_vm5, %v8136_v33, %v4089_v30  ;;  %3016 = vrot.lane.b32.xlu0 %v2974_v55, %s5731_s7  ;;  %v9502_v62 = vld [vmem:[#allocation42_spill] sm:$0xff]  ;;  %v3281_v30 = vrot.slane %v8177_v35, 2  ;;  %v9503_v14 = vld [vmem:[#allocation93_spill] sm:$0xff] }
 0x28b   : > { %v8305_v23 = vadd.f32 %v9500_v57, %v7987_v32  ;;  %v8308_v27 = vadd.f32 %v9447_v8, %v4404_v43  ;;  %v8311_v15 = vadd.f32 %v9447_v8, %v4405_v16  ;;  %v3762_v38 = vadd.f32 %v9501_v34, %v7776_v36  ;;  %v2997_v33 = vpop.permute.xlu0 %2996  ;;  %v9506_v34 = vld [vmem:[#allocation44_spill] sm:$0xff] }
 0x28c   : > { %v4916_v6 = vcombine.low %v8287_v51, %v8290_v5  ;;  %v8317_v31 = vadd.f32 %v9502_v62, %v7977_v61  ;;  %v4364_v50 = vsel %vm4356_vm6, %v4327_v26, %v4329_v1  ;;  %v4365_v20 = vsel %vm4356_vm6, %v4329_v1, %v8269_v60 }
 0x28d   : > { %5623 = vlog2.f32 %v4647_v0  ;;  %v4166_v3 = vadd.f32 %v4124_v4, %v3925_v18  ;;  %v4532_v53 = vand.u32 2147483647, %v8308_v27  ;;  %v4533_v49 = vand.u32 2147483647, %v8311_v15  ;;  %v8334_v0 = vpop.permute.xlu1 %4092 }
 0x28e   : > { %3018 = vrot.lane.b32.xlu1 %v2975_v46, %s5731_s7  ;;  %v2728_v55 = vadd.f32 %v9503_v14, %v2644_v24  ;;  %3323 = vrot.lane.b32.xlu0 %v3281_v30, %s5730_s6  ;;  %v3280_v40 = vrot.slane %v8198_v19, 2  ;;  %v3030_v35 = vsel %vm3020_vm1, %v8021_v22, %v2997_v33  ;;  %v8331_v26 = vadd.f32 %v4365_v20, %v4167_v63  ;;  %v9504_v63 = vld [vmem:[#allocation52_spill] sm:$0xff]  ;;  %v9508_v20 = vld [vmem:[#allocation58_spill] sm:$0xff] }
 0x28f   : > { %v4406_v42 = vadd.f32 %v4364_v50, %v4166_v3  ;;  %v3566_v47 = vrot.slane %v8210_v54, 3  ;;  %v4553_v17 = vsub.f32 0.0, %v4532_v53  ;;  %v4554_v41 = vsub.f32 0.0, %v4533_v49  ;;  %v3304_v43 = vpop.permute.xlu0 %3303  ;;  %v9505_v54 = vld [vmem:[#allocation43_spill] sm:$0xff] }
 0x290   : > { %v3072_v46 = vadd.f32 %v3030_v35, %v2728_v55  ;;  %v4126_v19 = vsel %vm4116_vm5, %v8164_v59, %v8334_v0  ;;  %v3337_v22 = vsel %vm3327_vm2, %v8078_v28, %v3304_v43  ;;  %v2561_v52 = vadd.f32 %v9505_v54, %v9504_v63  ;;  %v9507_v50 = vld [vmem:[#allocation47_spill] sm:$0xff] }
 0x291   : > { %v8341_v16 = vadd.f32 %v9447_v8, %v4406_v42  ;;  %v4579_v24 = vmul.f32 1.442695, %v4553_v17  ;;  %v4581_v18 = vmul.f32 1.442695, %v4554_v41  ;;  %v3282_v57 = vrot.slane %v8214_v58, 2  ;;  %v9511_v42 = vld [vmem:[#allocation11_spill] sm:$0xff] }
 0x292   : > { %3321 = vrot.lane.b32.xlu1 %v3280_v40, %s5730_s6  ;;  %v3379_v4 = vadd.f32 %v3337_v22, %v3072_v46  ;;  %3608 = vrot.lane.b32.xlu0 %v3566_v47, %s5732_s8  ;;  %v3829_v1 = vrot.slane %v8257_v56, 4  ;;  %v2645_v59 = vadd.f32 %v9506_v34, %v2561_v52  ;;  %v3565_v30 = vrot.slane %v8276_v48, 3  ;;  %v9509_v56 = vld [vmem:[#allocation10_spill] sm:$0xff]  ;;  %v2999_v49 = vpop.permute.xlu1 %2998  ;;  %v9510_v48 = vld [vmem:[#allocation49_spill] sm:$0xff]  ;;  %v9513_v52 = vld [vmem:[#allocation116_spill] sm:$0xff] }
 0x293   : > { %5625 = vpow2.f32 %v4579_v24  ;;  %v4534_v62 = vand.u32 2147483647, %v8341_v16  ;;  %v8353_v28 = vpop.permute.xlu0 %3588  ;;  %v2562_v3 = vadd.f32 %v9508_v20, %v9507_v50  ;;  %v3784_v14 = vadd.f32 %v3762_v38, %v7848_v11  ;;  %v9514_v24 = vld [vmem:[#allocation118_spill] sm:$0xff] }
 0x294   : > { %5627 = vpow2.f32 %v4581_v18  ;;  %v3622_v58 = vsel %vm3612_vm3, %v8138_v45, %v8353_v28  ;;  %v2729_v53 = vadd.f32 %v9509_v56, %v2645_v59  ;;  %v3031_v35 = vsel %vm3020_vm1, %v2997_v33, %v2999_v49  ;;  %v9512_v45 = vld [vmem:[#allocation94_spill] sm:$0xff]  ;;  %v9515_v59 = vld [vmem:[#allocation119_spill] sm:$0xff] }
 0x295   : > { %v4555_v55 = vsub.f32 0.0, %v4534_v62  ;;  %v3664_v40 = vadd.f32 %v3622_v58, %v3379_v4  ;;  %v2563_v47 = vadd.f32 %v9511_v42, %v9510_v48  ;;  %v4650_v41 = vmul.f32 -0.5, %v8190_v13 }
 0x296   : > { %3325 = vrot.lane.b32.xlu1 %v3282_v57, %s5730_s6  ;;  %3871 = vrot.lane.b32.xlu0 %v3829_v1, %s5733_s9  ;;  %v3073_v46 = vadd.f32 %v3031_v35, %v2729_v53  ;;  %v8370_v22 = vadd.f32 %v9512_v45, %v7987_v32  ;;  %v4069_v54 = vrot.slane %v8246_v10, 5  ;;  %v2646_v33 = vadd.f32 %v9513_v52, %v2562_v3  ;;  %v8381_v57 = vpop.permute.xlu1 %3002  ;;  %v9519_v45 = vld [vmem:[#allocation124_spill] sm:$0xff] }
 0x297   : > { %v5624_v17 = vpop.eup %5623  ;;  %v4583_v63 = vmul.f32 1.442695, %v4555_v55  ;;  %v8373_v38 = vpop.permute.xlu0 %3851  ;;  %v2647_v18 = vadd.f32 %v9514_v24, %v2563_v47  ;;  %v3567_v1 = vrot.slane %v8284_v2, 3  ;;  %v4651_v34 = vadd.f32 1.0, %v4650_v41 }
 0x298   : > { %v3885_v4 = vsel %vm3875_vm4, %v8207_v12, %v8373_v38  ;;  %v2730_v62 = vadd.f32 %v9515_v59, %v2646_v33  ;;  %v3830_v20 = vrot.slane %v8305_v23, 4  ;;  %v4649_v12 = vmul.f32 0.6931472, %v5624_v17  ;;  %v9517_v17 = vld [vmem:[#allocation100_spill] sm:$0xff] }
 0x299   : > { %5629 = vpow2.f32 %v4583_v63  ;;  %v3927_v32 = vadd.f32 %v3885_v4, %v3664_v40  ;;  %v4653_v58 = vand.u32 2147483647, %v8190_v13  ;;  %v3828_v48 = vrot.slane %v3784_v14, 4 }
 0x29a   : > { %3606 = vrot.lane.b32.xlu1 %v3565_v30, %s5732_s8  ;;  %4110 = vrot.lane.b32.xlu0 %v4069_v54, %s5734_s10  ;;  %v9516_v30 = vld [vmem:[#allocation60_spill] sm:$0xff]  ;;  %v3306_v53 = vpop.permute.xlu1 %3305  ;;  %v4309_v63 = vrot.slane %v9519_v45, 6  ;;  %v4652_v54 = vmul.f32 %v8190_v13, %v4651_v34  ;;  %v4070_v13 = vrot.slane %v8317_v31, 5  ;;  %v8421_v4 = vadd.f32 %v9447_v8, %v8331_v26  ;;  %v9524_v26 = vld [vmem:[#allocation109_spill] sm:$0xff] }
 0x29b   : > { %v3001_v10 = vpop.permute.xlu0 %3000  ;;  %v2731_v50 = vadd.f32 %v9516_v30, %v2647_v18  ;;  %v8389_v3 = vadd.f32 %v4126_v19, %v3927_v32  ;;  %v3338_v23 = vsel %vm3327_vm2, %v3304_v43, %v3306_v53  ;;  %vm8408_vm9 = vcmp.lt.f32.partialorder %v4653_v58, 0.0004427343  ;;  %v9522_v30 = vld [vmem:[#allocation106_spill] sm:$0xff] }
 0x29c   : > { %v3032_v56 = vsel %vm3020_vm1, %v2999_v49, %v3001_v10  ;;  %v3033_v2 = vsel %vm3020_vm1, %v3001_v10, %v8381_v57  ;;  %v3380_v47 = vadd.f32 %v3338_v23, %v3073_v46  ;;  %v9518_v49 = vld [vmem:[#allocation72_spill] sm:$0xff]  ;;  %v4655_v24 = vsel %vm8408_vm9, %v4652_v54, %v4649_v12  ;;  %v9525_v12 = vld [vmem:[#allocation61_spill] sm:$0xff] }
 0x29d   : > { %v8395_v55 = vpop.eup %5625  ;;  %v3074_v40 = vadd.f32 %v3032_v56, %v2730_v62  ;;  %v3075_v35 = vadd.f32 %v3033_v2, %v2731_v50  ;;  %v2569_v41 = vadd.f32 %v9518_v49, %v9517_v17  ;;  %v9523_v50 = vld [vmem:[#allocation90_spill] sm:$0xff]  ;;  %v2571_v58 = vadd.f32 %v9525_v12, %v9524_v26 }
 0x29e   : > { %3610 = vrot.lane.b32.xlu1 %v3567_v1, %s5732_s8  ;;  %3873 = vrot.lane.b32.xlu0 %v3830_v20, %s5733_s9  ;;  %v8399_v19 = vpop.eup %5627  ;;  %v4656_v42 = vadd.f32 1.0, %v8395_v55  ;;  %v4071_v1 = vrot.slane %v8370_v22, 5  ;;  %v4659_v59 = vmul.f32 -0.5, %v8395_v55  ;;  %v2570_v20 = vadd.f32 %v9523_v50, %v9522_v30 }
 0x29f   : > { %v4665_v52 = vadd.f32 1.0, %v8399_v19  ;;  %v3308_v33 = vpop.permute.xlu0 %3307  ;;  %v2653_v34 = vadd.f32 %v7647_v39, %v2569_v41  ;;  %v4468_v56 = vmax.f32 %v8001_v25, 0.0  ;;  %v4668_v22 = vmul.f32 -0.5, %v8399_v19 }
 0x2a0   : > { %5631 = vlog2.f32 %v4656_v42  ;;  %v3339_v43 = vsel %vm3327_vm2, %v3306_v53, %v3308_v33  ;;  %v9526_v53 = vld [vmem:[#allocation123_spill] sm:$0xff]  ;;  %vm4489_vm10 = vcmp.ne.f32.partialorder %v8001_v25, %v8001_v25  ;;  %v2655_v49 = vadd.f32 %v7792_v9, %v2571_v58 }
 0x2a1   : > { %v8413_v46 = vpop.permute.xlu1 %3309  ;;  %5633 = vlog2.f32 %v4665_v52  ;;  %v3381_v18 = vadd.f32 %v3339_v43, %v3074_v40  ;;  %v8439_v2 = vadd.f32 %v7795_v37, %v2653_v34  ;;  %v4308_v40 = vrot.slane %v9526_v53, 6 }
 0x2a2   : > { %3869 = vrot.lane.b32.xlu1 %v3828_v48, %s5733_s9  ;;  %4350 = vrot.lane.b32.xlu0 %v4309_v63, %s5735_s11  ;;  %v3340_v32 = vsel %vm3327_vm2, %v3308_v33, %v8413_v46  ;;  %v9527_v48 = vld [vmem:[#allocation125_spill] sm:$0xff]  ;;  %v4804_v42 = vadd.f32 %v4655_v24, %v4468_v56  ;;  %v4660_v41 = vadd.f32 1.0, %v4659_v59  ;;  %v4662_v37 = vand.u32 2147483647, %v8395_v55 }
 0x2a3   : > { %v8427_v10 = vpop.eup %5629  ;;  %v3593_v31 = vpop.permute.xlu0 %3592  ;;  %v3382_v62 = vadd.f32 %v3340_v32, %v3075_v35  ;;  %v4310_v23 = vrot.slane %v9527_v48, 6  ;;  %v2654_v35 = vadd.f32 %v7776_v36, %v2570_v20  ;;  %v4535_v45 = vand.u32 2147483647, %v8421_v4 }
 0x2a4   : > { %v4674_v39 = vadd.f32 1.0, %v8427_v10  ;;  %v4669_v54 = vadd.f32 1.0, %v4668_v22  ;;  %v4671_v9 = vand.u32 2147483647, %v8399_v19  ;;  %v4677_v43 = vmul.f32 -0.5, %v8427_v10 }
 0x2a5   : > { %v3591_v17 = vpop.permute.xlu1 %3590  ;;  %v8457_v14 = vadd.f32 %v7848_v11, %v2654_v35  ;;  %v4469_v11 = vmax.f32 %v8308_v27, 0.0  ;;  %v4661_v30 = vmul.f32 %v8395_v55, %v4660_v41  ;;  %v4556_v50 = vsub.f32 0.0, %v4535_v45 }
 0x2a6   : > { %4112 = vrot.lane.b32.xlu1 %v4070_v13, %s5734_s10  ;;  %4114 = vrot.lane.b32.xlu0 %v4071_v1, %s5734_s10  ;;  %5635 = vlog2.f32 %v4674_v39  ;;  %v3623_v36 = vsel %vm3612_vm3, %v8353_v28, %v3591_v17  ;;  %v3624_v52 = vsel %vm3612_vm3, %v3591_v17, %v3593_v31  ;;  %v8464_v13 = vadd.f32 %v7977_v61, %v2655_v49  ;;  %v9528_v1 = vld [vmem:[#allocation126_spill] sm:$0xff] }
 0x2a7   : > { %v8451_v63 = vpop.permute.xlu0 %3855  ;;  %v3665_v33 = vadd.f32 %v3623_v36, %v3380_v47  ;;  %v8461_v24 = vadd.f32 %v3624_v52, %v3381_v18  ;;  %v4311_v34 = vrot.slane %v9528_v1, 6  ;;  %v4825_v28 = vsel %vm4489_vm10, %v8001_v25, %v4804_v42  ;;  %v9530_v1 = vld [vmem:[#allocation112_spill] sm:$0xff] }
 0x2a8   : > { %vm4663_vm11 = vcmp.lt.f32.partialorder %v4662_v37, 0.0004427343  ;;  %v4670_v26 = vmul.f32 %v8399_v19, %v4669_v54  ;;  %vm4672_vm12 = vcmp.lt.f32.partialorder %v4671_v9, 0.0004427343  ;;  %v4678_v56 = vadd.f32 1.0, %v4677_v43 }
 0x2a9   : > { %v8476_v61 = vpop.permute.xlu1 %3594  ;;  %v4470_v55 = vmax.f32 %v8311_v15, 0.0  ;;  %vm4490_vm13 = vcmp.ne.f32.partialorder %v8308_v27, %v8308_v27  ;;  %v4585_v48 = vmul.f32 1.442695, %v4556_v50  ;;  %vm4447_vm14 = vcmp.gt.f32.partialorder %v8001_v25, 20.0 }
 0x2aa   : > { %4348 = vrot.lane.b32.xlu1 %v4308_v40, %s5735_s11  ;;  %v5632_v32 = vpop.eup %5631  ;;  %v3625_v12 = vsel %vm3612_vm3, %v3593_v31, %v8476_v61  ;;  %v4680_v40 = vand.u32 2147483647, %v8427_v10  ;;  %vm4448_vm15 = vcmp.gt.f32.partialorder %v8308_v27, 20.0  ;;  %v4846_v35 = vsel %vm4447_vm14, %v8001_v25, %v4825_v28 }
 0x2ab   : > { %v5634_v47 = vpop.eup %5633  ;;  %v4658_v59 = vmul.f32 0.6931472, %v5632_v32  ;;  %v8474_v18 = vpop.permute.xlu0 %4094  ;;  %v8481_v22 = vadd.f32 %v3625_v12, %v3382_v62  ;;  %v4679_v49 = vmul.f32 %v8427_v10, %v4678_v56  ;;  %v4471_v45 = vmax.f32 %v8341_v16, 0.0  ;;  %v9529_v32 = vld [vmem:[#allocation18_spill] sm:$0xff] }
 0x2ac   : > { %v4667_v20 = vmul.f32 0.6931472, %v5634_v47  ;;  %vm4681_vm0 = vcmp.lt.f32.partialorder %v4680_v40, 0.0004427343  ;;  %vm4491_vm7 = vcmp.ne.f32.partialorder %v8311_v15, %v8311_v15  ;;  %5637 = vpow2.f32 %v4585_v48  ;;  %v9532_v12 = vld [vmem:[#allocation50_spill] sm:$0xff] }
 0x2ad   : > { %v4664_v58 = vsel %vm4663_vm11, %v4661_v30, %v4658_v59  ;;  %v4127_v9 = vsel %vm4116_vm5, %v8334_v0, %v8474_v18  ;;  %vm4492_vm8 = vcmp.ne.f32.partialorder %v8341_v16, %v8341_v16  ;;  %vm4449_vm9 = vcmp.gt.f32.partialorder %v8311_v15, 20.0 }
 0x2ae   : > { %4352 = vrot.lane.b32.xlu1 %v4310_v23, %s5735_s11  ;;  %v4673_v39 = vsel %vm4672_vm12, %v4670_v26, %v4667_v20  ;;  %v4805_v53 = vadd.f32 %v4664_v58, %v4469_v11  ;;  %vm4450_vm10 = vcmp.gt.f32.partialorder %v8341_v16, 20.0  ;;  %v9531_v11 = vld [vmem:[#allocation117_spill] sm:$0xff]  ;;  %vm4493_vm12 = vcmp.ne.f32.partialorder %v8421_v4, %v8421_v4 }
 0x2af   : > { %v8488_v19 = vpop.permute.xlu0 %4098  ;;  %v4806_v62 = vadd.f32 %v4673_v39, %v4470_v55  ;;  %v3854_v41 = vpop.permute.xlu1 %3853  ;;  %v4924_v39 = vrot.slane %v4916_v6, %v8055_v7 }
 0x2b0   : > { %v5636_v31 = vpop.eup %5635  ;;  %v4826_v23 = vsel %vm4490_vm13, %v8308_v27, %v4805_v53  ;;  %v3886_v36 = vsel %vm3875_vm4, %v8373_v38, %v3854_v41  ;;  %vm4451_vm13 = vcmp.gt.f32.partialorder %v8421_v4, 20.0 }
 0x2b1   : > { %v4847_v42 = vsel %vm4448_vm15, %v8308_v27, %v4826_v23  ;;  %v4676_v17 = vmul.f32 0.6931472, %v5636_v31  ;;  %v3928_v27 = vadd.f32 %v3886_v36, %v3665_v33  ;;  %v4827_v10 = vsel %vm4491_vm7, %v8311_v15, %v4806_v62 }
 0x2b2   : > { %4354 = vrot.lane.b32.xlu1 %v4311_v34, %s5735_s11  ;;  %v4886_v37 = vcombine.low %v4846_v35, %v4847_v42  ;;  %v2564_v34 = vadd.f32 %v9530_v1, %v9529_v32  ;;  %v4848_v28 = vsel %vm4449_vm9, %v8311_v15, %v4827_v10  ;;  %v3887_v31 = vsel %vm3875_vm4, %v3854_v41, %v8451_v63 }
 0x2b3   : > { %v4682_v25 = vsel %vm4681_vm0, %v4679_v49, %v4676_v17  ;;  %v4335_v54 = vpop.permute.xlu0 %4334  ;;  %v8508_v38 = vpop.permute.xlu1 %3857  ;;  %v4169_v43 = vadd.f32 %v4127_v9, %v3928_v27  ;;  %v3929_v17 = vadd.f32 %v3887_v31, %v8461_v24 }
 0x2b4   : > { %v4807_v52 = vadd.f32 %v4682_v25, %v4471_v45  ;;  %v2648_v59 = vadd.f32 %v9531_v11, %v2564_v34  ;;  %v4908_v20 = vrot.slane %v4886_v37, %v8055_v7  ;;  %v9533_v34 = vld [vmem:[#allocation19_spill] sm:$0xff] }
 0x2b6   : > { %v4828_v33 = vsel %vm4492_vm8, %v8341_v16, %v4807_v52  ;;  %v2732_v58 = vadd.f32 %v9532_v12, %v2648_v59  ;;  %v8531_v55 = vpop.eup %5637 }
 0x2b7   : > { %v4849_v0 = vsel %vm4450_vm10, %v8341_v16, %v4828_v33  ;;  %v8520_v47 = vpop.permute.xlu0 %4338  ;;  %v4097_v50 = vpop.permute.xlu1 %4096  ;;  %v2567_v33 = vadd.f32 %v9435_v44, %v9533_v34  ;;  %v9538_v34 = vld [vmem:[#allocation96_spill] sm:$0xff] }
 0x2b8   : > { %v4887_v30 = vcombine.low %v4848_v28, %v4849_v0  ;;  %v4128_v42 = vsel %vm4116_vm5, %v8474_v18, %v4097_v50  ;;  %v3888_v18 = vsel %vm3875_vm4, %v8451_v63, %v8508_v38  ;;  %v4129_v27 = vsel %vm4116_vm5, %v4097_v50, %v8488_v19 }
 0x2b9   : > { %v4170_v36 = vadd.f32 %v4128_v42, %v3929_v17 }
 0x2ba   : > { %v4915_v26 = vrot.slane %v4887_v30, %v8055_v7 }
 0x2bb   : > { %v8526_v56 = vpop.permute.xlu0 %3004 }
 0x2bc   : > { %v4917_v15 = vcombine.low %v4908_v20, %v4915_v26  ;;  %v3034_v16 = vsel %vm3020_vm1, %v8381_v57, %v8526_v56  ;;  %v4333_v53 = vpop.permute.xlu1 %4332  ;;  %v4683_v57 = vadd.f32 1.0, %v8531_v55  ;;  %v4686_v20 = vmul.f32 -0.5, %v8531_v55 }
 0x2bd   : > { %v3076_v40 = vadd.f32 %v3034_v16, %v2732_v58  ;;  %v4366_v62 = vsel %vm4356_vm6, %v8269_v60, %v4333_v53  ;;  %v4367_v23 = vsel %vm4356_vm6, %v4333_v53, %v4335_v54  ;;  %v9534_v58 = vld [vmem:[#allocation98_spill] sm:$0xff] }
 0x2be   : > { %v4931_v48 = vrot.slane %v4917_v15, %v8055_v7  ;;  %v4408_v51 = vadd.f32 %v4366_v62, %v8389_v3  ;;  %v4409_v5 = vadd.f32 %v4367_v23, %v4169_v43  ;;  %5639 = vlog2.f32 %v4683_v57 }
 0x2bf   : > { %v8549_v6 = vpop.permute.xlu0 %3311  ;;  %v4689_v62 = vand.u32 2147483647, %v8531_v55 }
 0x2c0   : > { %v4932_v35 = vcombine.low %v4924_v39, %v4931_v48  ;;  %v3341_v60 = vsel %vm3327_vm2, %v8413_v46, %v8549_v6  ;;  %v8559_v49 = vadd.f32 %v9447_v8, %v4408_v51  ;;  %v8562_v3 = vadd.f32 %v9447_v8, %v4409_v5 }
 0x2c1   : > { %v4337_v41 = vpop.permute.xlu1 %4336  ;;  %v8564_v37 = vadd.f32 %v3341_v60, %v3076_v40  ;;  %v4687_v40 = vadd.f32 1.0, %v4686_v20  ;;  %vm4690_vm11 = vcmp.lt.f32.partialorder %v4689_v62, 0.0004427343 }
 0x2c2   : > { %5024 = vst [vmem:[%s8546_s15] sm:$0xff] %v4932_v35  ;;  %v4368_v45 = vsel %vm4356_vm6, %v4335_v54, %v4337_v41  ;;  %v4536_v24 = vand.u32 2147483647, %v8559_v49  ;;  %v4537_v25 = vand.u32 2147483647, %v8562_v3  ;;  %v3930_v54 = vadd.f32 %v3888_v18, %v8481_v22 }
 0x2c3   : > { %v8571_v46 = vpop.permute.xlu0 %3596  ;;  %v4410_v10 = vadd.f32 %v4368_v45, %v4170_v36  ;;  %v4369_v63 = vsel %vm4356_vm6, %v4337_v41, %v8520_v47  ;;  %v2651_v22 = vadd.f32 %v7662_v29, %v2567_v33  ;;  %v4688_v57 = vmul.f32 %v8531_v55, %v4687_v40  ;;  %v9535_v55 = vld [vmem:[#allocation26_spill] sm:$0xff]  ;;  %v9543_v40 = vld [vmem:[#allocation59_spill] sm:$0xff] }
 0x2c4   : > { %v4557_v9 = vsub.f32 0.0, %v4536_v24  ;;  %v4558_v43 = vsub.f32 0.0, %v4537_v25  ;;  %v4171_v28 = vadd.f32 %v4129_v27, %v3930_v54  ;;  %v4472_v18 = vmax.f32 %v8421_v4, 0.0  ;;  %v9536_v27 = vld [vmem:[#allocation35_spill] sm:$0xff] }
 0x2c5   : > { %v8577_v52 = vpop.permute.xlu1 %4100  ;;  %v8583_v32 = vadd.f32 %v9447_v8, %v4410_v10  ;;  %v2735_v15 = vadd.f32 %v9534_v58, %v2651_v22  ;;  %v2566_v10 = vadd.f32 %v9536_v27, %v9535_v55  ;;  %v9541_v22 = vld [vmem:[#allocation62_spill] sm:$0xff]  ;;  %vm4452_vm14 = vcmp.gt.f32.partialorder %v8559_v49, 20.0 }
 0x2c6   : > { %v4587_v0 = vmul.f32 1.442695, %v4557_v9  ;;  %v4589_v11 = vmul.f32 1.442695, %v4558_v43  ;;  %v4411_v30 = vadd.f32 %v4369_v63, %v4171_v28  ;;  %v9537_v63 = vld [vmem:[#allocation32_spill] sm:$0xff]  ;;  %v9539_v28 = vld [vmem:[#allocation77_spill] sm:$0xff]  ;;  %vm4494_vm15 = vcmp.ne.f32.partialorder %v8559_v49, %v8559_v49 }
 0x2c7   : > { %v8585_v1 = vpop.permute.xlu0 %3859  ;;  %v4538_v50 = vand.u32 2147483647, %v8583_v32  ;;  %v2568_v33 = vadd.f32 %v9538_v34, %v9537_v63  ;;  %v4473_v34 = vmax.f32 %v8559_v49, 0.0  ;;  %vm4453_vm8 = vcmp.gt.f32.partialorder %v8562_v3, 20.0 }
 0x2c8   : > { %5641 = vpow2.f32 %v4587_v0  ;;  %v5640_v16 = vpop.eup %5639  ;;  %v8600_v39 = vadd.f32 %v9447_v8, %v4411_v30  ;;  %v9540_v0 = vld [vmem:[#allocation27_spill] sm:$0xff]  ;;  %v2650_v30 = vadd.f32 %v9541_v22, %v2566_v10  ;;  %vm4495_vm9 = vcmp.ne.f32.partialorder %v8562_v3, %v8562_v3 }
 0x2c9   : > { %v8589_v59 = vpop.permute.xlu1 %3006  ;;  %5643 = vpow2.f32 %v4589_v11  ;;  %v4559_v12 = vsub.f32 0.0, %v4538_v50  ;;  %v4685_v23 = vmul.f32 0.6931472, %v5640_v16  ;;  %v2565_v11 = vadd.f32 %v9540_v0, %v9539_v28 }
 0x2ca   : > { %v4539_v5 = vand.u32 2147483647, %v8600_v39 }
 0x2cb   : > { %v8594_v26 = vpop.permute.xlu0 %3008  ;;  %v4591_v53 = vmul.f32 1.442695, %v4559_v12  ;;  %v4691_v17 = vsel %vm4690_vm11, %v4688_v57, %v4685_v23  ;;  %vm4454_vm11 = vcmp.gt.f32.partialorder %v8583_v32, 20.0 }
 0x2cc   : > { %v4560_v24 = vsub.f32 0.0, %v4539_v5  ;;  %v4808_v43 = vadd.f32 %v4691_v17, %v4472_v18  ;;  %v9544_v5 = vld [vmem:[#allocation92_spill] sm:$0xff]  ;;  %v9545_v17 = vld [vmem:[#allocation122_spill] sm:$0xff] }
 0x2cd   : > { %v8597_v44 = vpop.permute.xlu1 %3010  ;;  %5645 = vpow2.f32 %v4591_v53 }
 0x2ce   : > { %v3037_v29 = vsel %vm3020_vm1, %v8594_v26, %v8597_v44  ;;  %v4593_v58 = vmul.f32 1.442695, %v4560_v24  ;;  %v4829_v23 = vsel %vm4493_vm12, %v8421_v4, %v4808_v43  ;;  %v3626_v24 = vsel %vm3612_vm3, %v8476_v61, %v8571_v46 }
 0x2cf   : > { %v3079_v48 = vadd.f32 %v3037_v29, %v2735_v15  ;;  %v8605_v31 = vpop.permute.xlu0 %3315  ;;  %v9542_v15 = vld [vmem:[#allocation105_spill] sm:$0xff]  ;;  %v8659_v55 = vsel %vm4451_vm13, %v8421_v4, %v4829_v23  ;;  %v3035_v43 = vsel %vm3020_vm1, %v8526_v56, %v8589_v59  ;;  %v4474_v4 = vmax.f32 %v8562_v3, 0.0 }
 0x2d0   : > { %v2652_v16 = vadd.f32 %v9542_v15, %v2568_v33  ;;  %v3668_v28 = vadd.f32 %v3626_v24, %v8564_v37  ;;  %v3889_v56 = vsel %vm3875_vm4, %v8508_v38, %v8585_v1  ;;  %v3036_v37 = vsel %vm3020_vm1, %v8589_v59, %v8594_v26 }
 0x2d1   : > { %v8608_v51 = vpop.permute.xlu1 %3313  ;;  %v4475_v59 = vmax.f32 %v8583_v32, 0.0  ;;  %vm4496_vm12 = vcmp.ne.f32.partialorder %v8583_v32, %v8583_v32 }
 0x2d2   : > { %v5642_v42 = vpop.eup %5641  ;;  %v3931_v26 = vadd.f32 %v3889_v56, %v3668_v28 }
 0x2d3   : > { %v8612_v35 = vpop.permute.xlu0 %3600  ;;  %v8614_v60 = vpop.eup %5643  ;;  %v4692_v41 = vadd.f32 1.0, %v5642_v42  ;;  %v4695_v12 = vmul.f32 -0.5, %v5642_v42  ;;  %v4698_v27 = vand.u32 2147483647, %v5642_v42 }
 0x2d4   : > { %v4701_v36 = vadd.f32 1.0, %v8614_v60  ;;  %v4704_v53 = vmul.f32 -0.5, %v8614_v60  ;;  %v4707_v61 = vand.u32 2147483647, %v8614_v60 }
 0x2d5   : > { %v8616_v45 = vpop.permute.xlu1 %3317  ;;  %5647 = vlog2.f32 %v4692_v41  ;;  %v2734_v41 = vadd.f32 %v9545_v17, %v2650_v30  ;;  %vm4699_vm0 = vcmp.lt.f32.partialorder %v4698_v27, 0.0004427343 }
 0x2d6   : > { %v3344_v25 = vsel %vm3327_vm2, %v8605_v31, %v8616_v45  ;;  %5649 = vlog2.f32 %v4701_v36  ;;  %v4696_v36 = vadd.f32 1.0, %v4695_v12  ;;  %v4705_v10 = vadd.f32 1.0, %v4704_v53 }
 0x2d7   : > { %v8625_v54 = vadd.f32 %v3344_v25, %v3079_v48  ;;  %v8627_v9 = vpop.permute.xlu0 %3863  ;;  %v8636_v20 = vpop.eup %5645  ;;  %v2649_v48 = vadd.f32 %v9543_v40, %v2565_v11  ;;  %v8656_v25 = vadd.f32 %v7728_v21, %v2652_v16  ;;  %vm4708_vm7 = vcmp.lt.f32.partialorder %v4707_v61, 0.0004427343 }
 0x2d8   : > { %v4710_v29 = vadd.f32 1.0, %v8636_v20  ;;  %v4713_v21 = vmul.f32 -0.5, %v8636_v20  ;;  %v4697_v30 = vmul.f32 %v5642_v42, %v4696_v36  ;;  %v4706_v16 = vmul.f32 %v8614_v60, %v4705_v10 }
 0x2d9   : > { %v8634_v50 = vpop.permute.xlu1 %3598  ;;  %v2733_v57 = vadd.f32 %v9544_v5, %v2649_v48  ;;  %v4716_v48 = vand.u32 2147483647, %v8636_v20  ;;  %v3343_v36 = vsel %vm3327_vm2, %v8608_v51, %v8605_v31  ;;  %v3078_v61 = vadd.f32 %v3036_v37, %v2734_v41 }
 0x2da   : > { %5651 = vlog2.f32 %v4710_v29  ;;  %v4714_v29 = vadd.f32 1.0, %v4713_v21  ;;  %v3627_v42 = vsel %vm3612_vm3, %v8571_v46, %v8634_v50  ;;  %v3628_v31 = vsel %vm3612_vm3, %v8634_v50, %v8612_v35 }
 0x2db   : > { %v8644_v62 = vpop.permute.xlu0 %4102  ;;  %5653 = vpow2.f32 %v4593_v58  ;;  %v3077_v12 = vadd.f32 %v3035_v43, %v2733_v57  ;;  %v3342_v58 = vsel %vm3327_vm2, %v8549_v6, %v8608_v51  ;;  %vm4717_vm10 = vcmp.lt.f32.partialorder %v4716_v48, 0.0004427343 }
 0x2dc   : > { %v3385_v28 = vadd.f32 %v3343_v36, %v3078_v61 }
 0x2dd   : > { %v8650_v18 = vpop.permute.xlu1 %3602  ;;  %v3384_v60 = vadd.f32 %v3342_v58, %v3077_v12 }
 0x2de   : > { %v3670_v56 = vadd.f32 %v3628_v31, %v3385_v28 }
 0x2df   : > { %v8664_v63 = vpop.permute.xlu0 %4106  ;;  %v5648_v33 = vpop.eup %5647  ;;  %v3669_v24 = vadd.f32 %v3627_v42, %v3384_v60 }
 0x2e0   : > { %v5650_v11 = vpop.eup %5649  ;;  %v4694_v22 = vmul.f32 0.6931472, %v5648_v33 }
 0x2e1   : > { %v3862_v0 = vpop.permute.xlu1 %3861  ;;  %v4703_v15 = vmul.f32 0.6931472, %v5650_v11  ;;  %v4131_v11 = vsel %vm4116_vm5, %v8577_v52, %v8644_v62 }
 0x2e2   : > { %v4700_v38 = vsel %vm4699_vm0, %v4697_v30, %v4694_v22  ;;  %v3890_v5 = vsel %vm3875_vm4, %v8585_v1, %v3862_v0  ;;  %v3891_v12 = vsel %vm3875_vm4, %v3862_v0, %v8627_v9 }
 0x2e3   : > { %v4709_v6 = vsel %vm4708_vm7, %v4706_v16, %v4703_v15  ;;  %v4809_v40 = vadd.f32 %v4700_v38, %v4473_v34  ;;  %v4715_v34 = vmul.f32 %v8636_v20, %v4714_v29  ;;  %v3932_v51 = vadd.f32 %v3890_v5, %v3669_v24 }
 0x2e4   : > { %v8684_v53 = vpop.permute.xlu0 %4342  ;;  %v5652_v57 = vpop.eup %5651  ;;  %v4810_v46 = vadd.f32 %v4709_v6, %v4474_v4 }
 0x2e5   : > { %v8691_v23 = vpop.permute.xlu1 %3865  ;;  %v4830_v17 = vsel %vm4494_vm15, %v8559_v49, %v4809_v40  ;;  %v8707_v10 = vpop.eup %5653  ;;  %v4712_v43 = vmul.f32 0.6931472, %v5652_v57  ;;  %v4173_v58 = vadd.f32 %v4131_v11, %v3932_v51  ;;  %vm4455_vm15 = vcmp.gt.f32.partialorder %v8600_v39, 20.0 }
 0x2e6   : > { %v4851_v1 = vsel %vm4452_vm14, %v8559_v49, %v4830_v17  ;;  %v4130_v49 = vsel %vm4116_vm5, %v8488_v19, %v8577_v52  ;;  %v4831_v20 = vsel %vm4495_vm9, %v8562_v3, %v4810_v46  ;;  %v4719_v50 = vadd.f32 1.0, %v8707_v10 }
 0x2e7   : > { %v4933_v21 = vcombine.low %v8659_v55, %v4851_v1  ;;  %v4718_v4 = vsel %vm4717_vm10, %v4715_v34, %v4712_v43  ;;  %v4172_v19 = vadd.f32 %v4130_v49, %v3931_v26  ;;  %v4852_v37 = vsel %vm4453_vm8, %v8562_v3, %v4831_v20 }
 0x2e8   : > { %v8705_v27 = vpop.permute.xlu0 %4346  ;;  %v4811_v41 = vadd.f32 %v4718_v4, %v4475_v59  ;;  %5655 = vlog2.f32 %v4719_v50  ;;  %v3933_v3 = vadd.f32 %v3891_v12, %v3670_v56  ;;  %v3629_v17 = vsel %vm3612_vm3, %v8612_v35, %v8650_v18 }
 0x2e9   : > { %v4722_v31 = vmul.f32 -0.5, %v8707_v10  ;;  %v3671_v35 = vadd.f32 %v3629_v17, %v8625_v54  ;;  %v4725_v54 = vand.u32 2147483647, %v8707_v10  ;;  %vm4497_vm14 = vcmp.ne.f32.partialorder %v8600_v39, %v8600_v39 }
 0x2ea   : > { %v4105_v33 = vpop.permute.xlu1 %4104  ;;  %v4832_v30 = vsel %vm4496_vm12, %v8583_v32, %v4811_v41 }
 0x2eb   : > { %v4853_v52 = vsel %vm4454_vm11, %v8583_v32, %v4832_v30  ;;  %v4132_v40 = vsel %vm4116_vm5, %v8644_v62, %v4105_v33  ;;  %v4133_v49 = vsel %vm4116_vm5, %v4105_v33, %v8664_v63  ;;  %v4723_v11 = vadd.f32 1.0, %v4722_v31 }
 0x2ec   : > { %v8728_v55 = vpop.permute.xlu0 %3012  ;;  %v4934_v0 = vcombine.low %v4852_v37, %v4853_v52  ;;  %v4174_v57 = vadd.f32 %v4132_v40, %v3933_v3  ;;  %vm4726_vm13 = vcmp.lt.f32.partialorder %v4725_v54, 0.0004427343 }
 0x2ed   : > { %v3038_v22 = vsel %vm3020_vm1, %v8597_v44, %v8728_v55 }
 0x2ee   : > { %v3080_v16 = vadd.f32 %v3038_v22, %v8656_v25  ;;  %v8753_v25 = vrot.slane %v4933_v21, %v8055_v7  ;;  %v8761_v32 = vrot.slane %v4934_v0, %v8055_v7 }
 0x2f0   : > { %v4341_v15 = vpop.permute.xlu1 %4340  ;;  %v8750_v6 = vpop.permute.xlu0 %3319  ;;  %v4965_v62 = vcombine.low %v8753_v25, %v8761_v32 }
 0x2f1   : > { %v4370_v44 = vsel %vm4356_vm6, %v8520_v47, %v4341_v15  ;;  %v4371_v38 = vsel %vm4356_vm6, %v4341_v15, %v8684_v53  ;;  %v3345_v47 = vsel %vm3327_vm2, %v8616_v45, %v8750_v6 }
 0x2f2   : > { %v4412_v29 = vadd.f32 %v4370_v44, %v4172_v19  ;;  %v4413_v42 = vadd.f32 %v4371_v38, %v4173_v58  ;;  %v8769_v26 = vadd.f32 %v3345_v47, %v3080_v16  ;;  %v5656_v4 = vpop.eup %5655  ;;  %v4724_v16 = vmul.f32 %v8707_v10, %v4723_v11 }
 0x2f3   : > { %v4721_v12 = vmul.f32 0.6931472, %v5656_v4  ;;  %v4476_v38 = vmax.f32 %v8600_v39, 0.0 }
 0x2f4   : > { %v8764_v48 = vadd.f32 %v9447_v8, %v4412_v29  ;;  %v8767_v60 = vadd.f32 %v9447_v8, %v4413_v42  ;;  %v4345_v59 = vpop.permute.xlu1 %4344  ;;  %v8775_v45 = vpop.permute.xlu0 %3604 }
 0x2f5   : > { %v4372_v5 = vsel %vm4356_vm6, %v8684_v53, %v4345_v59  ;;  %v3892_v53 = vsel %vm3875_vm4, %v8627_v9, %v8691_v23  ;;  %v4373_v9 = vsel %vm4356_vm6, %v4345_v59, %v8705_v27  ;;  %v4727_v52 = vsel %vm4726_vm13, %v4724_v16, %v4721_v12 }
 0x2f6   : > { %v4540_v46 = vand.u32 2147483647, %v8764_v48  ;;  %v4541_v36 = vand.u32 2147483647, %v8767_v60  ;;  %v4414_v24 = vadd.f32 %v4372_v5, %v4174_v57  ;;  %v3934_v50 = vadd.f32 %v3892_v53, %v3671_v35 }
 0x2f7   : > { %v4812_v3 = vadd.f32 %v4727_v52, %v4476_v38  ;;  %v4477_v35 = vmax.f32 %v8764_v48, 0.0  ;;  %vm4456_vm0 = vcmp.gt.f32.partialorder %v8764_v48, 20.0  ;;  %vm4499_vm7 = vcmp.ne.f32.partialorder %v8767_v60, %v8767_v60 }
 0x2f8   : > { %v8782_v1 = vpop.permute.xlu1 %4108  ;;  %v4561_v43 = vsub.f32 0.0, %v4540_v46  ;;  %v4562_v34 = vsub.f32 0.0, %v4541_v36  ;;  %v8788_v61 = vadd.f32 %v9447_v8, %v4414_v24  ;;  %v8790_v21 = vpop.permute.xlu0 %3867  ;;  %v4175_v19 = vadd.f32 %v4133_v49, %v3934_v50 }
 0x2f9   : > { %v4833_v57 = vsel %vm4497_vm14, %v8600_v39, %v4812_v3  ;;  %v3630_v24 = vsel %vm3612_vm3, %v8650_v18, %v8775_v45  ;;  %v3893_v18 = vsel %vm3875_vm4, %v8691_v23, %v8790_v21  ;;  %vm4457_vm10 = vcmp.gt.f32.partialorder %v8767_v60, 20.0 }
 0x2fa   : > { %v4595_v51 = vmul.f32 1.442695, %v4561_v43  ;;  %v4597_v28 = vmul.f32 1.442695, %v4562_v34  ;;  %v4542_v41 = vand.u32 2147483647, %v8788_v61  ;;  %v4415_v58 = vadd.f32 %v4373_v9, %v4175_v19 }
 0x2fb   : > { %v8828_v31 = vsel %vm4455_vm15, %v8600_v39, %v4833_v57  ;;  %v3672_v49 = vadd.f32 %v3630_v24, %v8769_v26  ;;  %vm4500_vm11 = vcmp.ne.f32.partialorder %v8788_v61, %v8788_v61 }
 0x2fc   : > { %v3015_v20 = vpop.permute.xlu1 %3014  ;;  %5657 = vpow2.f32 %v4595_v51  ;;  %v3017_v56 = vpop.permute.xlu0 %3016  ;;  %v4563_v22 = vsub.f32 0.0, %v4542_v41  ;;  %v8806_v44 = vadd.f32 %v9447_v8, %v4415_v58 }
 0x2fd   : > { %5659 = vpow2.f32 %v4597_v28  ;;  %v3039_v4 = vsel %vm3020_vm1, %v8728_v55, %v3015_v20  ;;  %v3040_v28 = vsel %vm3020_vm1, %v3015_v20, %v3017_v56  ;;  %v4478_v55 = vmax.f32 %v8767_v60, 0.0 }
 0x2fe   : > { %v4599_v33 = vmul.f32 1.442695, %v4563_v22  ;;  %v4543_v10 = vand.u32 2147483647, %v8806_v44  ;;  %v3081_v23 = vadd.f32 %v3039_v4, %v8439_v2  ;;  %v3082_v12 = vadd.f32 %v3040_v28, %v8457_v14 }
 0x2ff   : > { %vm4459_vm13 = vcmp.gt.f32.partialorder %v8806_v44, 20.0 }
 0x300   : > { %v3019_v30 = vpop.permute.xlu1 %3018  ;;  %v8800_v15 = vpop.permute.xlu0 %3323  ;;  %5661 = vpow2.f32 %v4599_v33  ;;  %v4564_v36 = vsub.f32 0.0, %v4543_v10 }
 0x301   : > { %v3041_v50 = vsel %vm3020_vm1, %v3017_v56, %v3019_v30  ;;  %vm4498_vm1 = vcmp.ne.f32.partialorder %v8764_v48, %v8764_v48  ;;  %v3935_v56 = vadd.f32 %v3893_v18, %v3672_v49 }
 0x302   : > { %v4601_v41 = vmul.f32 1.442695, %v4564_v36  ;;  %v3083_v58 = vadd.f32 %v3041_v50, %v8464_v13 }
 0x304   : > { %v8803_v37 = vpop.permute.xlu1 %3321  ;;  %v8809_v0 = vpop.permute.xlu0 %3608 }
 0x305   : > { %v3346_v11 = vsel %vm3327_vm2, %v8750_v6, %v8803_v37  ;;  %v3347_v13 = vsel %vm3327_vm2, %v8803_v37, %v8800_v15 }
 0x306   : > { %v5658_v29 = vpop.eup %5657  ;;  %v3388_v33 = vadd.f32 %v3346_v11, %v3081_v23 }
 0x307   : > { %v5660_v42 = vpop.eup %5659  ;;  %v4728_v40 = vadd.f32 1.0, %v5658_v29  ;;  %v4731_v17 = vmul.f32 -0.5, %v5658_v29  ;;  %v4734_v26 = vand.u32 2147483647, %v5658_v29 }
 0x308   : > { %v3326_v47 = vpop.permute.xlu1 %3325  ;;  %v4737_v59 = vadd.f32 1.0, %v5660_v42  ;;  %v8812_v5 = vpop.permute.xlu0 %3871  ;;  %v4740_v53 = vmul.f32 -0.5, %v5660_v42  ;;  %v4743_v20 = vand.u32 2147483647, %v5660_v42 }
 0x309   : > { %5663 = vlog2.f32 %v4728_v40  ;;  %v4732_v39 = vadd.f32 1.0, %v4731_v17  ;;  %vm4735_vm8 = vcmp.lt.f32.partialorder %v4734_v26, 0.0004427343 }
 0x30a   : > { %5665 = vlog2.f32 %v4737_v59  ;;  %v8822_v43 = vpop.eup %5661  ;;  %v4741_v19 = vadd.f32 1.0, %v4740_v53  ;;  %vm8860_vm9 = vcmp.lt.f32.partialorder %v4743_v20, 0.0004427343  ;;  %v4479_v53 = vmax.f32 %v8788_v61, 0.0 }
 0x30b   : > { %v4746_v51 = vadd.f32 1.0, %v8822_v43  ;;  %v4749_v30 = vmul.f32 -0.5, %v8822_v43  ;;  %v4733_v38 = vmul.f32 %v5658_v29, %v4732_v39  ;;  %v3348_v29 = vsel %vm3327_vm2, %v8800_v15, %v3326_v47 }
 0x30c   : > { %v8817_v46 = vpop.permute.xlu1 %3606  ;;  %v8825_v34 = vpop.permute.xlu0 %4110  ;;  %v4742_v40 = vmul.f32 %v5660_v42, %v4741_v19  ;;  %v4752_v37 = vand.u32 2147483647, %v8822_v43  ;;  %v4134_v15 = vsel %vm4116_vm5, %v8664_v63, %v8782_v1 }
 0x30d   : > { %5667 = vlog2.f32 %v4746_v51  ;;  %v3631_v22 = vsel %vm3612_vm3, %v8775_v45, %v8817_v46  ;;  %v4750_v17 = vadd.f32 1.0, %v4749_v30  ;;  %v3390_v51 = vadd.f32 %v3348_v29, %v3083_v58 }
 0x30e   : > { %5669 = vpow2.f32 %v4601_v41  ;;  %v3673_v59 = vadd.f32 %v3631_v22, %v3388_v33  ;;  %v4176_v4 = vadd.f32 %v4134_v15, %v3935_v56  ;;  %v3632_v50 = vsel %vm3612_vm3, %v8817_v46, %v8809_v0 }
 0x30f   : > { %v4135_v63 = vsel %vm4116_vm5, %v8782_v1, %v8825_v34  ;;  %v4751_v11 = vmul.f32 %v8822_v43, %v4750_v17  ;;  %vm4753_vm2 = vcmp.lt.f32.partialorder %v4752_v37, 0.0004427343 }
 0x310   : > { %v3611_v9 = vpop.permute.xlu1 %3610  ;;  %v8846_v54 = vpop.permute.xlu0 %3873 }
 0x313   : > { %v5664_v6 = vpop.eup %5663 }
 0x314   : > { %v3870_v2 = vpop.permute.xlu1 %3869  ;;  %v5666_v16 = vpop.eup %5665  ;;  %v4730_v52 = vmul.f32 0.6931472, %v5664_v6 }
 0x315   : > { %v3894_v3 = vsel %vm3875_vm4, %v8790_v21, %v3870_v2  ;;  %v4739_v45 = vmul.f32 0.6931472, %v5666_v16  ;;  %v4351_v24 = vpop.permute.xlu0 %4350  ;;  %v3895_v1 = vsel %vm3875_vm4, %v3870_v2, %v8812_v5 }
 0x316   : > { %v4736_v10 = vsel %vm4735_vm8, %v4733_v38, %v4730_v52  ;;  %v3936_v36 = vadd.f32 %v3894_v3, %v3673_v59 }
 0x317   : > { %v4745_v21 = vsel %vm8860_vm9, %v4742_v40, %v4739_v45  ;;  %v4813_v57 = vadd.f32 %v4736_v10, %v4477_v35  ;;  %v3389_v35 = vadd.f32 %v3347_v13, %v3082_v12  ;;  %v5668_v49 = vpop.eup %5667 }
 0x318   : > { %v4113_v42 = vpop.permute.xlu1 %4112  ;;  %v4814_v18 = vadd.f32 %v4745_v21, %v4478_v55  ;;  %v4748_v41 = vmul.f32 0.6931472, %v5668_v49  ;;  %v4177_v26 = vadd.f32 %v4135_v63, %v3936_v36  ;;  %v3633_v55 = vsel %vm3612_vm3, %v8809_v0, %v3611_v9  ;;  %v8901_v22 = vpop.eup %5669 }
 0x319   : > { %v4834_v47 = vsel %vm4498_vm1, %v8764_v48, %v4813_v57  ;;  %v4115_v56 = vpop.permute.xlu0 %4114  ;;  %v3674_v9 = vadd.f32 %v3632_v50, %v3389_v35  ;;  %v3675_v6 = vadd.f32 %v3633_v55, %v3390_v51  ;;  %v4136_v30 = vsel %vm4116_vm5, %v8825_v34, %v4113_v42 }
 0x31a   : > { %v4855_v28 = vsel %vm4456_vm0, %v8764_v48, %v4834_v47  ;;  %v4754_v23 = vsel %vm4753_vm2, %v4751_v11, %v4748_v41  ;;  %v4835_v43 = vsel %vm4499_vm7, %v8767_v60, %v4814_v18  ;;  %vm4458_vm3 = vcmp.gt.f32.partialorder %v8788_v61, 20.0 }
 0x31b   : > { %v4935_v39 = vcombine.low %v8828_v31, %v4855_v28  ;;  %v4815_v0 = vadd.f32 %v4754_v23, %v4479_v53  ;;  %v3937_v16 = vadd.f32 %v3895_v1, %v3674_v9  ;;  %v4856_v34 = vsel %vm4457_vm10, %v8767_v60, %v4835_v43 }
 0x31c   : > { %v4349_v19 = vpop.permute.xlu1 %4348  ;;  %v4755_v40 = vadd.f32 1.0, %v8901_v22  ;;  %v4973_v47 = vrot.slane %v4965_v62, %v8055_v7  ;;  %v4758_v63 = vmul.f32 -0.5, %v8901_v22  ;;  %v4761_v11 = vand.u32 2147483647, %v8901_v22 }
 0x31d   : > { %v4374_v48 = vsel %vm4356_vm6, %v8705_v27, %v4349_v19  ;;  %v4375_v46 = vsel %vm4356_vm6, %v4349_v19, %v4351_v24  ;;  %v3896_v27 = vsel %vm3875_vm4, %v8812_v5, %v8846_v54  ;;  %v4836_v2 = vsel %vm4500_vm11, %v8788_v61, %v4815_v0 }
 0x31e   : > { %v4416_v20 = vadd.f32 %v4374_v48, %v4176_v4  ;;  %v4417_v31 = vadd.f32 %v4375_v46, %v4177_v26  ;;  %v4137_v5 = vsel %vm4116_vm5, %v4113_v42, %v4115_v56  ;;  %v4857_v54 = vsel %vm4458_vm3, %v8788_v61, %v4836_v2 }
 0x31f   : > { %v3938_v52 = vadd.f32 %v3896_v27, %v3675_v6  ;;  %v4936_v3 = vcombine.low %v4856_v34, %v4857_v54  ;;  %v4178_v45 = vadd.f32 %v4136_v30, %v3937_v16  ;;  %v4957_v29 = vrot.slane %v4935_v39, %v8055_v7 }
 0x320   : > { %v8913_v12 = vadd.f32 %v9447_v8, %v4416_v20  ;;  %v8916_v58 = vadd.f32 %v9447_v8, %v4417_v31  ;;  %v4353_v33 = vpop.permute.xlu1 %4352  ;;  %5671 = vlog2.f32 %v4755_v40  ;;  %v4759_v39 = vadd.f32 1.0, %v4758_v63 }
 0x321   : > { %v4376_v38 = vsel %vm4356_vm6, %v4351_v24, %v4353_v33  ;;  %v4179_v14 = vadd.f32 %v4137_v5, %v3938_v52  ;;  %v4964_v21 = vrot.slane %v4936_v3, %v8055_v7  ;;  %vm4762_vm4 = vcmp.lt.f32.partialorder %v4761_v11, 0.0004427343 }
 0x322   : > { %v4544_v59 = vand.u32 2147483647, %v8913_v12  ;;  %v4545_v10 = vand.u32 2147483647, %v8916_v58  ;;  %v4418_v60 = vadd.f32 %v4376_v38, %v4178_v45  ;;  %v4760_v55 = vmul.f32 %v8901_v22, %v4759_v39 }
 0x323   : > { %v4966_v42 = vcombine.low %v4957_v29, %v4964_v21  ;;  %v4480_v56 = vmax.f32 %v8806_v44, 0.0  ;;  %vm4501_vm5 = vcmp.ne.f32.partialorder %v8806_v44, %v8806_v44  ;;  %v4481_v52 = vmax.f32 %v8913_v12, 0.0 }
 0x324   : > { %v4355_v13 = vpop.permute.xlu1 %4354  ;;  %v4565_v57 = vsub.f32 0.0, %v4544_v59  ;;  %v4566_v17 = vsub.f32 0.0, %v4545_v10  ;;  %v8936_v24 = vadd.f32 %v9447_v8, %v4418_v60  ;;  %v4482_v45 = vmax.f32 %v8916_v58, 0.0 }
 0x325   : > { %v4377_v61 = vsel %vm4356_vm6, %v4353_v33, %v4355_v13  ;;  %v4980_v35 = vrot.slane %v4966_v42, %v8055_v7  ;;  %vm4502_vm14 = vcmp.ne.f32.partialorder %v8913_v12, %v8913_v12  ;;  %vm4460_vm15 = vcmp.gt.f32.partialorder %v8913_v12, 20.0 }
 0x326   : > { %v4419_v36 = vadd.f32 %v4377_v61, %v4179_v14  ;;  %v4603_v53 = vmul.f32 1.442695, %v4565_v57  ;;  %v4605_v37 = vmul.f32 1.442695, %v4566_v17  ;;  %v4546_v51 = vand.u32 2147483647, %v8936_v24 }
 0x327   : > { %v4981_v4 = vcombine.low %v4973_v47, %v4980_v35  ;;  %vm4503_vm1 = vcmp.ne.f32.partialorder %v8916_v58, %v8916_v58  ;;  %vm4504_vm8 = vcmp.ne.f32.partialorder %v8936_v24, %v8936_v24  ;;  %vm4461_vm9 = vcmp.gt.f32.partialorder %v8916_v58, 20.0 }
 0x328   : > { %v8939_v15 = vadd.f32 %v9447_v8, %v4419_v36  ;;  %5673 = vpow2.f32 %v4603_v53  ;;  %v4567_v18 = vsub.f32 0.0, %v4546_v51  ;;  %v4483_v53 = vmax.f32 %v8936_v24, 0.0 }
 0x329   : > { %5675 = vpow2.f32 %v4605_v37  ;;  %5025 = vst [vmem:[%s8546_s15 + $0x8] sm:$0xff] %v4981_v4  ;;  %vm4462_vm10 = vcmp.gt.f32.partialorder %v8936_v24, 20.0 }
 0x32a   : > { %v4547_v49 = vand.u32 2147483647, %v8939_v15  ;;  %v4607_v8 = vmul.f32 1.442695, %v4567_v18  ;;  %v5672_v25 = vpop.eup %5671  ;;  %vm4505_vm11 = vcmp.ne.f32.partialorder %v8939_v15, %v8939_v15  ;;  %vm4463_vm2 = vcmp.gt.f32.partialorder %v8939_v15, 20.0 }
 0x32b   : > { %v4757_v19 = vmul.f32 0.6931472, %v5672_v25 }
 0x32c   : > { %v4568_v28 = vsub.f32 0.0, %v4547_v49  ;;  %5677 = vpow2.f32 %v4607_v8  ;;  %v4484_v49 = vmax.f32 %v8939_v15, 0.0 }
 0x32d   : > { %v4763_v1 = vsel %vm4762_vm4, %v4760_v55, %v4757_v19 }
 0x32e   : > { %v4609_v50 = vmul.f32 1.442695, %v4568_v28  ;;  %v4816_v0 = vadd.f32 %v4763_v1, %v4480_v56 }
 0x330   : > { %5679 = vpow2.f32 %v4609_v50  ;;  %v4837_v5 = vsel %vm4501_vm5, %v8806_v44, %v4816_v0 }
 0x331   : > { %v4858_v61 = vsel %vm4459_vm13, %v8806_v44, %v4837_v5 }
 0x332   : > { %v5674_v32 = vpop.eup %5673 }
 0x333   : > { %v5676_v62 = vpop.eup %5675  ;;  %v4764_v41 = vadd.f32 1.0, %v5674_v32  ;;  %v4767_v46 = vmul.f32 -0.5, %v5674_v32  ;;  %v4770_v27 = vand.u32 2147483647, %v5674_v32 }
 0x334   : > { %v4773_v26 = vadd.f32 1.0, %v5676_v62  ;;  %v4776_v20 = vmul.f32 -0.5, %v5676_v62  ;;  %v4779_v30 = vand.u32 2147483647, %v5676_v62 }
 0x335   : > { %5681 = vlog2.f32 %v4764_v41  ;;  %v4768_v9 = vadd.f32 1.0, %v4767_v46  ;;  %vm4771_vm6 = vcmp.lt.f32.partialorder %v4770_v27, 0.0004427343 }
 0x336   : > { %5683 = vlog2.f32 %v4773_v26  ;;  %v5678_v48 = vpop.eup %5677  ;;  %v4777_v6 = vadd.f32 1.0, %v4776_v20  ;;  %vm4780_vm12 = vcmp.lt.f32.partialorder %v4779_v30, 0.0004427343 }
 0x337   : > { %v4782_v31 = vadd.f32 1.0, %v5678_v48  ;;  %v4785_v33 = vmul.f32 -0.5, %v5678_v48  ;;  %v4769_v54 = vmul.f32 %v5674_v32, %v4768_v9  ;;  %v4788_v13 = vand.u32 2147483647, %v5678_v48 }
 0x338   : > { %v4778_v3 = vmul.f32 %v5676_v62, %v4777_v6 }
 0x339   : > { %5685 = vlog2.f32 %v4782_v31  ;;  %v4786_v59 = vadd.f32 1.0, %v4785_v33  ;;  %vm4789_vm0 = vcmp.lt.f32.partialorder %v4788_v13, 0.0004427343 }
 0x33a   : > { %v5680_v23 = vpop.eup %5679 }
 0x33b   : > { %v4791_v43 = vadd.f32 1.0, %v5680_v23  ;;  %v4794_v22 = vmul.f32 -0.5, %v5680_v23  ;;  %v4797_v21 = vand.u32 2147483647, %v5680_v23  ;;  %v4787_v47 = vmul.f32 %v5678_v48, %v4786_v59 }
 0x33c   : > { %v9548_v48 = vlaneseq }
 0x33d   : > { %5687 = vlog2.f32 %v4791_v43  ;;  %v4795_v29 = vadd.f32 1.0, %v4794_v22  ;;  %vm4798_vm7 = vcmp.lt.f32.partialorder %v4797_v21, 0.0004427343 }
 0x33e   : > { %vm5028_vm3 = vcmp.lt.s32.totalorder %v9548_v48, 640 }
 0x33f   : > { %v5682_v2 = vpop.eup %5681  ;;  %v4796_v4 = vmul.f32 %v5680_v23, %v4795_v29 }
 0x340   : > { %v5684_v16 = vpop.eup %5683  ;;  %v4766_v34 = vmul.f32 0.6931472, %v5682_v2 }
 0x341   : > { %v4775_v38 = vmul.f32 0.6931472, %v5684_v16 }
 0x342   : > { %v4772_v40 = vsel %vm4771_vm6, %v4769_v54, %v4766_v34 }
 0x343   : > { %v4781_v10 = vsel %vm4780_vm12, %v4778_v3, %v4775_v38  ;;  %v4817_v14 = vadd.f32 %v4772_v40, %v4481_v52  ;;  %v5686_v60 = vpop.eup %5685 }
 0x344   : > { %v4818_v57 = vadd.f32 %v4781_v10, %v4482_v45  ;;  %v4784_v37 = vmul.f32 0.6931472, %v5686_v60 }
 0x345   : > { %v4838_v17 = vsel %vm4502_vm14, %v8913_v12, %v4817_v14 }
 0x346   : > { %v4859_v42 = vsel %vm4460_vm15, %v8913_v12, %v4838_v17  ;;  %v4790_v44 = vsel %vm4789_vm0, %v4787_v47, %v4784_v37  ;;  %v4839_v18 = vsel %vm4503_vm1, %v8916_v58, %v4818_v57 }
 0x347   : > { %v5688_v36 = vpop.eup %5687  ;;  %v4982_v35 = vcombine.low %v4858_v61, %v4859_v42  ;;  %v4819_v28 = vadd.f32 %v4790_v44, %v4483_v53  ;;  %v4860_v63 = vsel %vm4461_vm9, %v8916_v58, %v4839_v18 }
 0x348   : > { %v4793_v51 = vmul.f32 0.6931472, %v5688_v36 }
 0x349   : > { %v4840_v50 = vsel %vm4504_vm8, %v8936_v24, %v4819_v28  ;;  %v4990_v11 = vrot.slane %v4982_v35, %v8055_v7 }
 0x34a   : > { %v4799_v8 = vsel %vm4798_vm7, %v4796_v4, %v4793_v51  ;;  %v4861_v25 = vsel %vm4462_vm10, %v8936_v24, %v4840_v50 }
 0x34b   : > { %v4820_v12 = vadd.f32 %v4799_v8, %v4484_v49  ;;  %v4983_v62 = vcombine.low %v4860_v63, %v4861_v25 }
 0x34d   : > { %v4841_v32 = vsel %vm4505_vm11, %v8939_v15, %v4820_v12  ;;  %v4997_v26 = vrot.slane %v4983_v62, %v8055_v7 }
 0x34e   : > { %v4862_v39 = vsel %vm4463_vm2, %v8939_v15, %v4841_v32 }
 0x34f   : > { %v5004_v41 = vrot.slane %v4862_v39, %v8055_v7  ;;  %v5005_v19 = vcombine.low %v4990_v11, %v4997_v26 }
 0x351   : > { %v5019_v55 = vrot.slane %v5004_v41, %v8055_v7  ;;  %v5012_v58 = vrot.slane %v5005_v19, %v8055_v7 }
 0x353   : > { %v5020_v24 = vcombine.low %v5012_v58, %v5019_v55 }
 0x355   : > { %5030 = vst.msk [vmem:[%s8546_s15 + $0x10] sm:$0x1f] %vm5028_vm3, %v5020_v24 }
 0x356 PF: > { %s15_s21 = sadd.s32 1, %s5727_s21   ;;  %s9549_s17 = smov %s5715_s18 }
 0x357   : > { %p12_p10 = scmp.ge.s32.totalorder %s15_s21, 4   ;;  %s9550_s18 = smov %s5804_s25 }
 0x358   : > { %s9551_s19 = smov %s5723_s20  ;;  %s9552_s20 = smov %s9554_s3 }
 0x359   :  { %14 = sbr.rel (!%p12_p10) target bundleno = 5 (0x5), region = 143 }

</bundles_post_ra>
